<compile_context>
chip_gen: v5e
topology: v5e:2x2
jax: 0.10.0
libtpu: 0.0.40
codegen_flags: <defaults>
</compile_context>

<pallas_src>
import math

import jax
import jax.numpy as jnp
from jax import lax
from jax.experimental import pallas as pl
from jax.experimental.pallas import tpu as pltpu

# ---------------- model hyper-parameters (small, consistent with module) ----
B = 2          # batch
S = 8          # sequence length (<= context_len)
D = 32         # input_dim == d_model
O = 16         # output_dim
H = 4          # n_heads
DH = D // H    # head dim
DFF = 64       # d_ff
L = 2          # n_layers
CONTEXT_LEN = 16
EPS = 1e-5
BS = B * S     # folded batch*sequence rows


# ---------------------------------------------------------------------------
# Pallas kernel: full decoder stack, whole (folded) batch in one step.
# ---------------------------------------------------------------------------
def decoder_kernel(x_ref, pe_ref, smask_ref, cmask_ref,
                   sa_w_ref, sa_b_ref, sa_ow_ref, sa_ob_ref,
                   ca_w_ref, ca_b_ref, ca_ow_ref, ca_ob_ref,
                   ln_w_ref, ln_b_ref,
                   ff1_w_ref, ff1_b_ref, ff2_w_ref, ff2_b_ref,
                   fin_w_ref, fin_b_ref,
                   out_ref):
    f32 = jnp.float32

    x = x_ref[...] * f32(math.sqrt(D)) + pe_ref[...]      # (BS, D)
    mem = x                                               # decoder memory (fixed)
    smask = smask_ref[...]                                 # (BS, BS) causal + block-diag
    cmask = cmask_ref[...]                                 # (BS, BS) block-diag only

    def layer_norm(v, w, b):                               # v:(BS,D), w/b:(1,D)
        mu = jnp.mean(v, axis=-1, keepdims=True)
        var = jnp.mean((v - mu) ** 2, axis=-1, keepdims=True)
        return (v - mu) * lax.rsqrt(var + EPS) * w + b

    def mha(q_in, kv_in, w_ref, b_ref, ow_ref, ob_ref, l, mask):
        # w_ref : (L*3*H, D, DH)   per-(layer, {q,k,v}, head) pre-transposed proj
        # b_ref : (L*3*H, 1, DH)
        # ow_ref: (L*H, DH, D)     per-(layer, head) slice of output projection
        # ob_ref: (L, 1, D)
        acc = None
        for h in range(H):                                 # static unroll; leading-axis
            iq = (l * 3 + 0) * H + h                       # weight indexing only (free)
            ik = (l * 3 + 1) * H + h
            iv = (l * 3 + 2) * H + h
            q = jnp.dot(q_in, w_ref[iq], preferred_element_type=f32) + b_ref[iq]
            k = jnp.dot(kv_in, w_ref[ik], preferred_element_type=f32) + b_ref[ik]
            v = jnp.dot(kv_in, w_ref[iv], preferred_element_type=f32) + b_ref[iv]
            # scores = q @ k^T without materializing a transpose (NT dot_general)
            s = lax.dot_general(q, k, (((1,), (1,)), ((), ())),
                                preferred_element_type=f32) + mask   # (BS, BS)
            s = s - jnp.max(s, axis=-1, keepdims=True)
            p = jnp.exp(s)
            p = p * pl.reciprocal(jnp.sum(p, axis=-1, keepdims=True), approx=True)
            o = jnp.dot(p, v, preferred_element_type=f32)             # (BS, DH)
            c = jnp.dot(o, ow_ref[l * H + h], preferred_element_type=f32)  # (BS, D)
            acc = c if acc is None else acc + c
        return acc + ob_ref[l]

    # TODO(synk): dropout is treated as identity (inference-mode forward).
    for l in range(L):                                     # static unrolled layer loop
        # --- masked self attention + add & norm1 (post-norm) ---
        sa = mha(x, x, sa_w_ref, sa_b_ref, sa_ow_ref, sa_ob_ref, l, smask)
        x = layer_norm(x + sa, ln_w_ref[3 * l + 0], ln_b_ref[3 * l + 0])

        # --- cross attention to memory + add & norm2 ---
        ca = mha(x, mem, ca_w_ref, ca_b_ref, ca_ow_ref, ca_ob_ref, l, cmask)
        x = layer_norm(x + ca, ln_w_ref[3 * l + 1], ln_b_ref[3 * l + 1])

        # --- feed forward (relu) + add & norm3 ---
        h1 = jnp.dot(x, ff1_w_ref[l], preferred_element_type=f32) + ff1_b_ref[l]
        h1 = jnp.maximum(h1, 0.0)
        ff = jnp.dot(h1, ff2_w_ref[l], preferred_element_type=f32) + ff2_b_ref[l]
        x = layer_norm(x + ff, ln_w_ref[3 * l + 2], ln_b_ref[3 * l + 2])

    out_ref[...] = (jnp.dot(x, fin_w_ref[...], preferred_element_type=f32)
                    + fin_b_ref[...])


# ---------------------------------------------------------------------------
# Host-side parameter preparation (pre-transpose, per-head split, scale fold)
# ---------------------------------------------------------------------------
def prep_kernel_params(p):
    scale = 1.0 / math.sqrt(DH)

    def qkv_heads(w, b):
        # w: (L, 3D, D) rows [Wq; Wk; Wv];  b: (L, 1, 3D)
        wt = jnp.transpose(w.reshape(L, 3, D, D), (0, 1, 3, 2))           # (L,3,Din,Dout)
        wh = jnp.transpose(wt.reshape(L, 3, D, H, DH), (0, 1, 3, 2, 4))   # (L,3,H,D,DH)
        bh = b.reshape(L, 3, H, DH)                                       # (L,3,H,DH)
        wh = wh.at[:, 0].multiply(scale)       # fold 1/sqrt(DH) into query proj
        bh = bh.at[:, 0].multiply(scale)
        return wh.reshape(L * 3 * H, D, DH), bh.reshape(L * 3 * H, 1, DH)

    def out_heads(ow):                          # (L, D, D) -> (L*H, DH, D) for attn_h @ W
        return jnp.transpose(ow.reshape(L, D, H, DH), (0, 2, 3, 1)).reshape(L * H, DH, D)

    sa_w, sa_b = qkv_heads(p["sa_w"], p["sa_b"])
    ca_w, ca_b = qkv_heads(p["ca_w"], p["ca_b"])
    return dict(
        sa_w=sa_w, sa_b=sa_b, sa_ow=out_heads(p["sa_ow"]), sa_ob=p["sa_ob"],
        ca_w=ca_w, ca_b=ca_b, ca_ow=out_heads(p["ca_ow"]), ca_ob=p["ca_ob"],
        ln_w=p["ln_w"].reshape(L * 3, 1, D), ln_b=p["ln_b"].reshape(L * 3, 1, D),
        ff1_w=jnp.transpose(p["ff1_w"], (0, 2, 1)), ff1_b=p["ff1_b"],
        ff2_w=jnp.transpose(p["ff2_w"], (0, 2, 1)), ff2_b=p["ff2_b"],
        fin_w=p["fin_w"].T, fin_b=p["fin_b"],
    )


def make_masks():
    idx = jnp.arange(BS)
    same = (idx[:, None] // S) == (idx[None, :] // S)        # same batch element
    causal = (idx[None, :] % S) <= (idx[:, None] % S)        # causal within block
    neg = jnp.float32(-1e30)
    smask = jnp.where(same & causal, 0.0, neg).astype(jnp.float32)
    cmask = jnp.where(same, 0.0, neg).astype(jnp.float32)
    return smask, cmask


# ---------------------------------------------------------------------------
# Wrapper
# ---------------------------------------------------------------------------
@jax.jit
def transformer_decoder(x, pe, params):
    kp = prep_kernel_params(params)
    x2d = x.reshape(BS, D)
    pe2 = jnp.tile(pe[:S], (B, 1))                           # (BS, D)
    smask, cmask = make_masks()

    args = (x2d, pe2, smask, cmask,
            kp["sa_w"], kp["sa_b"], kp["sa_ow"], kp["sa_ob"],
            kp["ca_w"], kp["ca_b"], kp["ca_ow"], kp["ca_ob"],
            kp["ln_w"], kp["ln_b"],
            kp["ff1_w"], kp["ff1_b"], kp["ff2_w"], kp["ff2_b"],
            kp["fin_w"], kp["fin_b"])

    def full_spec(a):
        nd = a.ndim
        return pl.BlockSpec(a.shape, lambda i, _nd=nd: (0,) * _nd)

    in_specs = [full_spec(a) for a in args]

    out = pl.pallas_call(
        decoder_kernel,
        out_shape=jax.ShapeDtypeStruct((BS, O), jnp.float32),
        grid_spec=pltpu.PrefetchScalarGridSpec(
            num_scalar_prefetch=0,
            grid=(1,),
            in_specs=in_specs,
            out_specs=pl.BlockSpec((BS, O), lambda i: (0, 0)),
        ),
        compiler_params=pltpu.CompilerParams(
            dimension_semantics=("arbitrary",)),
    )(*args)
    return out.reshape(B, S, O)


# ---------------------------------------------------------------------------
# Deterministic parameter construction + pure-JAX reference
# ---------------------------------------------------------------------------
def make_params(key):
    def nrm(k, shape, scale=0.05):
        return scale * jax.random.normal(k, shape, jnp.float32)

    ks = jax.random.split(key, 16)
    params = dict(
        sa_w=nrm(ks[0], (L, 3 * D, D)), sa_b=nrm(ks[1], (L, 1, 3 * D)),
        sa_ow=nrm(ks[2], (L, D, D)),    sa_ob=nrm(ks[3], (L, 1, D)),
        ca_w=nrm(ks[4], (L, 3 * D, D)), ca_b=nrm(ks[5], (L, 1, 3 * D)),
        ca_ow=nrm(ks[6], (L, D, D)),    ca_ob=nrm(ks[7], (L, 1, D)),
        ln_w=jnp.ones((L, 3, D), jnp.float32),
        ln_b=jnp.zeros((L, 3, D), jnp.float32),
        ff1_w=nrm(ks[8], (L, DFF, D)),  ff1_b=nrm(ks[9], (L, 1, DFF)),
        ff2_w=nrm(ks[10], (L, D, DFF)), ff2_b=nrm(ks[11], (L, 1, D)),
        fin_w=nrm(ks[12], (O, D)),      fin_b=nrm(ks[13], (1, O)),
    )
    return params


def make_positional_encoding(max_len, d_model):
    pos = jnp.arange(max_len, dtype=jnp.float32)[:, None]
    div = jnp.exp(jnp.arange(0, d_model, 2, dtype=jnp.float32)
                  * (-math.log(10000.0) / d_model))
    pe = jnp.zeros((max_len, d_model), jnp.float32)
    pe = pe.at[:, 0::2].set(jnp.sin(pos * div))
    pe = pe.at[:, 1::2].set(jnp.cos(pos * div))
    return pe


def reference(x, pe, p):
    x = x * math.sqrt(D) + pe[None, :S]
    mem = x
    mask = jnp.where(jnp.arange(S)[None, :] > jnp.arange(S)[:, None], -1e30, 0.0)

    def ln(v, w, b):
        mu = v.mean(-1, keepdims=True)
        var = ((v - mu) ** 2).mean(-1, keepdims=True)
        return (v - mu) / jnp.sqrt(var + EPS) * w + b

    def mha(qin, kvin, inw, inb, ow, ob, msk):
        q = qin @ inw[0:D].T + inb[0:D]
        k = kvin @ inw[D:2 * D].T + inb[D:2 * D]
        v = kvin @ inw[2 * D:].T + inb[2 * D:]
        split = lambda t: t.reshape(B, S, H, DH).transpose(0, 2, 1, 3)
        qh, kh, vh = split(q), split(k), split(v)
        s = jnp.einsum('bhqd,bhkd->bhqk', qh, kh) / math.sqrt(DH)
        if msk is not None:
            s = s + msk
        pr = jax.nn.softmax(s, axis=-1)
        o = jnp.einsum('bhqk,bhkd->bhqd', pr, vh).transpose(0, 2, 1, 3).reshape(B, S, D)
        return o @ ow.T + ob

    for l in range(L):
        sa = mha(x, x, p["sa_w"][l], p["sa_b"][l, 0], p["sa_ow"][l], p["sa_ob"][l, 0], mask)
        x = ln(x + sa, p["ln_w"][l, 0], p["ln_b"][l, 0])
        ca = mha(x, mem, p["ca_w"][l], p["ca_b"][l, 0], p["ca_ow"][l], p["ca_ob"][l, 0], None)
        x = ln(x + ca, p["ln_w"][l, 1], p["ln_b"][l, 1])
        h1 = jnp.maximum(x @ p["ff1_w"][l].T + p["ff1_b"][l, 0], 0.0)
        ff = h1 @ p["ff2_w"][l].T + p["ff2_b"][l, 0]
        x = ln(x + ff, p["ln_w"][l, 2], p["ln_b"][l, 2])
    return x @ p["fin_w"].T + p["fin_b"][0]


if __name__ == "__main__":
    key = jax.random.PRNGKey(0)
    kx, kp = jax.random.split(key)
    x = jax.random.normal(kx, (B, S, D), jnp.float32)
    params = make_params(kp)
    pe_full = make_positional_encoding(CONTEXT_LEN, D)

    out = transformer_decoder(x, pe_full, params)
    out = jax.block_until_ready(out)

    ref = reference(x, pe_full, params)
    assert out.shape == (B, S, O)
    err = float(jnp.max(jnp.abs(out - ref)))
    assert err < 1e-2, err
    print("KERNEL_OK")
</pallas_src>

<mosaic_0001>
module attributes {stable_mosaic.version = 11 : i64} {
  func.func @decoder_kernel(%arg0: i32, %arg1: memref<16x32xf32, #tpu.memory_space<vmem>>, %arg2: memref<16x32xf32, #tpu.memory_space<vmem>>, %arg3: memref<16x16xf32, #tpu.memory_space<vmem>>, %arg4: memref<16x16xf32, #tpu.memory_space<vmem>>, %arg5: memref<24x32x8xf32, #tpu.memory_space<vmem>>, %arg6: memref<24x1x8xf32, #tpu.memory_space<vmem>>, %arg7: memref<8x8x32xf32, #tpu.memory_space<vmem>>, %arg8: memref<2x1x32xf32, #tpu.memory_space<vmem>>, %arg9: memref<24x32x8xf32, #tpu.memory_space<vmem>>, %arg10: memref<24x1x8xf32, #tpu.memory_space<vmem>>, %arg11: memref<8x8x32xf32, #tpu.memory_space<vmem>>, %arg12: memref<2x1x32xf32, #tpu.memory_space<vmem>>, %arg13: memref<6x1x32xf32, #tpu.memory_space<vmem>>, %arg14: memref<6x1x32xf32, #tpu.memory_space<vmem>>, %arg15: memref<2x32x64xf32, #tpu.memory_space<vmem>>, %arg16: memref<2x1x64xf32, #tpu.memory_space<vmem>>, %arg17: memref<2x64x32xf32, #tpu.memory_space<vmem>>, %arg18: memref<2x1x32xf32, #tpu.memory_space<vmem>>, %arg19: memref<32x16xf32, #tpu.memory_space<vmem>>, %arg20: memref<1x16xf32, #tpu.memory_space<vmem>>, %arg21: memref<16x16xf32, #tpu.memory_space<vmem>>) attributes {dimension_semantics = [#tpu.dimension_semantics<arbitrary>], iteration_bounds = array<i64: 1>, scalar_prefetch = 0 : i64, scratch_operands = 0 : i64, tpu.core_type = #tpu.core_type<tc>, window_params = [{pipeline_mode = #tpu.pipeline_mode<synchronous>, transform_indices = @transform_0, window_bounds = array<i64: 16, 32>}, {pipeline_mode = #tpu.pipeline_mode<synchronous>, transform_indices = @transform_1, window_bounds = array<i64: 16, 32>}, {pipeline_mode = #tpu.pipeline_mode<synchronous>, transform_indices = @transform_2, window_bounds = array<i64: 16, 16>}, {pipeline_mode = #tpu.pipeline_mode<synchronous>, transform_indices = @transform_3, window_bounds = array<i64: 16, 16>}, {pipeline_mode = #tpu.pipeline_mode<synchronous>, transform_indices = @transform_4, window_bounds = array<i64: 24, 32, 8>}, {pipeline_mode = #tpu.pipeline_mode<synchronous>, transform_indices = @transform_5, window_bounds = array<i64: 24, 1, 8>}, {pipeline_mode = #tpu.pipeline_mode<synchronous>, transform_indices = @transform_6, window_bounds = array<i64: 8, 8, 32>}, {pipeline_mode = #tpu.pipeline_mode<synchronous>, transform_indices = @transform_7, window_bounds = array<i64: 2, 1, 32>}, {pipeline_mode = #tpu.pipeline_mode<synchronous>, transform_indices = @transform_8, window_bounds = array<i64: 24, 32, 8>}, {pipeline_mode = #tpu.pipeline_mode<synchronous>, transform_indices = @transform_9, window_bounds = array<i64: 24, 1, 8>}, {pipeline_mode = #tpu.pipeline_mode<synchronous>, transform_indices = @transform_10, window_bounds = array<i64: 8, 8, 32>}, {pipeline_mode = #tpu.pipeline_mode<synchronous>, transform_indices = @transform_11, window_bounds = array<i64: 2, 1, 32>}, {pipeline_mode = #tpu.pipeline_mode<synchronous>, transform_indices = @transform_12, window_bounds = array<i64: 6, 1, 32>}, {pipeline_mode = #tpu.pipeline_mode<synchronous>, transform_indices = @transform_13, window_bounds = array<i64: 6, 1, 32>}, {pipeline_mode = #tpu.pipeline_mode<synchronous>, transform_indices = @transform_14, window_bounds = array<i64: 2, 32, 64>}, {pipeline_mode = #tpu.pipeline_mode<synchronous>, transform_indices = @transform_15, window_bounds = array<i64: 2, 1, 64>}, {pipeline_mode = #tpu.pipeline_mode<synchronous>, transform_indices = @transform_16, window_bounds = array<i64: 2, 64, 32>}, {pipeline_mode = #tpu.pipeline_mode<synchronous>, transform_indices = @transform_17, window_bounds = array<i64: 2, 1, 32>}, {pipeline_mode = #tpu.pipeline_mode<synchronous>, transform_indices = @transform_18, window_bounds = array<i64: 32, 16>}, {pipeline_mode = #tpu.pipeline_mode<synchronous>, transform_indices = @transform_19, window_bounds = array<i64: 1, 16>}, {pipeline_mode = #tpu.pipeline_mode<synchronous>, transform_indices = @transform_20, window_bounds = array<i64: 16, 16>}]} {
    %c0 = arith.constant 0 : index
    %c0_0 = arith.constant 0 : index
    %0 = vector.load %arg1[%c0, %c0_0] : memref<16x32xf32, #tpu.memory_space<vmem>>, vector<16x32xf32>
    %cst = arith.constant 5.65685415 : f32
    %1 = vector.broadcast %cst : f32 to vector<16x32xf32>
    %2 = arith.mulf %0, %1 : vector<16x32xf32>
    %c0_1 = arith.constant 0 : index
    %c0_2 = arith.constant 0 : index
    %3 = vector.load %arg2[%c0_1, %c0_2] : memref<16x32xf32, #tpu.memory_space<vmem>>, vector<16x32xf32>
    %4 = arith.addf %2, %3 : vector<16x32xf32>
    %c0_3 = arith.constant 0 : index
    %c0_4 = arith.constant 0 : index
    %5 = vector.load %arg3[%c0_3, %c0_4] : memref<16x16xf32, #tpu.memory_space<vmem>>, vector<16x16xf32>
    %c0_5 = arith.constant 0 : index
    %c0_6 = arith.constant 0 : index
    %6 = vector.load %arg4[%c0_5, %c0_6] : memref<16x16xf32, #tpu.memory_space<vmem>>, vector<16x16xf32>
    %c0_7 = arith.constant 0 : index
    %c0_8 = arith.constant 0 : index
    %c0_9 = arith.constant 0 : index
    %7 = vector.load %arg5[%c0_7, %c0_8, %c0_9] : memref<24x32x8xf32, #tpu.memory_space<vmem>>, vector<1x32x8xf32>
    %8 = vector.shape_cast %7 : vector<1x32x8xf32> to vector<32x8xf32>
    %cst_10 = arith.constant dense<0.000000e+00> : vector<16x8xf32>
    %9 = tpu.matmul %4, %8, %cst_10 {dimension_numbers = #tpu.dot_dimension_numbers<[1], [0], [0], [1], [0, 0, 1, 1], [], []>} : vector<16x32xf32>, vector<32x8xf32>, vector<16x8xf32> -> vector<16x8xf32>
    %c0_11 = arith.constant 0 : index
    %c0_12 = arith.constant 0 : index
    %c0_13 = arith.constant 0 : index
    %10 = vector.load %arg6[%c0_11, %c0_12, %c0_13] : memref<24x1x8xf32, #tpu.memory_space<vmem>>, vector<1x1x8xf32>
    %11 = vector.shape_cast %10 : vector<1x1x8xf32> to vector<1x8xf32>
    %12 = vector.broadcast %11 : vector<1x8xf32> to vector<16x8xf32>
    %13 = arith.addf %9, %12 : vector<16x8xf32>
    %c4 = arith.constant 4 : index
    %c0_14 = arith.constant 0 : index
    %c0_15 = arith.constant 0 : index
    %14 = vector.load %arg5[%c4, %c0_14, %c0_15] : memref<24x32x8xf32, #tpu.memory_space<vmem>>, vector<1x32x8xf32>
    %15 = vector.shape_cast %14 : vector<1x32x8xf32> to vector<32x8xf32>
    %cst_16 = arith.constant dense<0.000000e+00> : vector<16x8xf32>
    %16 = tpu.matmul %4, %15, %cst_16 {dimension_numbers = #tpu.dot_dimension_numbers<[1], [0], [0], [1], [0, 0, 1, 1], [], []>} : vector<16x32xf32>, vector<32x8xf32>, vector<16x8xf32> -> vector<16x8xf32>
    %c4_17 = arith.constant 4 : index
    %c0_18 = arith.constant 0 : index
    %c0_19 = arith.constant 0 : index
    %17 = vector.load %arg6[%c4_17, %c0_18, %c0_19] : memref<24x1x8xf32, #tpu.memory_space<vmem>>, vector<1x1x8xf32>
    %18 = vector.shape_cast %17 : vector<1x1x8xf32> to vector<1x8xf32>
    %19 = vector.broadcast %18 : vector<1x8xf32> to vector<16x8xf32>
    %20 = arith.addf %16, %19 : vector<16x8xf32>
    %c8 = arith.constant 8 : index
    %c0_20 = arith.constant 0 : index
    %c0_21 = arith.constant 0 : index
    %21 = vector.load %arg5[%c8, %c0_20, %c0_21] : memref<24x32x8xf32, #tpu.memory_space<vmem>>, vector<1x32x8xf32>
    %22 = vector.shape_cast %21 : vector<1x32x8xf32> to vector<32x8xf32>
    %cst_22 = arith.constant dense<0.000000e+00> : vector<16x8xf32>
    %23 = tpu.matmul %4, %22, %cst_22 {dimension_numbers = #tpu.dot_dimension_numbers<[1], [0], [0], [1], [0, 0, 1, 1], [], []>} : vector<16x32xf32>, vector<32x8xf32>, vector<16x8xf32> -> vector<16x8xf32>
    %c8_23 = arith.constant 8 : index
    %c0_24 = arith.constant 0 : index
    %c0_25 = arith.constant 0 : index
    %24 = vector.load %arg6[%c8_23, %c0_24, %c0_25] : memref<24x1x8xf32, #tpu.memory_space<vmem>>, vector<1x1x8xf32>
    %25 = vector.shape_cast %24 : vector<1x1x8xf32> to vector<1x8xf32>
    %26 = vector.broadcast %25 : vector<1x8xf32> to vector<16x8xf32>
    %27 = arith.addf %23, %26 : vector<16x8xf32>
    %cst_26 = arith.constant dense<0.000000e+00> : vector<16x16xf32>
    %28 = tpu.matmul %13, %20, %cst_26 {dimension_numbers = #tpu.dot_dimension_numbers<[1], [1], [0], [0], [0, 0, 1, 0], [], []>} : vector<16x8xf32>, vector<16x8xf32>, vector<16x16xf32> -> vector<16x16xf32>
    %29 = arith.addf %28, %5 : vector<16x16xf32>
    %cst_27 = arith.constant dense<0xFF800000> : vector<16xf32>
    %30 = vector.multi_reduction <maximumf>, %29, %cst_27 [1] : vector<16x16xf32> to vector<16xf32>
    %31 = vector.shape_cast %30 : vector<16xf32> to vector<16x1xf32>
    %32 = vector.broadcast %31 : vector<16x1xf32> to vector<16x16xf32>
    %33 = arith.subf %29, %32 : vector<16x16xf32>
    %34 = math.exp %33 : vector<16x16xf32>
    %cst_28 = arith.constant dense<0.000000e+00> : vector<16xf32>
    %35 = vector.multi_reduction <add>, %34, %cst_28 [1] : vector<16x16xf32> to vector<16xf32>
    %36 = vector.shape_cast %35 : vector<16xf32> to vector<16x1xf32>
    %37 = tpu.reciprocal %36 {approx = true} : vector<16x1xf32> -> vector<16x1xf32>
    %38 = vector.broadcast %37 : vector<16x1xf32> to vector<16x16xf32>
    %39 = arith.mulf %34, %38 : vector<16x16xf32>
    %cst_29 = arith.constant dense<0.000000e+00> : vector<16x8xf32>
    %40 = tpu.matmul %39, %27, %cst_29 {dimension_numbers = #tpu.dot_dimension_numbers<[1], [0], [0], [1], [0, 0, 1, 1], [], []>} : vector<16x16xf32>, vector<16x8xf32>, vector<16x8xf32> -> vector<16x8xf32>
    %c0_30 = arith.constant 0 : index
    %c0_31 = arith.constant 0 : index
    %c0_32 = arith.constant 0 : index
    %41 = vector.load %arg7[%c0_30, %c0_31, %c0_32] : memref<8x8x32xf32, #tpu.memory_space<vmem>>, vector<1x8x32xf32>
    %42 = vector.shape_cast %41 : vector<1x8x32xf32> to vector<8x32xf32>
    %cst_33 = arith.constant dense<0.000000e+00> : vector<16x32xf32>
    %43 = tpu.matmul %40, %42, %cst_33 {dimension_numbers = #tpu.dot_dimension_numbers<[1], [0], [0], [1], [0, 0, 1, 1], [], []>} : vector<16x8xf32>, vector<8x32xf32>, vector<16x32xf32> -> vector<16x32xf32>
    %c1 = arith.constant 1 : index
    %c0_34 = arith.constant 0 : index
    %c0_35 = arith.constant 0 : index
    %44 = vector.load %arg5[%c1, %c0_34, %c0_35] : memref<24x32x8xf32, #tpu.memory_space<vmem>>, vector<1x32x8xf32>
    %45 = vector.shape_cast %44 : vector<1x32x8xf32> to vector<32x8xf32>
    %cst_36 = arith.constant dense<0.000000e+00> : vector<16x8xf32>
    %46 = tpu.matmul %4, %45, %cst_36 {dimension_numbers = #tpu.dot_dimension_numbers<[1], [0], [0], [1], [0, 0, 1, 1], [], []>} : vector<16x32xf32>, vector<32x8xf32>, vector<16x8xf32> -> vector<16x8xf32>
    %c1_37 = arith.constant 1 : index
    %c0_38 = arith.constant 0 : index
    %c0_39 = arith.constant 0 : index
    %47 = vector.load %arg6[%c1_37, %c0_38, %c0_39] : memref<24x1x8xf32, #tpu.memory_space<vmem>>, vector<1x1x8xf32>
    %48 = vector.shape_cast %47 : vector<1x1x8xf32> to vector<1x8xf32>
    %49 = vector.broadcast %48 : vector<1x8xf32> to vector<16x8xf32>
    %50 = arith.addf %46, %49 : vector<16x8xf32>
    %c5 = arith.constant 5 : index
    %c0_40 = arith.constant 0 : index
    %c0_41 = arith.constant 0 : index
    %51 = vector.load %arg5[%c5, %c0_40, %c0_41] : memref<24x32x8xf32, #tpu.memory_space<vmem>>, vector<1x32x8xf32>
    %52 = vector.shape_cast %51 : vector<1x32x8xf32> to vector<32x8xf32>
    %cst_42 = arith.constant dense<0.000000e+00> : vector<16x8xf32>
    %53 = tpu.matmul %4, %52, %cst_42 {dimension_numbers = #tpu.dot_dimension_numbers<[1], [0], [0], [1], [0, 0, 1, 1], [], []>} : vector<16x32xf32>, vector<32x8xf32>, vector<16x8xf32> -> vector<16x8xf32>
    %c5_43 = arith.constant 5 : index
    %c0_44 = arith.constant 0 : index
    %c0_45 = arith.constant 0 : index
    %54 = vector.load %arg6[%c5_43, %c0_44, %c0_45] : memref<24x1x8xf32, #tpu.memory_space<vmem>>, vector<1x1x8xf32>
    %55 = vector.shape_cast %54 : vector<1x1x8xf32> to vector<1x8xf32>
    %56 = vector.broadcast %55 : vector<1x8xf32> to vector<16x8xf32>
    %57 = arith.addf %53, %56 : vector<16x8xf32>
    %c9 = arith.constant 9 : index
    %c0_46 = arith.constant 0 : index
    %c0_47 = arith.constant 0 : index
    %58 = vector.load %arg5[%c9, %c0_46, %c0_47] : memref<24x32x8xf32, #tpu.memory_space<vmem>>, vector<1x32x8xf32>
    %59 = vector.shape_cast %58 : vector<1x32x8xf32> to vector<32x8xf32>
    %cst_48 = arith.constant dense<0.000000e+00> : vector<16x8xf32>
    %60 = tpu.matmul %4, %59, %cst_48 {dimension_numbers = #tpu.dot_dimension_numbers<[1], [0], [0], [1], [0, 0, 1, 1], [], []>} : vector<16x32xf32>, vector<32x8xf32>, vector<16x8xf32> -> vector<16x8xf32>
    %c9_49 = arith.constant 9 : index
    %c0_50 = arith.constant 0 : index
    %c0_51 = arith.constant 0 : index
    %61 = vector.load %arg6[%c9_49, %c0_50, %c0_51] : memref<24x1x8xf32, #tpu.memory_space<vmem>>, vector<1x1x8xf32>
    %62 = vector.shape_cast %61 : vector<1x1x8xf32> to vector<1x8xf32>
    %63 = vector.broadcast %62 : vector<1x8xf32> to vector<16x8xf32>
    %64 = arith.addf %60, %63 : vector<16x8xf32>
    %cst_52 = arith.constant dense<0.000000e+00> : vector<16x16xf32>
    %65 = tpu.matmul %50, %57, %cst_52 {dimension_numbers = #tpu.dot_dimension_numbers<[1], [1], [0], [0], [0, 0, 1, 0], [], []>} : vector<16x8xf32>, vector<16x8xf32>, vector<16x16xf32> -> vector<16x16xf32>
    %66 = arith.addf %65, %5 : vector<16x16xf32>
    %cst_53 = arith.constant dense<0xFF800000> : vector<16xf32>
    %67 = vector.multi_reduction <maximumf>, %66, %cst_53 [1] : vector<16x16xf32> to vector<16xf32>
    %68 = vector.shape_cast %67 : vector<16xf32> to vector<16x1xf32>
    %69 = vector.broadcast %68 : vector<16x1xf32> to vector<16x16xf32>
    %70 = arith.subf %66, %69 : vector<16x16xf32>
    %71 = math.exp %70 : vector<16x16xf32>
    %cst_54 = arith.constant dense<0.000000e+00> : vector<16xf32>
    %72 = vector.multi_reduction <add>, %71, %cst_54 [1] : vector<16x16xf32> to vector<16xf32>
    %73 = vector.shape_cast %72 : vector<16xf32> to vector<16x1xf32>
    %74 = tpu.reciprocal %73 {approx = true} : vector<16x1xf32> -> vector<16x1xf32>
    %75 = vector.broadcast %74 : vector<16x1xf32> to vector<16x16xf32>
    %76 = arith.mulf %71, %75 : vector<16x16xf32>
    %cst_55 = arith.constant dense<0.000000e+00> : vector<16x8xf32>
    %77 = tpu.matmul %76, %64, %cst_55 {dimension_numbers = #tpu.dot_dimension_numbers<[1], [0], [0], [1], [0, 0, 1, 1], [], []>} : vector<16x16xf32>, vector<16x8xf32>, vector<16x8xf32> -> vector<16x8xf32>
    %c1_56 = arith.constant 1 : index
    %c0_57 = arith.constant 0 : index
    %c0_58 = arith.constant 0 : index
    %78 = vector.load %arg7[%c1_56, %c0_57, %c0_58] : memref<8x8x32xf32, #tpu.memory_space<vmem>>, vector<1x8x32xf32>
    %79 = vector.shape_cast %78 : vector<1x8x32xf32> to vector<8x32xf32>
    %cst_59 = arith.constant dense<0.000000e+00> : vector<16x32xf32>
    %80 = tpu.matmul %77, %79, %cst_59 {dimension_numbers = #tpu.dot_dimension_numbers<[1], [0], [0], [1], [0, 0, 1, 1], [], []>} : vector<16x8xf32>, vector<8x32xf32>, vector<16x32xf32> -> vector<16x32xf32>
    %81 = arith.addf %43, %80 : vector<16x32xf32>
    %c2 = arith.constant 2 : index
    %c0_60 = arith.constant 0 : index
    %c0_61 = arith.constant 0 : index
    %82 = vector.load %arg5[%c2, %c0_60, %c0_61] : memref<24x32x8xf32, #tpu.memory_space<vmem>>, vector<1x32x8xf32>
    %83 = vector.shape_cast %82 : vector<1x32x8xf32> to vector<32x8xf32>
    %cst_62 = arith.constant dense<0.000000e+00> : vector<16x8xf32>
    %84 = tpu.matmul %4, %83, %cst_62 {dimension_numbers = #tpu.dot_dimension_numbers<[1], [0], [0], [1], [0, 0, 1, 1], [], []>} : vector<16x32xf32>, vector<32x8xf32>, vector<16x8xf32> -> vector<16x8xf32>
    %c2_63 = arith.constant 2 : index
    %c0_64 = arith.constant 0 : index
    %c0_65 = arith.constant 0 : index
    %85 = vector.load %arg6[%c2_63, %c0_64, %c0_65] : memref<24x1x8xf32, #tpu.memory_space<vmem>>, vector<1x1x8xf32>
    %86 = vector.shape_cast %85 : vector<1x1x8xf32> to vector<1x8xf32>
    %87 = vector.broadcast %86 : vector<1x8xf32> to vector<16x8xf32>
    %88 = arith.addf %84, %87 : vector<16x8xf32>
    %c6 = arith.constant 6 : index
    %c0_66 = arith.constant 0 : index
    %c0_67 = arith.constant 0 : index
    %89 = vector.load %arg5[%c6, %c0_66, %c0_67] : memref<24x32x8xf32, #tpu.memory_space<vmem>>, vector<1x32x8xf32>
    %90 = vector.shape_cast %89 : vector<1x32x8xf32> to vector<32x8xf32>
    %cst_68 = arith.constant dense<0.000000e+00> : vector<16x8xf32>
    %91 = tpu.matmul %4, %90, %cst_68 {dimension_numbers = #tpu.dot_dimension_numbers<[1], [0], [0], [1], [0, 0, 1, 1], [], []>} : vector<16x32xf32>, vector<32x8xf32>, vector<16x8xf32> -> vector<16x8xf32>
    %c6_69 = arith.constant 6 : index
    %c0_70 = arith.constant 0 : index
    %c0_71 = arith.constant 0 : index
    %92 = vector.load %arg6[%c6_69, %c0_70, %c0_71] : memref<24x1x8xf32, #tpu.memory_space<vmem>>, vector<1x1x8xf32>
    %93 = vector.shape_cast %92 : vector<1x1x8xf32> to vector<1x8xf32>
    %94 = vector.broadcast %93 : vector<1x8xf32> to vector<16x8xf32>
    %95 = arith.addf %91, %94 : vector<16x8xf32>
    %c10 = arith.constant 10 : index
    %c0_72 = arith.constant 0 : index
    %c0_73 = arith.constant 0 : index
    %96 = vector.load %arg5[%c10, %c0_72, %c0_73] : memref<24x32x8xf32, #tpu.memory_space<vmem>>, vector<1x32x8xf32>
    %97 = vector.shape_cast %96 : vector<1x32x8xf32> to vector<32x8xf32>
    %cst_74 = arith.constant dense<0.000000e+00> : vector<16x8xf32>
    %98 = tpu.matmul %4, %97, %cst_74 {dimension_numbers = #tpu.dot_dimension_numbers<[1], [0], [0], [1], [0, 0, 1, 1], [], []>} : vector<16x32xf32>, vector<32x8xf32>, vector<16x8xf32> -> vector<16x8xf32>
    %c10_75 = arith.constant 10 : index
    %c0_76 = arith.constant 0 : index
    %c0_77 = arith.constant 0 : index
    %99 = vector.load %arg6[%c10_75, %c0_76, %c0_77] : memref<24x1x8xf32, #tpu.memory_space<vmem>>, vector<1x1x8xf32>
    %100 = vector.shape_cast %99 : vector<1x1x8xf32> to vector<1x8xf32>
    %101 = vector.broadcast %100 : vector<1x8xf32> to vector<16x8xf32>
    %102 = arith.addf %98, %101 : vector<16x8xf32>
    %cst_78 = arith.constant dense<0.000000e+00> : vector<16x16xf32>
    %103 = tpu.matmul %88, %95, %cst_78 {dimension_numbers = #tpu.dot_dimension_numbers<[1], [1], [0], [0], [0, 0, 1, 0], [], []>} : vector<16x8xf32>, vector<16x8xf32>, vector<16x16xf32> -> vector<16x16xf32>
    %104 = arith.addf %103, %5 : vector<16x16xf32>
    %cst_79 = arith.constant dense<0xFF800000> : vector<16xf32>
    %105 = vector.multi_reduction <maximumf>, %104, %cst_79 [1] : vector<16x16xf32> to vector<16xf32>
    %106 = vector.shape_cast %105 : vector<16xf32> to vector<16x1xf32>
    %107 = vector.broadcast %106 : vector<16x1xf32> to vector<16x16xf32>
    %108 = arith.subf %104, %107 : vector<16x16xf32>
    %109 = math.exp %108 : vector<16x16xf32>
    %cst_80 = arith.constant dense<0.000000e+00> : vector<16xf32>
    %110 = vector.multi_reduction <add>, %109, %cst_80 [1] : vector<16x16xf32> to vector<16xf32>
    %111 = vector.shape_cast %110 : vector<16xf32> to vector<16x1xf32>
    %112 = tpu.reciprocal %111 {approx = true} : vector<16x1xf32> -> vector<16x1xf32>
    %113 = vector.broadcast %112 : vector<16x1xf32> to vector<16x16xf32>
    %114 = arith.mulf %109, %113 : vector<16x16xf32>
    %cst_81 = arith.constant dense<0.000000e+00> : vector<16x8xf32>
    %115 = tpu.matmul %114, %102, %cst_81 {dimension_numbers = #tpu.dot_dimension_numbers<[1], [0], [0], [1], [0, 0, 1, 1], [], []>} : vector<16x16xf32>, vector<16x8xf32>, vector<16x8xf32> -> vector<16x8xf32>
    %c2_82 = arith.constant 2 : index
    %c0_83 = arith.constant 0 : index
    %c0_84 = arith.constant 0 : index
    %116 = vector.load %arg7[%c2_82, %c0_83, %c0_84] : memref<8x8x32xf32, #tpu.memory_space<vmem>>, vector<1x8x32xf32>
    %117 = vector.shape_cast %116 : vector<1x8x32xf32> to vector<8x32xf32>
    %cst_85 = arith.constant dense<0.000000e+00> : vector<16x32xf32>
    %118 = tpu.matmul %115, %117, %cst_85 {dimension_numbers = #tpu.dot_dimension_numbers<[1], [0], [0], [1], [0, 0, 1, 1], [], []>} : vector<16x8xf32>, vector<8x32xf32>, vector<16x32xf32> -> vector<16x32xf32>
    %119 = arith.addf %81, %118 : vector<16x32xf32>
    %c3 = arith.constant 3 : index
    %c0_86 = arith.constant 0 : index
    %c0_87 = arith.constant 0 : index
    %120 = vector.load %arg5[%c3, %c0_86, %c0_87] : memref<24x32x8xf32, #tpu.memory_space<vmem>>, vector<1x32x8xf32>
    %121 = vector.shape_cast %120 : vector<1x32x8xf32> to vector<32x8xf32>
    %cst_88 = arith.constant dense<0.000000e+00> : vector<16x8xf32>
    %122 = tpu.matmul %4, %121, %cst_88 {dimension_numbers = #tpu.dot_dimension_numbers<[1], [0], [0], [1], [0, 0, 1, 1], [], []>} : vector<16x32xf32>, vector<32x8xf32>, vector<16x8xf32> -> vector<16x8xf32>
    %c3_89 = arith.constant 3 : index
    %c0_90 = arith.constant 0 : index
    %c0_91 = arith.constant 0 : index
    %123 = vector.load %arg6[%c3_89, %c0_90, %c0_91] : memref<24x1x8xf32, #tpu.memory_space<vmem>>, vector<1x1x8xf32>
    %124 = vector.shape_cast %123 : vector<1x1x8xf32> to vector<1x8xf32>
    %125 = vector.broadcast %124 : vector<1x8xf32> to vector<16x8xf32>
    %126 = arith.addf %122, %125 : vector<16x8xf32>
    %c7 = arith.constant 7 : index
    %c0_92 = arith.constant 0 : index
    %c0_93 = arith.constant 0 : index
    %127 = vector.load %arg5[%c7, %c0_92, %c0_93] : memref<24x32x8xf32, #tpu.memory_space<vmem>>, vector<1x32x8xf32>
    %128 = vector.shape_cast %127 : vector<1x32x8xf32> to vector<32x8xf32>
    %cst_94 = arith.constant dense<0.000000e+00> : vector<16x8xf32>
    %129 = tpu.matmul %4, %128, %cst_94 {dimension_numbers = #tpu.dot_dimension_numbers<[1], [0], [0], [1], [0, 0, 1, 1], [], []>} : vector<16x32xf32>, vector<32x8xf32>, vector<16x8xf32> -> vector<16x8xf32>
    %c7_95 = arith.constant 7 : index
    %c0_96 = arith.constant 0 : index
    %c0_97 = arith.constant 0 : index
    %130 = vector.load %arg6[%c7_95, %c0_96, %c0_97] : memref<24x1x8xf32, #tpu.memory_space<vmem>>, vector<1x1x8xf32>
    %131 = vector.shape_cast %130 : vector<1x1x8xf32> to vector<1x8xf32>
    %132 = vector.broadcast %131 : vector<1x8xf32> to vector<16x8xf32>
    %133 = arith.addf %129, %132 : vector<16x8xf32>
    %c11 = arith.constant 11 : index
    %c0_98 = arith.constant 0 : index
    %c0_99 = arith.constant 0 : index
    %134 = vector.load %arg5[%c11, %c0_98, %c0_99] : memref<24x32x8xf32, #tpu.memory_space<vmem>>, vector<1x32x8xf32>
    %135 = vector.shape_cast %134 : vector<1x32x8xf32> to vector<32x8xf32>
    %cst_100 = arith.constant dense<0.000000e+00> : vector<16x8xf32>
    %136 = tpu.matmul %4, %135, %cst_100 {dimension_numbers = #tpu.dot_dimension_numbers<[1], [0], [0], [1], [0, 0, 1, 1], [], []>} : vector<16x32xf32>, vector<32x8xf32>, vector<16x8xf32> -> vector<16x8xf32>
    %c11_101 = arith.constant 11 : index
    %c0_102 = arith.constant 0 : index
    %c0_103 = arith.constant 0 : index
    %137 = vector.load %arg6[%c11_101, %c0_102, %c0_103] : memref<24x1x8xf32, #tpu.memory_space<vmem>>, vector<1x1x8xf32>
    %138 = vector.shape_cast %137 : vector<1x1x8xf32> to vector<1x8xf32>
    %139 = vector.broadcast %138 : vector<1x8xf32> to vector<16x8xf32>
    %140 = arith.addf %136, %139 : vector<16x8xf32>
    %cst_104 = arith.constant dense<0.000000e+00> : vector<16x16xf32>
    %141 = tpu.matmul %126, %133, %cst_104 {dimension_numbers = #tpu.dot_dimension_numbers<[1], [1], [0], [0], [0, 0, 1, 0], [], []>} : vector<16x8xf32>, vector<16x8xf32>, vector<16x16xf32> -> vector<16x16xf32>
    %142 = arith.addf %141, %5 : vector<16x16xf32>
    %cst_105 = arith.constant dense<0xFF800000> : vector<16xf32>
    %143 = vector.multi_reduction <maximumf>, %142, %cst_105 [1] : vector<16x16xf32> to vector<16xf32>
    %144 = vector.shape_cast %143 : vector<16xf32> to vector<16x1xf32>
    %145 = vector.broadcast %144 : vector<16x1xf32> to vector<16x16xf32>
    %146 = arith.subf %142, %145 : vector<16x16xf32>
    %147 = math.exp %146 : vector<16x16xf32>
    %cst_106 = arith.constant dense<0.000000e+00> : vector<16xf32>
    %148 = vector.multi_reduction <add>, %147, %cst_106 [1] : vector<16x16xf32> to vector<16xf32>
    %149 = vector.shape_cast %148 : vector<16xf32> to vector<16x1xf32>
    %150 = tpu.reciprocal %149 {approx = true} : vector<16x1xf32> -> vector<16x1xf32>
    %151 = vector.broadcast %150 : vector<16x1xf32> to vector<16x16xf32>
    %152 = arith.mulf %147, %151 : vector<16x16xf32>
    %cst_107 = arith.constant dense<0.000000e+00> : vector<16x8xf32>
    %153 = tpu.matmul %152, %140, %cst_107 {dimension_numbers = #tpu.dot_dimension_numbers<[1], [0], [0], [1], [0, 0, 1, 1], [], []>} : vector<16x16xf32>, vector<16x8xf32>, vector<16x8xf32> -> vector<16x8xf32>
    %c3_108 = arith.constant 3 : index
    %c0_109 = arith.constant 0 : index
    %c0_110 = arith.constant 0 : index
    %154 = vector.load %arg7[%c3_108, %c0_109, %c0_110] : memref<8x8x32xf32, #tpu.memory_space<vmem>>, vector<1x8x32xf32>
    %155 = vector.shape_cast %154 : vector<1x8x32xf32> to vector<8x32xf32>
    %cst_111 = arith.constant dense<0.000000e+00> : vector<16x32xf32>
    %156 = tpu.matmul %153, %155, %cst_111 {dimension_numbers = #tpu.dot_dimension_numbers<[1], [0], [0], [1], [0, 0, 1, 1], [], []>} : vector<16x8xf32>, vector<8x32xf32>, vector<16x32xf32> -> vector<16x32xf32>
    %157 = arith.addf %119, %156 : vector<16x32xf32>
    %c0_112 = arith.constant 0 : index
    %c0_113 = arith.constant 0 : index
    %c0_114 = arith.constant 0 : index
    %158 = vector.load %arg8[%c0_112, %c0_113, %c0_114] : memref<2x1x32xf32, #tpu.memory_space<vmem>>, vector<1x1x32xf32>
    %159 = vector.shape_cast %158 : vector<1x1x32xf32> to vector<1x32xf32>
    %160 = vector.broadcast %159 : vector<1x32xf32> to vector<16x32xf32>
    %161 = arith.addf %157, %160 : vector<16x32xf32>
    %162 = arith.addf %4, %161 : vector<16x32xf32>
    %c0_115 = arith.constant 0 : index
    %c0_116 = arith.constant 0 : index
    %c0_117 = arith.constant 0 : index
    %163 = vector.load %arg13[%c0_115, %c0_116, %c0_117] : memref<6x1x32xf32, #tpu.memory_space<vmem>>, vector<1x1x32xf32>
    %164 = vector.shape_cast %163 : vector<1x1x32xf32> to vector<1x32xf32>
    %c0_118 = arith.constant 0 : index
    %c0_119 = arith.constant 0 : index
    %c0_120 = arith.constant 0 : index
    %165 = vector.load %arg14[%c0_118, %c0_119, %c0_120] : memref<6x1x32xf32, #tpu.memory_space<vmem>>, vector<1x1x32xf32>
    %166 = vector.shape_cast %165 : vector<1x1x32xf32> to vector<1x32xf32>
    %cst_121 = arith.constant dense<0.000000e+00> : vector<16xf32>
    %167 = vector.multi_reduction <add>, %162, %cst_121 [1] : vector<16x32xf32> to vector<16xf32>
    %168 = vector.shape_cast %167 : vector<16xf32> to vector<16x1xf32>
    %cst_122 = arith.constant 3.200000e+01 : f32
    %169 = vector.broadcast %cst_122 : f32 to vector<16x1xf32>
    %170 = arith.divf %168, %169 : vector<16x1xf32>
    %171 = vector.broadcast %170 : vector<16x1xf32> to vector<16x32xf32>
    %172 = arith.subf %162, %171 : vector<16x32xf32>
    %173 = arith.mulf %172, %172 : vector<16x32xf32>
    %cst_123 = arith.constant dense<0.000000e+00> : vector<16xf32>
    %174 = vector.multi_reduction <add>, %173, %cst_123 [1] : vector<16x32xf32> to vector<16xf32>
    %175 = vector.shape_cast %174 : vector<16xf32> to vector<16x1xf32>
    %cst_124 = arith.constant 3.200000e+01 : f32
    %176 = vector.broadcast %cst_124 : f32 to vector<16x1xf32>
    %177 = arith.divf %175, %176 : vector<16x1xf32>
    %178 = vector.broadcast %170 : vector<16x1xf32> to vector<16x32xf32>
    %179 = arith.subf %162, %178 : vector<16x32xf32>
    %cst_125 = arith.constant 9.99999974E-6 : f32
    %180 = vector.broadcast %cst_125 : f32 to vector<16x1xf32>
    %181 = arith.addf %177, %180 : vector<16x1xf32>
    %182 = math.rsqrt %181 : vector<16x1xf32>
    %183 = vector.broadcast %182 : vector<16x1xf32> to vector<16x32xf32>
    %184 = arith.mulf %179, %183 : vector<16x32xf32>
    %185 = vector.broadcast %164 : vector<1x32xf32> to vector<16x32xf32>
    %186 = arith.mulf %184, %185 : vector<16x32xf32>
    %187 = vector.broadcast %166 : vector<1x32xf32> to vector<16x32xf32>
    %188 = arith.addf %186, %187 : vector<16x32xf32>
    %c0_126 = arith.constant 0 : index
    %c0_127 = arith.constant 0 : index
    %c0_128 = arith.constant 0 : index
    %189 = vector.load %arg9[%c0_126, %c0_127, %c0_128] : memref<24x32x8xf32, #tpu.memory_space<vmem>>, vector<1x32x8xf32>
    %190 = vector.shape_cast %189 : vector<1x32x8xf32> to vector<32x8xf32>
    %cst_129 = arith.constant dense<0.000000e+00> : vector<16x8xf32>
    %191 = tpu.matmul %188, %190, %cst_129 {dimension_numbers = #tpu.dot_dimension_numbers<[1], [0], [0], [1], [0, 0, 1, 1], [], []>} : vector<16x32xf32>, vector<32x8xf32>, vector<16x8xf32> -> vector<16x8xf32>
    %c0_130 = arith.constant 0 : index
    %c0_131 = arith.constant 0 : index
    %c0_132 = arith.constant 0 : index
    %192 = vector.load %arg10[%c0_130, %c0_131, %c0_132] : memref<24x1x8xf32, #tpu.memory_space<vmem>>, vector<1x1x8xf32>
    %193 = vector.shape_cast %192 : vector<1x1x8xf32> to vector<1x8xf32>
    %194 = vector.broadcast %193 : vector<1x8xf32> to vector<16x8xf32>
    %195 = arith.addf %191, %194 : vector<16x8xf32>
    %c4_133 = arith.constant 4 : index
    %c0_134 = arith.constant 0 : index
    %c0_135 = arith.constant 0 : index
    %196 = vector.load %arg9[%c4_133, %c0_134, %c0_135] : memref<24x32x8xf32, #tpu.memory_space<vmem>>, vector<1x32x8xf32>
    %197 = vector.shape_cast %196 : vector<1x32x8xf32> to vector<32x8xf32>
    %cst_136 = arith.constant dense<0.000000e+00> : vector<16x8xf32>
    %198 = tpu.matmul %4, %197, %cst_136 {dimension_numbers = #tpu.dot_dimension_numbers<[1], [0], [0], [1], [0, 0, 1, 1], [], []>} : vector<16x32xf32>, vector<32x8xf32>, vector<16x8xf32> -> vector<16x8xf32>
    %c4_137 = arith.constant 4 : index
    %c0_138 = arith.constant 0 : index
    %c0_139 = arith.constant 0 : index
    %199 = vector.load %arg10[%c4_137, %c0_138, %c0_139] : memref<24x1x8xf32, #tpu.memory_space<vmem>>, vector<1x1x8xf32>
    %200 = vector.shape_cast %199 : vector<1x1x8xf32> to vector<1x8xf32>
    %201 = vector.broadcast %200 : vector<1x8xf32> to vector<16x8xf32>
    %202 = arith.addf %198, %201 : vector<16x8xf32>
    %c8_140 = arith.constant 8 : index
    %c0_141 = arith.constant 0 : index
    %c0_142 = arith.constant 0 : index
    %203 = vector.load %arg9[%c8_140, %c0_141, %c0_142] : memref<24x32x8xf32, #tpu.memory_space<vmem>>, vector<1x32x8xf32>
    %204 = vector.shape_cast %203 : vector<1x32x8xf32> to vector<32x8xf32>
    %cst_143 = arith.constant dense<0.000000e+00> : vector<16x8xf32>
    %205 = tpu.matmul %4, %204, %cst_143 {dimension_numbers = #tpu.dot_dimension_numbers<[1], [0], [0], [1], [0, 0, 1, 1], [], []>} : vector<16x32xf32>, vector<32x8xf32>, vector<16x8xf32> -> vector<16x8xf32>
    %c8_144 = arith.constant 8 : index
    %c0_145 = arith.constant 0 : index
    %c0_146 = arith.constant 0 : index
    %206 = vector.load %arg10[%c8_144, %c0_145, %c0_146] : memref<24x1x8xf32, #tpu.memory_space<vmem>>, vector<1x1x8xf32>
    %207 = vector.shape_cast %206 : vector<1x1x8xf32> to vector<1x8xf32>
    %208 = vector.broadcast %207 : vector<1x8xf32> to vector<16x8xf32>
    %209 = arith.addf %205, %208 : vector<16x8xf32>
    %cst_147 = arith.constant dense<0.000000e+00> : vector<16x16xf32>
    %210 = tpu.matmul %195, %202, %cst_147 {dimension_numbers = #tpu.dot_dimension_numbers<[1], [1], [0], [0], [0, 0, 1, 0], [], []>} : vector<16x8xf32>, vector<16x8xf32>, vector<16x16xf32> -> vector<16x16xf32>
    %211 = arith.addf %210, %6 : vector<16x16xf32>
    %cst_148 = arith.constant dense<0xFF800000> : vector<16xf32>
    %212 = vector.multi_reduction <maximumf>, %211, %cst_148 [1] : vector<16x16xf32> to vector<16xf32>
    %213 = vector.shape_cast %212 : vector<16xf32> to vector<16x1xf32>
    %214 = vector.broadcast %213 : vector<16x1xf32> to vector<16x16xf32>
    %215 = arith.subf %211, %214 : vector<16x16xf32>
    %216 = math.exp %215 : vector<16x16xf32>
    %cst_149 = arith.constant dense<0.000000e+00> : vector<16xf32>
    %217 = vector.multi_reduction <add>, %216, %cst_149 [1] : vector<16x16xf32> to vector<16xf32>
    %218 = vector.shape_cast %217 : vector<16xf32> to vector<16x1xf32>
    %219 = tpu.reciprocal %218 {approx = true} : vector<16x1xf32> -> vector<16x1xf32>
    %220 = vector.broadcast %219 : vector<16x1xf32> to vector<16x16xf32>
    %221 = arith.mulf %216, %220 : vector<16x16xf32>
    %cst_150 = arith.constant dense<0.000000e+00> : vector<16x8xf32>
    %222 = tpu.matmul %221, %209, %cst_150 {dimension_numbers = #tpu.dot_dimension_numbers<[1], [0], [0], [1], [0, 0, 1, 1], [], []>} : vector<16x16xf32>, vector<16x8xf32>, vector<16x8xf32> -> vector<16x8xf32>
    %c0_151 = arith.constant 0 : index
    %c0_152 = arith.constant 0 : index
    %c0_153 = arith.constant 0 : index
    %223 = vector.load %arg11[%c0_151, %c0_152, %c0_153] : memref<8x8x32xf32, #tpu.memory_space<vmem>>, vector<1x8x32xf32>
    %224 = vector.shape_cast %223 : vector<1x8x32xf32> to vector<8x32xf32>
    %cst_154 = arith.constant dense<0.000000e+00> : vector<16x32xf32>
    %225 = tpu.matmul %222, %224, %cst_154 {dimension_numbers = #tpu.dot_dimension_numbers<[1], [0], [0], [1], [0, 0, 1, 1], [], []>} : vector<16x8xf32>, vector<8x32xf32>, vector<16x32xf32> -> vector<16x32xf32>
    %c1_155 = arith.constant 1 : index
    %c0_156 = arith.constant 0 : index
    %c0_157 = arith.constant 0 : index
    %226 = vector.load %arg9[%c1_155, %c0_156, %c0_157] : memref<24x32x8xf32, #tpu.memory_space<vmem>>, vector<1x32x8xf32>
    %227 = vector.shape_cast %226 : vector<1x32x8xf32> to vector<32x8xf32>
    %cst_158 = arith.constant dense<0.000000e+00> : vector<16x8xf32>
    %228 = tpu.matmul %188, %227, %cst_158 {dimension_numbers = #tpu.dot_dimension_numbers<[1], [0], [0], [1], [0, 0, 1, 1], [], []>} : vector<16x32xf32>, vector<32x8xf32>, vector<16x8xf32> -> vector<16x8xf32>
    %c1_159 = arith.constant 1 : index
    %c0_160 = arith.constant 0 : index
    %c0_161 = arith.constant 0 : index
    %229 = vector.load %arg10[%c1_159, %c0_160, %c0_161] : memref<24x1x8xf32, #tpu.memory_space<vmem>>, vector<1x1x8xf32>
    %230 = vector.shape_cast %229 : vector<1x1x8xf32> to vector<1x8xf32>
    %231 = vector.broadcast %230 : vector<1x8xf32> to vector<16x8xf32>
    %232 = arith.addf %228, %231 : vector<16x8xf32>
    %c5_162 = arith.constant 5 : index
    %c0_163 = arith.constant 0 : index
    %c0_164 = arith.constant 0 : index
    %233 = vector.load %arg9[%c5_162, %c0_163, %c0_164] : memref<24x32x8xf32, #tpu.memory_space<vmem>>, vector<1x32x8xf32>
    %234 = vector.shape_cast %233 : vector<1x32x8xf32> to vector<32x8xf32>
    %cst_165 = arith.constant dense<0.000000e+00> : vector<16x8xf32>
    %235 = tpu.matmul %4, %234, %cst_165 {dimension_numbers = #tpu.dot_dimension_numbers<[1], [0], [0], [1], [0, 0, 1, 1], [], []>} : vector<16x32xf32>, vector<32x8xf32>, vector<16x8xf32> -> vector<16x8xf32>
    %c5_166 = arith.constant 5 : index
    %c0_167 = arith.constant 0 : index
    %c0_168 = arith.constant 0 : index
    %236 = vector.load %arg10[%c5_166, %c0_167, %c0_168] : memref<24x1x8xf32, #tpu.memory_space<vmem>>, vector<1x1x8xf32>
    %237 = vector.shape_cast %236 : vector<1x1x8xf32> to vector<1x8xf32>
    %238 = vector.broadcast %237 : vector<1x8xf32> to vector<16x8xf32>
    %239 = arith.addf %235, %238 : vector<16x8xf32>
    %c9_169 = arith.constant 9 : index
    %c0_170 = arith.constant 0 : index
    %c0_171 = arith.constant 0 : index
    %240 = vector.load %arg9[%c9_169, %c0_170, %c0_171] : memref<24x32x8xf32, #tpu.memory_space<vmem>>, vector<1x32x8xf32>
    %241 = vector.shape_cast %240 : vector<1x32x8xf32> to vector<32x8xf32>
    %cst_172 = arith.constant dense<0.000000e+00> : vector<16x8xf32>
    %242 = tpu.matmul %4, %241, %cst_172 {dimension_numbers = #tpu.dot_dimension_numbers<[1], [0], [0], [1], [0, 0, 1, 1], [], []>} : vector<16x32xf32>, vector<32x8xf32>, vector<16x8xf32> -> vector<16x8xf32>
    %c9_173 = arith.constant 9 : index
    %c0_174 = arith.constant 0 : index
    %c0_175 = arith.constant 0 : index
    %243 = vector.load %arg10[%c9_173, %c0_174, %c0_175] : memref<24x1x8xf32, #tpu.memory_space<vmem>>, vector<1x1x8xf32>
    %244 = vector.shape_cast %243 : vector<1x1x8xf32> to vector<1x8xf32>
    %245 = vector.broadcast %244 : vector<1x8xf32> to vector<16x8xf32>
    %246 = arith.addf %242, %245 : vector<16x8xf32>
    %cst_176 = arith.constant dense<0.000000e+00> : vector<16x16xf32>
    %247 = tpu.matmul %232, %239, %cst_176 {dimension_numbers = #tpu.dot_dimension_numbers<[1], [1], [0], [0], [0, 0, 1, 0], [], []>} : vector<16x8xf32>, vector<16x8xf32>, vector<16x16xf32> -> vector<16x16xf32>
    %248 = arith.addf %247, %6 : vector<16x16xf32>
    %cst_177 = arith.constant dense<0xFF800000> : vector<16xf32>
    %249 = vector.multi_reduction <maximumf>, %248, %cst_177 [1] : vector<16x16xf32> to vector<16xf32>
    %250 = vector.shape_cast %249 : vector<16xf32> to vector<16x1xf32>
    %251 = vector.broadcast %250 : vector<16x1xf32> to vector<16x16xf32>
    %252 = arith.subf %248, %251 : vector<16x16xf32>
    %253 = math.exp %252 : vector<16x16xf32>
    %cst_178 = arith.constant dense<0.000000e+00> : vector<16xf32>
    %254 = vector.multi_reduction <add>, %253, %cst_178 [1] : vector<16x16xf32> to vector<16xf32>
    %255 = vector.shape_cast %254 : vector<16xf32> to vector<16x1xf32>
    %256 = tpu.reciprocal %255 {approx = true} : vector<16x1xf32> -> vector<16x1xf32>
    %257 = vector.broadcast %256 : vector<16x1xf32> to vector<16x16xf32>
    %258 = arith.mulf %253, %257 : vector<16x16xf32>
    %cst_179 = arith.constant dense<0.000000e+00> : vector<16x8xf32>
    %259 = tpu.matmul %258, %246, %cst_179 {dimension_numbers = #tpu.dot_dimension_numbers<[1], [0], [0], [1], [0, 0, 1, 1], [], []>} : vector<16x16xf32>, vector<16x8xf32>, vector<16x8xf32> -> vector<16x8xf32>
    %c1_180 = arith.constant 1 : index
    %c0_181 = arith.constant 0 : index
    %c0_182 = arith.constant 0 : index
    %260 = vector.load %arg11[%c1_180, %c0_181, %c0_182] : memref<8x8x32xf32, #tpu.memory_space<vmem>>, vector<1x8x32xf32>
    %261 = vector.shape_cast %260 : vector<1x8x32xf32> to vector<8x32xf32>
    %cst_183 = arith.constant dense<0.000000e+00> : vector<16x32xf32>
    %262 = tpu.matmul %259, %261, %cst_183 {dimension_numbers = #tpu.dot_dimension_numbers<[1], [0], [0], [1], [0, 0, 1, 1], [], []>} : vector<16x8xf32>, vector<8x32xf32>, vector<16x32xf32> -> vector<16x32xf32>
    %263 = arith.addf %225, %262 : vector<16x32xf32>
    %c2_184 = arith.constant 2 : index
    %c0_185 = arith.constant 0 : index
    %c0_186 = arith.constant 0 : index
    %264 = vector.load %arg9[%c2_184, %c0_185, %c0_186] : memref<24x32x8xf32, #tpu.memory_space<vmem>>, vector<1x32x8xf32>
    %265 = vector.shape_cast %264 : vector<1x32x8xf32> to vector<32x8xf32>
    %cst_187 = arith.constant dense<0.000000e+00> : vector<16x8xf32>
    %266 = tpu.matmul %188, %265, %cst_187 {dimension_numbers = #tpu.dot_dimension_numbers<[1], [0], [0], [1], [0, 0, 1, 1], [], []>} : vector<16x32xf32>, vector<32x8xf32>, vector<16x8xf32> -> vector<16x8xf32>
    %c2_188 = arith.constant 2 : index
    %c0_189 = arith.constant 0 : index
    %c0_190 = arith.constant 0 : index
    %267 = vector.load %arg10[%c2_188, %c0_189, %c0_190] : memref<24x1x8xf32, #tpu.memory_space<vmem>>, vector<1x1x8xf32>
    %268 = vector.shape_cast %267 : vector<1x1x8xf32> to vector<1x8xf32>
    %269 = vector.broadcast %268 : vector<1x8xf32> to vector<16x8xf32>
    %270 = arith.addf %266, %269 : vector<16x8xf32>
    %c6_191 = arith.constant 6 : index
    %c0_192 = arith.constant 0 : index
    %c0_193 = arith.constant 0 : index
    %271 = vector.load %arg9[%c6_191, %c0_192, %c0_193] : memref<24x32x8xf32, #tpu.memory_space<vmem>>, vector<1x32x8xf32>
    %272 = vector.shape_cast %271 : vector<1x32x8xf32> to vector<32x8xf32>
    %cst_194 = arith.constant dense<0.000000e+00> : vector<16x8xf32>
    %273 = tpu.matmul %4, %272, %cst_194 {dimension_numbers = #tpu.dot_dimension_numbers<[1], [0], [0], [1], [0, 0, 1, 1], [], []>} : vector<16x32xf32>, vector<32x8xf32>, vector<16x8xf32> -> vector<16x8xf32>
    %c6_195 = arith.constant 6 : index
    %c0_196 = arith.constant 0 : index
    %c0_197 = arith.constant 0 : index
    %274 = vector.load %arg10[%c6_195, %c0_196, %c0_197] : memref<24x1x8xf32, #tpu.memory_space<vmem>>, vector<1x1x8xf32>
    %275 = vector.shape_cast %274 : vector<1x1x8xf32> to vector<1x8xf32>
    %276 = vector.broadcast %275 : vector<1x8xf32> to vector<16x8xf32>
    %277 = arith.addf %273, %276 : vector<16x8xf32>
    %c10_198 = arith.constant 10 : index
    %c0_199 = arith.constant 0 : index
    %c0_200 = arith.constant 0 : index
    %278 = vector.load %arg9[%c10_198, %c0_199, %c0_200] : memref<24x32x8xf32, #tpu.memory_space<vmem>>, vector<1x32x8xf32>
    %279 = vector.shape_cast %278 : vector<1x32x8xf32> to vector<32x8xf32>
    %cst_201 = arith.constant dense<0.000000e+00> : vector<16x8xf32>
    %280 = tpu.matmul %4, %279, %cst_201 {dimension_numbers = #tpu.dot_dimension_numbers<[1], [0], [0], [1], [0, 0, 1, 1], [], []>} : vector<16x32xf32>, vector<32x8xf32>, vector<16x8xf32> -> vector<16x8xf32>
    %c10_202 = arith.constant 10 : index
    %c0_203 = arith.constant 0 : index
    %c0_204 = arith.constant 0 : index
    %281 = vector.load %arg10[%c10_202, %c0_203, %c0_204] : memref<24x1x8xf32, #tpu.memory_space<vmem>>, vector<1x1x8xf32>
    %282 = vector.shape_cast %281 : vector<1x1x8xf32> to vector<1x8xf32>
    %283 = vector.broadcast %282 : vector<1x8xf32> to vector<16x8xf32>
    %284 = arith.addf %280, %283 : vector<16x8xf32>
    %cst_205 = arith.constant dense<0.000000e+00> : vector<16x16xf32>
    %285 = tpu.matmul %270, %277, %cst_205 {dimension_numbers = #tpu.dot_dimension_numbers<[1], [1], [0], [0], [0, 0, 1, 0], [], []>} : vector<16x8xf32>, vector<16x8xf32>, vector<16x16xf32> -> vector<16x16xf32>
    %286 = arith.addf %285, %6 : vector<16x16xf32>
    %cst_206 = arith.constant dense<0xFF800000> : vector<16xf32>
    %287 = vector.multi_reduction <maximumf>, %286, %cst_206 [1] : vector<16x16xf32> to vector<16xf32>
    %288 = vector.shape_cast %287 : vector<16xf32> to vector<16x1xf32>
    %289 = vector.broadcast %288 : vector<16x1xf32> to vector<16x16xf32>
    %290 = arith.subf %286, %289 : vector<16x16xf32>
    %291 = math.exp %290 : vector<16x16xf32>
    %cst_207 = arith.constant dense<0.000000e+00> : vector<16xf32>
    %292 = vector.multi_reduction <add>, %291, %cst_207 [1] : vector<16x16xf32> to vector<16xf32>
    %293 = vector.shape_cast %292 : vector<16xf32> to vector<16x1xf32>
    %294 = tpu.reciprocal %293 {approx = true} : vector<16x1xf32> -> vector<16x1xf32>
    %295 = vector.broadcast %294 : vector<16x1xf32> to vector<16x16xf32>
    %296 = arith.mulf %291, %295 : vector<16x16xf32>
    %cst_208 = arith.constant dense<0.000000e+00> : vector<16x8xf32>
    %297 = tpu.matmul %296, %284, %cst_208 {dimension_numbers = #tpu.dot_dimension_numbers<[1], [0], [0], [1], [0, 0, 1, 1], [], []>} : vector<16x16xf32>, vector<16x8xf32>, vector<16x8xf32> -> vector<16x8xf32>
    %c2_209 = arith.constant 2 : index
    %c0_210 = arith.constant 0 : index
    %c0_211 = arith.constant 0 : index
    %298 = vector.load %arg11[%c2_209, %c0_210, %c0_211] : memref<8x8x32xf32, #tpu.memory_space<vmem>>, vector<1x8x32xf32>
    %299 = vector.shape_cast %298 : vector<1x8x32xf32> to vector<8x32xf32>
    %cst_212 = arith.constant dense<0.000000e+00> : vector<16x32xf32>
    %300 = tpu.matmul %297, %299, %cst_212 {dimension_numbers = #tpu.dot_dimension_numbers<[1], [0], [0], [1], [0, 0, 1, 1], [], []>} : vector<16x8xf32>, vector<8x32xf32>, vector<16x32xf32> -> vector<16x32xf32>
    %301 = arith.addf %263, %300 : vector<16x32xf32>
    %c3_213 = arith.constant 3 : index
    %c0_214 = arith.constant 0 : index
    %c0_215 = arith.constant 0 : index
    %302 = vector.load %arg9[%c3_213, %c0_214, %c0_215] : memref<24x32x8xf32, #tpu.memory_space<vmem>>, vector<1x32x8xf32>
    %303 = vector.shape_cast %302 : vector<1x32x8xf32> to vector<32x8xf32>
    %cst_216 = arith.constant dense<0.000000e+00> : vector<16x8xf32>
    %304 = tpu.matmul %188, %303, %cst_216 {dimension_numbers = #tpu.dot_dimension_numbers<[1], [0], [0], [1], [0, 0, 1, 1], [], []>} : vector<16x32xf32>, vector<32x8xf32>, vector<16x8xf32> -> vector<16x8xf32>
    %c3_217 = arith.constant 3 : index
    %c0_218 = arith.constant 0 : index
    %c0_219 = arith.constant 0 : index
    %305 = vector.load %arg10[%c3_217, %c0_218, %c0_219] : memref<24x1x8xf32, #tpu.memory_space<vmem>>, vector<1x1x8xf32>
    %306 = vector.shape_cast %305 : vector<1x1x8xf32> to vector<1x8xf32>
    %307 = vector.broadcast %306 : vector<1x8xf32> to vector<16x8xf32>
    %308 = arith.addf %304, %307 : vector<16x8xf32>
    %c7_220 = arith.constant 7 : index
    %c0_221 = arith.constant 0 : index
    %c0_222 = arith.constant 0 : index
    %309 = vector.load %arg9[%c7_220, %c0_221, %c0_222] : memref<24x32x8xf32, #tpu.memory_space<vmem>>, vector<1x32x8xf32>
    %310 = vector.shape_cast %309 : vector<1x32x8xf32> to vector<32x8xf32>
    %cst_223 = arith.constant dense<0.000000e+00> : vector<16x8xf32>
    %311 = tpu.matmul %4, %310, %cst_223 {dimension_numbers = #tpu.dot_dimension_numbers<[1], [0], [0], [1], [0, 0, 1, 1], [], []>} : vector<16x32xf32>, vector<32x8xf32>, vector<16x8xf32> -> vector<16x8xf32>
    %c7_224 = arith.constant 7 : index
    %c0_225 = arith.constant 0 : index
    %c0_226 = arith.constant 0 : index
    %312 = vector.load %arg10[%c7_224, %c0_225, %c0_226] : memref<24x1x8xf32, #tpu.memory_space<vmem>>, vector<1x1x8xf32>
    %313 = vector.shape_cast %312 : vector<1x1x8xf32> to vector<1x8xf32>
    %314 = vector.broadcast %313 : vector<1x8xf32> to vector<16x8xf32>
    %315 = arith.addf %311, %314 : vector<16x8xf32>
    %c11_227 = arith.constant 11 : index
    %c0_228 = arith.constant 0 : index
    %c0_229 = arith.constant 0 : index
    %316 = vector.load %arg9[%c11_227, %c0_228, %c0_229] : memref<24x32x8xf32, #tpu.memory_space<vmem>>, vector<1x32x8xf32>
    %317 = vector.shape_cast %316 : vector<1x32x8xf32> to vector<32x8xf32>
    %cst_230 = arith.constant dense<0.000000e+00> : vector<16x8xf32>
    %318 = tpu.matmul %4, %317, %cst_230 {dimension_numbers = #tpu.dot_dimension_numbers<[1], [0], [0], [1], [0, 0, 1, 1], [], []>} : vector<16x32xf32>, vector<32x8xf32>, vector<16x8xf32> -> vector<16x8xf32>
    %c11_231 = arith.constant 11 : index
    %c0_232 = arith.constant 0 : index
    %c0_233 = arith.constant 0 : index
    %319 = vector.load %arg10[%c11_231, %c0_232, %c0_233] : memref<24x1x8xf32, #tpu.memory_space<vmem>>, vector<1x1x8xf32>
    %320 = vector.shape_cast %319 : vector<1x1x8xf32> to vector<1x8xf32>
    %321 = vector.broadcast %320 : vector<1x8xf32> to vector<16x8xf32>
    %322 = arith.addf %318, %321 : vector<16x8xf32>
    %cst_234 = arith.constant dense<0.000000e+00> : vector<16x16xf32>
    %323 = tpu.matmul %308, %315, %cst_234 {dimension_numbers = #tpu.dot_dimension_numbers<[1], [1], [0], [0], [0, 0, 1, 0], [], []>} : vector<16x8xf32>, vector<16x8xf32>, vector<16x16xf32> -> vector<16x16xf32>
    %324 = arith.addf %323, %6 : vector<16x16xf32>
    %cst_235 = arith.constant dense<0xFF800000> : vector<16xf32>
    %325 = vector.multi_reduction <maximumf>, %324, %cst_235 [1] : vector<16x16xf32> to vector<16xf32>
    %326 = vector.shape_cast %325 : vector<16xf32> to vector<16x1xf32>
    %327 = vector.broadcast %326 : vector<16x1xf32> to vector<16x16xf32>
    %328 = arith.subf %324, %327 : vector<16x16xf32>
    %329 = math.exp %328 : vector<16x16xf32>
    %cst_236 = arith.constant dense<0.000000e+00> : vector<16xf32>
    %330 = vector.multi_reduction <add>, %329, %cst_236 [1] : vector<16x16xf32> to vector<16xf32>
    %331 = vector.shape_cast %330 : vector<16xf32> to vector<16x1xf32>
    %332 = tpu.reciprocal %331 {approx = true} : vector<16x1xf32> -> vector<16x1xf32>
    %333 = vector.broadcast %332 : vector<16x1xf32> to vector<16x16xf32>
    %334 = arith.mulf %329, %333 : vector<16x16xf32>
    %cst_237 = arith.constant dense<0.000000e+00> : vector<16x8xf32>
    %335 = tpu.matmul %334, %322, %cst_237 {dimension_numbers = #tpu.dot_dimension_numbers<[1], [0], [0], [1], [0, 0, 1, 1], [], []>} : vector<16x16xf32>, vector<16x8xf32>, vector<16x8xf32> -> vector<16x8xf32>
    %c3_238 = arith.constant 3 : index
    %c0_239 = arith.constant 0 : index
    %c0_240 = arith.constant 0 : index
    %336 = vector.load %arg11[%c3_238, %c0_239, %c0_240] : memref<8x8x32xf32, #tpu.memory_space<vmem>>, vector<1x8x32xf32>
    %337 = vector.shape_cast %336 : vector<1x8x32xf32> to vector<8x32xf32>
    %cst_241 = arith.constant dense<0.000000e+00> : vector<16x32xf32>
    %338 = tpu.matmul %335, %337, %cst_241 {dimension_numbers = #tpu.dot_dimension_numbers<[1], [0], [0], [1], [0, 0, 1, 1], [], []>} : vector<16x8xf32>, vector<8x32xf32>, vector<16x32xf32> -> vector<16x32xf32>
    %339 = arith.addf %301, %338 : vector<16x32xf32>
    %c0_242 = arith.constant 0 : index
    %c0_243 = arith.constant 0 : index
    %c0_244 = arith.constant 0 : index
    %340 = vector.load %arg12[%c0_242, %c0_243, %c0_244] : memref<2x1x32xf32, #tpu.memory_space<vmem>>, vector<1x1x32xf32>
    %341 = vector.shape_cast %340 : vector<1x1x32xf32> to vector<1x32xf32>
    %342 = vector.broadcast %341 : vector<1x32xf32> to vector<16x32xf32>
    %343 = arith.addf %339, %342 : vector<16x32xf32>
    %344 = arith.addf %188, %343 : vector<16x32xf32>
    %c1_245 = arith.constant 1 : index
    %c0_246 = arith.constant 0 : index
    %c0_247 = arith.constant 0 : index
    %345 = vector.load %arg13[%c1_245, %c0_246, %c0_247] : memref<6x1x32xf32, #tpu.memory_space<vmem>>, vector<1x1x32xf32>
    %346 = vector.shape_cast %345 : vector<1x1x32xf32> to vector<1x32xf32>
    %c1_248 = arith.constant 1 : index
    %c0_249 = arith.constant 0 : index
    %c0_250 = arith.constant 0 : index
    %347 = vector.load %arg14[%c1_248, %c0_249, %c0_250] : memref<6x1x32xf32, #tpu.memory_space<vmem>>, vector<1x1x32xf32>
    %348 = vector.shape_cast %347 : vector<1x1x32xf32> to vector<1x32xf32>
    %cst_251 = arith.constant dense<0.000000e+00> : vector<16xf32>
    %349 = vector.multi_reduction <add>, %344, %cst_251 [1] : vector<16x32xf32> to vector<16xf32>
    %350 = vector.shape_cast %349 : vector<16xf32> to vector<16x1xf32>
    %cst_252 = arith.constant 3.200000e+01 : f32
    %351 = vector.broadcast %cst_252 : f32 to vector<16x1xf32>
    %352 = arith.divf %350, %351 : vector<16x1xf32>
    %353 = vector.broadcast %352 : vector<16x1xf32> to vector<16x32xf32>
    %354 = arith.subf %344, %353 : vector<16x32xf32>
    %355 = arith.mulf %354, %354 : vector<16x32xf32>
    %cst_253 = arith.constant dense<0.000000e+00> : vector<16xf32>
    %356 = vector.multi_reduction <add>, %355, %cst_253 [1] : vector<16x32xf32> to vector<16xf32>
    %357 = vector.shape_cast %356 : vector<16xf32> to vector<16x1xf32>
    %cst_254 = arith.constant 3.200000e+01 : f32
    %358 = vector.broadcast %cst_254 : f32 to vector<16x1xf32>
    %359 = arith.divf %357, %358 : vector<16x1xf32>
    %360 = vector.broadcast %352 : vector<16x1xf32> to vector<16x32xf32>
    %361 = arith.subf %344, %360 : vector<16x32xf32>
    %cst_255 = arith.constant 9.99999974E-6 : f32
    %362 = vector.broadcast %cst_255 : f32 to vector<16x1xf32>
    %363 = arith.addf %359, %362 : vector<16x1xf32>
    %364 = math.rsqrt %363 : vector<16x1xf32>
    %365 = vector.broadcast %364 : vector<16x1xf32> to vector<16x32xf32>
    %366 = arith.mulf %361, %365 : vector<16x32xf32>
    %367 = vector.broadcast %346 : vector<1x32xf32> to vector<16x32xf32>
    %368 = arith.mulf %366, %367 : vector<16x32xf32>
    %369 = vector.broadcast %348 : vector<1x32xf32> to vector<16x32xf32>
    %370 = arith.addf %368, %369 : vector<16x32xf32>
    %c0_256 = arith.constant 0 : index
    %c0_257 = arith.constant 0 : index
    %c0_258 = arith.constant 0 : index
    %371 = vector.load %arg15[%c0_256, %c0_257, %c0_258] : memref<2x32x64xf32, #tpu.memory_space<vmem>>, vector<1x32x64xf32>
    %372 = vector.shape_cast %371 : vector<1x32x64xf32> to vector<32x64xf32>
    %cst_259 = arith.constant dense<0.000000e+00> : vector<16x64xf32>
    %373 = tpu.matmul %370, %372, %cst_259 {dimension_numbers = #tpu.dot_dimension_numbers<[1], [0], [0], [1], [0, 0, 1, 1], [], []>} : vector<16x32xf32>, vector<32x64xf32>, vector<16x64xf32> -> vector<16x64xf32>
    %c0_260 = arith.constant 0 : index
    %c0_261 = arith.constant 0 : index
    %c0_262 = arith.constant 0 : index
    %374 = vector.load %arg16[%c0_260, %c0_261, %c0_262] : memref<2x1x64xf32, #tpu.memory_space<vmem>>, vector<1x1x64xf32>
    %375 = vector.shape_cast %374 : vector<1x1x64xf32> to vector<1x64xf32>
    %376 = vector.broadcast %375 : vector<1x64xf32> to vector<16x64xf32>
    %377 = arith.addf %373, %376 : vector<16x64xf32>
    %cst_263 = arith.constant 0.000000e+00 : f32
    %378 = vector.broadcast %cst_263 : f32 to vector<16x64xf32>
    %379 = arith.maximumf %377, %378 : vector<16x64xf32>
    %c0_264 = arith.constant 0 : index
    %c0_265 = arith.constant 0 : index
    %c0_266 = arith.constant 0 : index
    %380 = vector.load %arg17[%c0_264, %c0_265, %c0_266] : memref<2x64x32xf32, #tpu.memory_space<vmem>>, vector<1x64x32xf32>
    %381 = vector.shape_cast %380 : vector<1x64x32xf32> to vector<64x32xf32>
    %cst_267 = arith.constant dense<0.000000e+00> : vector<16x32xf32>
    %382 = tpu.matmul %379, %381, %cst_267 {dimension_numbers = #tpu.dot_dimension_numbers<[1], [0], [0], [1], [0, 0, 1, 1], [], []>} : vector<16x64xf32>, vector<64x32xf32>, vector<16x32xf32> -> vector<16x32xf32>
    %c0_268 = arith.constant 0 : index
    %c0_269 = arith.constant 0 : index
    %c0_270 = arith.constant 0 : index
    %383 = vector.load %arg18[%c0_268, %c0_269, %c0_270] : memref<2x1x32xf32, #tpu.memory_space<vmem>>, vector<1x1x32xf32>
    %384 = vector.shape_cast %383 : vector<1x1x32xf32> to vector<1x32xf32>
    %385 = vector.broadcast %384 : vector<1x32xf32> to vector<16x32xf32>
    %386 = arith.addf %382, %385 : vector<16x32xf32>
    %387 = arith.addf %370, %386 : vector<16x32xf32>
    %c2_271 = arith.constant 2 : index
    %c0_272 = arith.constant 0 : index
    %c0_273 = arith.constant 0 : index
    %388 = vector.load %arg13[%c2_271, %c0_272, %c0_273] : memref<6x1x32xf32, #tpu.memory_space<vmem>>, vector<1x1x32xf32>
    %389 = vector.shape_cast %388 : vector<1x1x32xf32> to vector<1x32xf32>
    %c2_274 = arith.constant 2 : index
    %c0_275 = arith.constant 0 : index
    %c0_276 = arith.constant 0 : index
    %390 = vector.load %arg14[%c2_274, %c0_275, %c0_276] : memref<6x1x32xf32, #tpu.memory_space<vmem>>, vector<1x1x32xf32>
    %391 = vector.shape_cast %390 : vector<1x1x32xf32> to vector<1x32xf32>
    %cst_277 = arith.constant dense<0.000000e+00> : vector<16xf32>
    %392 = vector.multi_reduction <add>, %387, %cst_277 [1] : vector<16x32xf32> to vector<16xf32>
    %393 = vector.shape_cast %392 : vector<16xf32> to vector<16x1xf32>
    %cst_278 = arith.constant 3.200000e+01 : f32
    %394 = vector.broadcast %cst_278 : f32 to vector<16x1xf32>
    %395 = arith.divf %393, %394 : vector<16x1xf32>
    %396 = vector.broadcast %395 : vector<16x1xf32> to vector<16x32xf32>
    %397 = arith.subf %387, %396 : vector<16x32xf32>
    %398 = arith.mulf %397, %397 : vector<16x32xf32>
    %cst_279 = arith.constant dense<0.000000e+00> : vector<16xf32>
    %399 = vector.multi_reduction <add>, %398, %cst_279 [1] : vector<16x32xf32> to vector<16xf32>
    %400 = vector.shape_cast %399 : vector<16xf32> to vector<16x1xf32>
    %cst_280 = arith.constant 3.200000e+01 : f32
    %401 = vector.broadcast %cst_280 : f32 to vector<16x1xf32>
    %402 = arith.divf %400, %401 : vector<16x1xf32>
    %403 = vector.broadcast %395 : vector<16x1xf32> to vector<16x32xf32>
    %404 = arith.subf %387, %403 : vector<16x32xf32>
    %cst_281 = arith.constant 9.99999974E-6 : f32
    %405 = vector.broadcast %cst_281 : f32 to vector<16x1xf32>
    %406 = arith.addf %402, %405 : vector<16x1xf32>
    %407 = math.rsqrt %406 : vector<16x1xf32>
    %408 = vector.broadcast %407 : vector<16x1xf32> to vector<16x32xf32>
    %409 = arith.mulf %404, %408 : vector<16x32xf32>
    %410 = vector.broadcast %389 : vector<1x32xf32> to vector<16x32xf32>
    %411 = arith.mulf %409, %410 : vector<16x32xf32>
    %412 = vector.broadcast %391 : vector<1x32xf32> to vector<16x32xf32>
    %413 = arith.addf %411, %412 : vector<16x32xf32>
    %c12 = arith.constant 12 : index
    %c0_282 = arith.constant 0 : index
    %c0_283 = arith.constant 0 : index
    %414 = vector.load %arg5[%c12, %c0_282, %c0_283] : memref<24x32x8xf32, #tpu.memory_space<vmem>>, vector<1x32x8xf32>
    %415 = vector.shape_cast %414 : vector<1x32x8xf32> to vector<32x8xf32>
    %cst_284 = arith.constant dense<0.000000e+00> : vector<16x8xf32>
    %416 = tpu.matmul %413, %415, %cst_284 {dimension_numbers = #tpu.dot_dimension_numbers<[1], [0], [0], [1], [0, 0, 1, 1], [], []>} : vector<16x32xf32>, vector<32x8xf32>, vector<16x8xf32> -> vector<16x8xf32>
    %c12_285 = arith.constant 12 : index
    %c0_286 = arith.constant 0 : index
    %c0_287 = arith.constant 0 : index
    %417 = vector.load %arg6[%c12_285, %c0_286, %c0_287] : memref<24x1x8xf32, #tpu.memory_space<vmem>>, vector<1x1x8xf32>
    %418 = vector.shape_cast %417 : vector<1x1x8xf32> to vector<1x8xf32>
    %419 = vector.broadcast %418 : vector<1x8xf32> to vector<16x8xf32>
    %420 = arith.addf %416, %419 : vector<16x8xf32>
    %c16 = arith.constant 16 : index
    %c0_288 = arith.constant 0 : index
    %c0_289 = arith.constant 0 : index
    %421 = vector.load %arg5[%c16, %c0_288, %c0_289] : memref<24x32x8xf32, #tpu.memory_space<vmem>>, vector<1x32x8xf32>
    %422 = vector.shape_cast %421 : vector<1x32x8xf32> to vector<32x8xf32>
    %cst_290 = arith.constant dense<0.000000e+00> : vector<16x8xf32>
    %423 = tpu.matmul %413, %422, %cst_290 {dimension_numbers = #tpu.dot_dimension_numbers<[1], [0], [0], [1], [0, 0, 1, 1], [], []>} : vector<16x32xf32>, vector<32x8xf32>, vector<16x8xf32> -> vector<16x8xf32>
    %c16_291 = arith.constant 16 : index
    %c0_292 = arith.constant 0 : index
    %c0_293 = arith.constant 0 : index
    %424 = vector.load %arg6[%c16_291, %c0_292, %c0_293] : memref<24x1x8xf32, #tpu.memory_space<vmem>>, vector<1x1x8xf32>
    %425 = vector.shape_cast %424 : vector<1x1x8xf32> to vector<1x8xf32>
    %426 = vector.broadcast %425 : vector<1x8xf32> to vector<16x8xf32>
    %427 = arith.addf %423, %426 : vector<16x8xf32>
    %c20 = arith.constant 20 : index
    %c0_294 = arith.constant 0 : index
    %c0_295 = arith.constant 0 : index
    %428 = vector.load %arg5[%c20, %c0_294, %c0_295] : memref<24x32x8xf32, #tpu.memory_space<vmem>>, vector<1x32x8xf32>
    %429 = vector.shape_cast %428 : vector<1x32x8xf32> to vector<32x8xf32>
    %cst_296 = arith.constant dense<0.000000e+00> : vector<16x8xf32>
    %430 = tpu.matmul %413, %429, %cst_296 {dimension_numbers = #tpu.dot_dimension_numbers<[1], [0], [0], [1], [0, 0, 1, 1], [], []>} : vector<16x32xf32>, vector<32x8xf32>, vector<16x8xf32> -> vector<16x8xf32>
    %c20_297 = arith.constant 20 : index
    %c0_298 = arith.constant 0 : index
    %c0_299 = arith.constant 0 : index
    %431 = vector.load %arg6[%c20_297, %c0_298, %c0_299] : memref<24x1x8xf32, #tpu.memory_space<vmem>>, vector<1x1x8xf32>
    %432 = vector.shape_cast %431 : vector<1x1x8xf32> to vector<1x8xf32>
    %433 = vector.broadcast %432 : vector<1x8xf32> to vector<16x8xf32>
    %434 = arith.addf %430, %433 : vector<16x8xf32>
    %cst_300 = arith.constant dense<0.000000e+00> : vector<16x16xf32>
    %435 = tpu.matmul %420, %427, %cst_300 {dimension_numbers = #tpu.dot_dimension_numbers<[1], [1], [0], [0], [0, 0, 1, 0], [], []>} : vector<16x8xf32>, vector<16x8xf32>, vector<16x16xf32> -> vector<16x16xf32>
    %436 = arith.addf %435, %5 : vector<16x16xf32>
    %cst_301 = arith.constant dense<0xFF800000> : vector<16xf32>
    %437 = vector.multi_reduction <maximumf>, %436, %cst_301 [1] : vector<16x16xf32> to vector<16xf32>
    %438 = vector.shape_cast %437 : vector<16xf32> to vector<16x1xf32>
    %439 = vector.broadcast %438 : vector<16x1xf32> to vector<16x16xf32>
    %440 = arith.subf %436, %439 : vector<16x16xf32>
    %441 = math.exp %440 : vector<16x16xf32>
    %cst_302 = arith.constant dense<0.000000e+00> : vector<16xf32>
    %442 = vector.multi_reduction <add>, %441, %cst_302 [1] : vector<16x16xf32> to vector<16xf32>
    %443 = vector.shape_cast %442 : vector<16xf32> to vector<16x1xf32>
    %444 = tpu.reciprocal %443 {approx = true} : vector<16x1xf32> -> vector<16x1xf32>
    %445 = vector.broadcast %444 : vector<16x1xf32> to vector<16x16xf32>
    %446 = arith.mulf %441, %445 : vector<16x16xf32>
    %cst_303 = arith.constant dense<0.000000e+00> : vector<16x8xf32>
    %447 = tpu.matmul %446, %434, %cst_303 {dimension_numbers = #tpu.dot_dimension_numbers<[1], [0], [0], [1], [0, 0, 1, 1], [], []>} : vector<16x16xf32>, vector<16x8xf32>, vector<16x8xf32> -> vector<16x8xf32>
    %c4_304 = arith.constant 4 : index
    %c0_305 = arith.constant 0 : index
    %c0_306 = arith.constant 0 : index
    %448 = vector.load %arg7[%c4_304, %c0_305, %c0_306] : memref<8x8x32xf32, #tpu.memory_space<vmem>>, vector<1x8x32xf32>
    %449 = vector.shape_cast %448 : vector<1x8x32xf32> to vector<8x32xf32>
    %cst_307 = arith.constant dense<0.000000e+00> : vector<16x32xf32>
    %450 = tpu.matmul %447, %449, %cst_307 {dimension_numbers = #tpu.dot_dimension_numbers<[1], [0], [0], [1], [0, 0, 1, 1], [], []>} : vector<16x8xf32>, vector<8x32xf32>, vector<16x32xf32> -> vector<16x32xf32>
    %c13 = arith.constant 13 : index
    %c0_308 = arith.constant 0 : index
    %c0_309 = arith.constant 0 : index
    %451 = vector.load %arg5[%c13, %c0_308, %c0_309] : memref<24x32x8xf32, #tpu.memory_space<vmem>>, vector<1x32x8xf32>
    %452 = vector.shape_cast %451 : vector<1x32x8xf32> to vector<32x8xf32>
    %cst_310 = arith.constant dense<0.000000e+00> : vector<16x8xf32>
    %453 = tpu.matmul %413, %452, %cst_310 {dimension_numbers = #tpu.dot_dimension_numbers<[1], [0], [0], [1], [0, 0, 1, 1], [], []>} : vector<16x32xf32>, vector<32x8xf32>, vector<16x8xf32> -> vector<16x8xf32>
    %c13_311 = arith.constant 13 : index
    %c0_312 = arith.constant 0 : index
    %c0_313 = arith.constant 0 : index
    %454 = vector.load %arg6[%c13_311, %c0_312, %c0_313] : memref<24x1x8xf32, #tpu.memory_space<vmem>>, vector<1x1x8xf32>
    %455 = vector.shape_cast %454 : vector<1x1x8xf32> to vector<1x8xf32>
    %456 = vector.broadcast %455 : vector<1x8xf32> to vector<16x8xf32>
    %457 = arith.addf %453, %456 : vector<16x8xf32>
    %c17 = arith.constant 17 : index
    %c0_314 = arith.constant 0 : index
    %c0_315 = arith.constant 0 : index
    %458 = vector.load %arg5[%c17, %c0_314, %c0_315] : memref<24x32x8xf32, #tpu.memory_space<vmem>>, vector<1x32x8xf32>
    %459 = vector.shape_cast %458 : vector<1x32x8xf32> to vector<32x8xf32>
    %cst_316 = arith.constant dense<0.000000e+00> : vector<16x8xf32>
    %460 = tpu.matmul %413, %459, %cst_316 {dimension_numbers = #tpu.dot_dimension_numbers<[1], [0], [0], [1], [0, 0, 1, 1], [], []>} : vector<16x32xf32>, vector<32x8xf32>, vector<16x8xf32> -> vector<16x8xf32>
    %c17_317 = arith.constant 17 : index
    %c0_318 = arith.constant 0 : index
    %c0_319 = arith.constant 0 : index
    %461 = vector.load %arg6[%c17_317, %c0_318, %c0_319] : memref<24x1x8xf32, #tpu.memory_space<vmem>>, vector<1x1x8xf32>
    %462 = vector.shape_cast %461 : vector<1x1x8xf32> to vector<1x8xf32>
    %463 = vector.broadcast %462 : vector<1x8xf32> to vector<16x8xf32>
    %464 = arith.addf %460, %463 : vector<16x8xf32>
    %c21 = arith.constant 21 : index
    %c0_320 = arith.constant 0 : index
    %c0_321 = arith.constant 0 : index
    %465 = vector.load %arg5[%c21, %c0_320, %c0_321] : memref<24x32x8xf32, #tpu.memory_space<vmem>>, vector<1x32x8xf32>
    %466 = vector.shape_cast %465 : vector<1x32x8xf32> to vector<32x8xf32>
    %cst_322 = arith.constant dense<0.000000e+00> : vector<16x8xf32>
    %467 = tpu.matmul %413, %466, %cst_322 {dimension_numbers = #tpu.dot_dimension_numbers<[1], [0], [0], [1], [0, 0, 1, 1], [], []>} : vector<16x32xf32>, vector<32x8xf32>, vector<16x8xf32> -> vector<16x8xf32>
    %c21_323 = arith.constant 21 : index
    %c0_324 = arith.constant 0 : index
    %c0_325 = arith.constant 0 : index
    %468 = vector.load %arg6[%c21_323, %c0_324, %c0_325] : memref<24x1x8xf32, #tpu.memory_space<vmem>>, vector<1x1x8xf32>
    %469 = vector.shape_cast %468 : vector<1x1x8xf32> to vector<1x8xf32>
    %470 = vector.broadcast %469 : vector<1x8xf32> to vector<16x8xf32>
    %471 = arith.addf %467, %470 : vector<16x8xf32>
    %cst_326 = arith.constant dense<0.000000e+00> : vector<16x16xf32>
    %472 = tpu.matmul %457, %464, %cst_326 {dimension_numbers = #tpu.dot_dimension_numbers<[1], [1], [0], [0], [0, 0, 1, 0], [], []>} : vector<16x8xf32>, vector<16x8xf32>, vector<16x16xf32> -> vector<16x16xf32>
    %473 = arith.addf %472, %5 : vector<16x16xf32>
    %cst_327 = arith.constant dense<0xFF800000> : vector<16xf32>
    %474 = vector.multi_reduction <maximumf>, %473, %cst_327 [1] : vector<16x16xf32> to vector<16xf32>
    %475 = vector.shape_cast %474 : vector<16xf32> to vector<16x1xf32>
    %476 = vector.broadcast %475 : vector<16x1xf32> to vector<16x16xf32>
    %477 = arith.subf %473, %476 : vector<16x16xf32>
    %478 = math.exp %477 : vector<16x16xf32>
    %cst_328 = arith.constant dense<0.000000e+00> : vector<16xf32>
    %479 = vector.multi_reduction <add>, %478, %cst_328 [1] : vector<16x16xf32> to vector<16xf32>
    %480 = vector.shape_cast %479 : vector<16xf32> to vector<16x1xf32>
    %481 = tpu.reciprocal %480 {approx = true} : vector<16x1xf32> -> vector<16x1xf32>
    %482 = vector.broadcast %481 : vector<16x1xf32> to vector<16x16xf32>
    %483 = arith.mulf %478, %482 : vector<16x16xf32>
    %cst_329 = arith.constant dense<0.000000e+00> : vector<16x8xf32>
    %484 = tpu.matmul %483, %471, %cst_329 {dimension_numbers = #tpu.dot_dimension_numbers<[1], [0], [0], [1], [0, 0, 1, 1], [], []>} : vector<16x16xf32>, vector<16x8xf32>, vector<16x8xf32> -> vector<16x8xf32>
    %c5_330 = arith.constant 5 : index
    %c0_331 = arith.constant 0 : index
    %c0_332 = arith.constant 0 : index
    %485 = vector.load %arg7[%c5_330, %c0_331, %c0_332] : memref<8x8x32xf32, #tpu.memory_space<vmem>>, vector<1x8x32xf32>
    %486 = vector.shape_cast %485 : vector<1x8x32xf32> to vector<8x32xf32>
    %cst_333 = arith.constant dense<0.000000e+00> : vector<16x32xf32>
    %487 = tpu.matmul %484, %486, %cst_333 {dimension_numbers = #tpu.dot_dimension_numbers<[1], [0], [0], [1], [0, 0, 1, 1], [], []>} : vector<16x8xf32>, vector<8x32xf32>, vector<16x32xf32> -> vector<16x32xf32>
    %488 = arith.addf %450, %487 : vector<16x32xf32>
    %c14 = arith.constant 14 : index
    %c0_334 = arith.constant 0 : index
    %c0_335 = arith.constant 0 : index
    %489 = vector.load %arg5[%c14, %c0_334, %c0_335] : memref<24x32x8xf32, #tpu.memory_space<vmem>>, vector<1x32x8xf32>
    %490 = vector.shape_cast %489 : vector<1x32x8xf32> to vector<32x8xf32>
    %cst_336 = arith.constant dense<0.000000e+00> : vector<16x8xf32>
    %491 = tpu.matmul %413, %490, %cst_336 {dimension_numbers = #tpu.dot_dimension_numbers<[1], [0], [0], [1], [0, 0, 1, 1], [], []>} : vector<16x32xf32>, vector<32x8xf32>, vector<16x8xf32> -> vector<16x8xf32>
    %c14_337 = arith.constant 14 : index
    %c0_338 = arith.constant 0 : index
    %c0_339 = arith.constant 0 : index
    %492 = vector.load %arg6[%c14_337, %c0_338, %c0_339] : memref<24x1x8xf32, #tpu.memory_space<vmem>>, vector<1x1x8xf32>
    %493 = vector.shape_cast %492 : vector<1x1x8xf32> to vector<1x8xf32>
    %494 = vector.broadcast %493 : vector<1x8xf32> to vector<16x8xf32>
    %495 = arith.addf %491, %494 : vector<16x8xf32>
    %c18 = arith.constant 18 : index
    %c0_340 = arith.constant 0 : index
    %c0_341 = arith.constant 0 : index
    %496 = vector.load %arg5[%c18, %c0_340, %c0_341] : memref<24x32x8xf32, #tpu.memory_space<vmem>>, vector<1x32x8xf32>
    %497 = vector.shape_cast %496 : vector<1x32x8xf32> to vector<32x8xf32>
    %cst_342 = arith.constant dense<0.000000e+00> : vector<16x8xf32>
    %498 = tpu.matmul %413, %497, %cst_342 {dimension_numbers = #tpu.dot_dimension_numbers<[1], [0], [0], [1], [0, 0, 1, 1], [], []>} : vector<16x32xf32>, vector<32x8xf32>, vector<16x8xf32> -> vector<16x8xf32>
    %c18_343 = arith.constant 18 : index
    %c0_344 = arith.constant 0 : index
    %c0_345 = arith.constant 0 : index
    %499 = vector.load %arg6[%c18_343, %c0_344, %c0_345] : memref<24x1x8xf32, #tpu.memory_space<vmem>>, vector<1x1x8xf32>
    %500 = vector.shape_cast %499 : vector<1x1x8xf32> to vector<1x8xf32>
    %501 = vector.broadcast %500 : vector<1x8xf32> to vector<16x8xf32>
    %502 = arith.addf %498, %501 : vector<16x8xf32>
    %c22 = arith.constant 22 : index
    %c0_346 = arith.constant 0 : index
    %c0_347 = arith.constant 0 : index
    %503 = vector.load %arg5[%c22, %c0_346, %c0_347] : memref<24x32x8xf32, #tpu.memory_space<vmem>>, vector<1x32x8xf32>
    %504 = vector.shape_cast %503 : vector<1x32x8xf32> to vector<32x8xf32>
    %cst_348 = arith.constant dense<0.000000e+00> : vector<16x8xf32>
    %505 = tpu.matmul %413, %504, %cst_348 {dimension_numbers = #tpu.dot_dimension_numbers<[1], [0], [0], [1], [0, 0, 1, 1], [], []>} : vector<16x32xf32>, vector<32x8xf32>, vector<16x8xf32> -> vector<16x8xf32>
    %c22_349 = arith.constant 22 : index
    %c0_350 = arith.constant 0 : index
    %c0_351 = arith.constant 0 : index
    %506 = vector.load %arg6[%c22_349, %c0_350, %c0_351] : memref<24x1x8xf32, #tpu.memory_space<vmem>>, vector<1x1x8xf32>
    %507 = vector.shape_cast %506 : vector<1x1x8xf32> to vector<1x8xf32>
    %508 = vector.broadcast %507 : vector<1x8xf32> to vector<16x8xf32>
    %509 = arith.addf %505, %508 : vector<16x8xf32>
    %cst_352 = arith.constant dense<0.000000e+00> : vector<16x16xf32>
    %510 = tpu.matmul %495, %502, %cst_352 {dimension_numbers = #tpu.dot_dimension_numbers<[1], [1], [0], [0], [0, 0, 1, 0], [], []>} : vector<16x8xf32>, vector<16x8xf32>, vector<16x16xf32> -> vector<16x16xf32>
    %511 = arith.addf %510, %5 : vector<16x16xf32>
    %cst_353 = arith.constant dense<0xFF800000> : vector<16xf32>
    %512 = vector.multi_reduction <maximumf>, %511, %cst_353 [1] : vector<16x16xf32> to vector<16xf32>
    %513 = vector.shape_cast %512 : vector<16xf32> to vector<16x1xf32>
    %514 = vector.broadcast %513 : vector<16x1xf32> to vector<16x16xf32>
    %515 = arith.subf %511, %514 : vector<16x16xf32>
    %516 = math.exp %515 : vector<16x16xf32>
    %cst_354 = arith.constant dense<0.000000e+00> : vector<16xf32>
    %517 = vector.multi_reduction <add>, %516, %cst_354 [1] : vector<16x16xf32> to vector<16xf32>
    %518 = vector.shape_cast %517 : vector<16xf32> to vector<16x1xf32>
    %519 = tpu.reciprocal %518 {approx = true} : vector<16x1xf32> -> vector<16x1xf32>
    %520 = vector.broadcast %519 : vector<16x1xf32> to vector<16x16xf32>
    %521 = arith.mulf %516, %520 : vector<16x16xf32>
    %cst_355 = arith.constant dense<0.000000e+00> : vector<16x8xf32>
    %522 = tpu.matmul %521, %509, %cst_355 {dimension_numbers = #tpu.dot_dimension_numbers<[1], [0], [0], [1], [0, 0, 1, 1], [], []>} : vector<16x16xf32>, vector<16x8xf32>, vector<16x8xf32> -> vector<16x8xf32>
    %c6_356 = arith.constant 6 : index
    %c0_357 = arith.constant 0 : index
    %c0_358 = arith.constant 0 : index
    %523 = vector.load %arg7[%c6_356, %c0_357, %c0_358] : memref<8x8x32xf32, #tpu.memory_space<vmem>>, vector<1x8x32xf32>
    %524 = vector.shape_cast %523 : vector<1x8x32xf32> to vector<8x32xf32>
    %cst_359 = arith.constant dense<0.000000e+00> : vector<16x32xf32>
    %525 = tpu.matmul %522, %524, %cst_359 {dimension_numbers = #tpu.dot_dimension_numbers<[1], [0], [0], [1], [0, 0, 1, 1], [], []>} : vector<16x8xf32>, vector<8x32xf32>, vector<16x32xf32> -> vector<16x32xf32>
    %526 = arith.addf %488, %525 : vector<16x32xf32>
    %c15 = arith.constant 15 : index
    %c0_360 = arith.constant 0 : index
    %c0_361 = arith.constant 0 : index
    %527 = vector.load %arg5[%c15, %c0_360, %c0_361] : memref<24x32x8xf32, #tpu.memory_space<vmem>>, vector<1x32x8xf32>
    %528 = vector.shape_cast %527 : vector<1x32x8xf32> to vector<32x8xf32>
    %cst_362 = arith.constant dense<0.000000e+00> : vector<16x8xf32>
    %529 = tpu.matmul %413, %528, %cst_362 {dimension_numbers = #tpu.dot_dimension_numbers<[1], [0], [0], [1], [0, 0, 1, 1], [], []>} : vector<16x32xf32>, vector<32x8xf32>, vector<16x8xf32> -> vector<16x8xf32>
    %c15_363 = arith.constant 15 : index
    %c0_364 = arith.constant 0 : index
    %c0_365 = arith.constant 0 : index
    %530 = vector.load %arg6[%c15_363, %c0_364, %c0_365] : memref<24x1x8xf32, #tpu.memory_space<vmem>>, vector<1x1x8xf32>
    %531 = vector.shape_cast %530 : vector<1x1x8xf32> to vector<1x8xf32>
    %532 = vector.broadcast %531 : vector<1x8xf32> to vector<16x8xf32>
    %533 = arith.addf %529, %532 : vector<16x8xf32>
    %c19 = arith.constant 19 : index
    %c0_366 = arith.constant 0 : index
    %c0_367 = arith.constant 0 : index
    %534 = vector.load %arg5[%c19, %c0_366, %c0_367] : memref<24x32x8xf32, #tpu.memory_space<vmem>>, vector<1x32x8xf32>
    %535 = vector.shape_cast %534 : vector<1x32x8xf32> to vector<32x8xf32>
    %cst_368 = arith.constant dense<0.000000e+00> : vector<16x8xf32>
    %536 = tpu.matmul %413, %535, %cst_368 {dimension_numbers = #tpu.dot_dimension_numbers<[1], [0], [0], [1], [0, 0, 1, 1], [], []>} : vector<16x32xf32>, vector<32x8xf32>, vector<16x8xf32> -> vector<16x8xf32>
    %c19_369 = arith.constant 19 : index
    %c0_370 = arith.constant 0 : index
    %c0_371 = arith.constant 0 : index
    %537 = vector.load %arg6[%c19_369, %c0_370, %c0_371] : memref<24x1x8xf32, #tpu.memory_space<vmem>>, vector<1x1x8xf32>
    %538 = vector.shape_cast %537 : vector<1x1x8xf32> to vector<1x8xf32>
    %539 = vector.broadcast %538 : vector<1x8xf32> to vector<16x8xf32>
    %540 = arith.addf %536, %539 : vector<16x8xf32>
    %c23 = arith.constant 23 : index
    %c0_372 = arith.constant 0 : index
    %c0_373 = arith.constant 0 : index
    %541 = vector.load %arg5[%c23, %c0_372, %c0_373] : memref<24x32x8xf32, #tpu.memory_space<vmem>>, vector<1x32x8xf32>
    %542 = vector.shape_cast %541 : vector<1x32x8xf32> to vector<32x8xf32>
    %cst_374 = arith.constant dense<0.000000e+00> : vector<16x8xf32>
    %543 = tpu.matmul %413, %542, %cst_374 {dimension_numbers = #tpu.dot_dimension_numbers<[1], [0], [0], [1], [0, 0, 1, 1], [], []>} : vector<16x32xf32>, vector<32x8xf32>, vector<16x8xf32> -> vector<16x8xf32>
    %c23_375 = arith.constant 23 : index
    %c0_376 = arith.constant 0 : index
    %c0_377 = arith.constant 0 : index
    %544 = vector.load %arg6[%c23_375, %c0_376, %c0_377] : memref<24x1x8xf32, #tpu.memory_space<vmem>>, vector<1x1x8xf32>
    %545 = vector.shape_cast %544 : vector<1x1x8xf32> to vector<1x8xf32>
    %546 = vector.broadcast %545 : vector<1x8xf32> to vector<16x8xf32>
    %547 = arith.addf %543, %546 : vector<16x8xf32>
    %cst_378 = arith.constant dense<0.000000e+00> : vector<16x16xf32>
    %548 = tpu.matmul %533, %540, %cst_378 {dimension_numbers = #tpu.dot_dimension_numbers<[1], [1], [0], [0], [0, 0, 1, 0], [], []>} : vector<16x8xf32>, vector<16x8xf32>, vector<16x16xf32> -> vector<16x16xf32>
    %549 = arith.addf %548, %5 : vector<16x16xf32>
    %cst_379 = arith.constant dense<0xFF800000> : vector<16xf32>
    %550 = vector.multi_reduction <maximumf>, %549, %cst_379 [1] : vector<16x16xf32> to vector<16xf32>
    %551 = vector.shape_cast %550 : vector<16xf32> to vector<16x1xf32>
    %552 = vector.broadcast %551 : vector<16x1xf32> to vector<16x16xf32>
    %553 = arith.subf %549, %552 : vector<16x16xf32>
    %554 = math.exp %553 : vector<16x16xf32>
    %cst_380 = arith.constant dense<0.000000e+00> : vector<16xf32>
    %555 = vector.multi_reduction <add>, %554, %cst_380 [1] : vector<16x16xf32> to vector<16xf32>
    %556 = vector.shape_cast %555 : vector<16xf32> to vector<16x1xf32>
    %557 = tpu.reciprocal %556 {approx = true} : vector<16x1xf32> -> vector<16x1xf32>
    %558 = vector.broadcast %557 : vector<16x1xf32> to vector<16x16xf32>
    %559 = arith.mulf %554, %558 : vector<16x16xf32>
    %cst_381 = arith.constant dense<0.000000e+00> : vector<16x8xf32>
    %560 = tpu.matmul %559, %547, %cst_381 {dimension_numbers = #tpu.dot_dimension_numbers<[1], [0], [0], [1], [0, 0, 1, 1], [], []>} : vector<16x16xf32>, vector<16x8xf32>, vector<16x8xf32> -> vector<16x8xf32>
    %c7_382 = arith.constant 7 : index
    %c0_383 = arith.constant 0 : index
    %c0_384 = arith.constant 0 : index
    %561 = vector.load %arg7[%c7_382, %c0_383, %c0_384] : memref<8x8x32xf32, #tpu.memory_space<vmem>>, vector<1x8x32xf32>
    %562 = vector.shape_cast %561 : vector<1x8x32xf32> to vector<8x32xf32>
    %cst_385 = arith.constant dense<0.000000e+00> : vector<16x32xf32>
    %563 = tpu.matmul %560, %562, %cst_385 {dimension_numbers = #tpu.dot_dimension_numbers<[1], [0], [0], [1], [0, 0, 1, 1], [], []>} : vector<16x8xf32>, vector<8x32xf32>, vector<16x32xf32> -> vector<16x32xf32>
    %564 = arith.addf %526, %563 : vector<16x32xf32>
    %c1_386 = arith.constant 1 : index
    %c0_387 = arith.constant 0 : index
    %c0_388 = arith.constant 0 : index
    %565 = vector.load %arg8[%c1_386, %c0_387, %c0_388] : memref<2x1x32xf32, #tpu.memory_space<vmem>>, vector<1x1x32xf32>
    %566 = vector.shape_cast %565 : vector<1x1x32xf32> to vector<1x32xf32>
    %567 = vector.broadcast %566 : vector<1x32xf32> to vector<16x32xf32>
    %568 = arith.addf %564, %567 : vector<16x32xf32>
    %569 = arith.addf %413, %568 : vector<16x32xf32>
    %c3_389 = arith.constant 3 : index
    %c0_390 = arith.constant 0 : index
    %c0_391 = arith.constant 0 : index
    %570 = vector.load %arg13[%c3_389, %c0_390, %c0_391] : memref<6x1x32xf32, #tpu.memory_space<vmem>>, vector<1x1x32xf32>
    %571 = vector.shape_cast %570 : vector<1x1x32xf32> to vector<1x32xf32>
    %c3_392 = arith.constant 3 : index
    %c0_393 = arith.constant 0 : index
    %c0_394 = arith.constant 0 : index
    %572 = vector.load %arg14[%c3_392, %c0_393, %c0_394] : memref<6x1x32xf32, #tpu.memory_space<vmem>>, vector<1x1x32xf32>
    %573 = vector.shape_cast %572 : vector<1x1x32xf32> to vector<1x32xf32>
    %cst_395 = arith.constant dense<0.000000e+00> : vector<16xf32>
    %574 = vector.multi_reduction <add>, %569, %cst_395 [1] : vector<16x32xf32> to vector<16xf32>
    %575 = vector.shape_cast %574 : vector<16xf32> to vector<16x1xf32>
    %cst_396 = arith.constant 3.200000e+01 : f32
    %576 = vector.broadcast %cst_396 : f32 to vector<16x1xf32>
    %577 = arith.divf %575, %576 : vector<16x1xf32>
    %578 = vector.broadcast %577 : vector<16x1xf32> to vector<16x32xf32>
    %579 = arith.subf %569, %578 : vector<16x32xf32>
    %580 = arith.mulf %579, %579 : vector<16x32xf32>
    %cst_397 = arith.constant dense<0.000000e+00> : vector<16xf32>
    %581 = vector.multi_reduction <add>, %580, %cst_397 [1] : vector<16x32xf32> to vector<16xf32>
    %582 = vector.shape_cast %581 : vector<16xf32> to vector<16x1xf32>
    %cst_398 = arith.constant 3.200000e+01 : f32
    %583 = vector.broadcast %cst_398 : f32 to vector<16x1xf32>
    %584 = arith.divf %582, %583 : vector<16x1xf32>
    %585 = vector.broadcast %577 : vector<16x1xf32> to vector<16x32xf32>
    %586 = arith.subf %569, %585 : vector<16x32xf32>
    %cst_399 = arith.constant 9.99999974E-6 : f32
    %587 = vector.broadcast %cst_399 : f32 to vector<16x1xf32>
    %588 = arith.addf %584, %587 : vector<16x1xf32>
    %589 = math.rsqrt %588 : vector<16x1xf32>
    %590 = vector.broadcast %589 : vector<16x1xf32> to vector<16x32xf32>
    %591 = arith.mulf %586, %590 : vector<16x32xf32>
    %592 = vector.broadcast %571 : vector<1x32xf32> to vector<16x32xf32>
    %593 = arith.mulf %591, %592 : vector<16x32xf32>
    %594 = vector.broadcast %573 : vector<1x32xf32> to vector<16x32xf32>
    %595 = arith.addf %593, %594 : vector<16x32xf32>
    %c12_400 = arith.constant 12 : index
    %c0_401 = arith.constant 0 : index
    %c0_402 = arith.constant 0 : index
    %596 = vector.load %arg9[%c12_400, %c0_401, %c0_402] : memref<24x32x8xf32, #tpu.memory_space<vmem>>, vector<1x32x8xf32>
    %597 = vector.shape_cast %596 : vector<1x32x8xf32> to vector<32x8xf32>
    %cst_403 = arith.constant dense<0.000000e+00> : vector<16x8xf32>
    %598 = tpu.matmul %595, %597, %cst_403 {dimension_numbers = #tpu.dot_dimension_numbers<[1], [0], [0], [1], [0, 0, 1, 1], [], []>} : vector<16x32xf32>, vector<32x8xf32>, vector<16x8xf32> -> vector<16x8xf32>
    %c12_404 = arith.constant 12 : index
    %c0_405 = arith.constant 0 : index
    %c0_406 = arith.constant 0 : index
    %599 = vector.load %arg10[%c12_404, %c0_405, %c0_406] : memref<24x1x8xf32, #tpu.memory_space<vmem>>, vector<1x1x8xf32>
    %600 = vector.shape_cast %599 : vector<1x1x8xf32> to vector<1x8xf32>
    %601 = vector.broadcast %600 : vector<1x8xf32> to vector<16x8xf32>
    %602 = arith.addf %598, %601 : vector<16x8xf32>
    %c16_407 = arith.constant 16 : index
    %c0_408 = arith.constant 0 : index
    %c0_409 = arith.constant 0 : index
    %603 = vector.load %arg9[%c16_407, %c0_408, %c0_409] : memref<24x32x8xf32, #tpu.memory_space<vmem>>, vector<1x32x8xf32>
    %604 = vector.shape_cast %603 : vector<1x32x8xf32> to vector<32x8xf32>
    %cst_410 = arith.constant dense<0.000000e+00> : vector<16x8xf32>
    %605 = tpu.matmul %4, %604, %cst_410 {dimension_numbers = #tpu.dot_dimension_numbers<[1], [0], [0], [1], [0, 0, 1, 1], [], []>} : vector<16x32xf32>, vector<32x8xf32>, vector<16x8xf32> -> vector<16x8xf32>
    %c16_411 = arith.constant 16 : index
    %c0_412 = arith.constant 0 : index
    %c0_413 = arith.constant 0 : index
    %606 = vector.load %arg10[%c16_411, %c0_412, %c0_413] : memref<24x1x8xf32, #tpu.memory_space<vmem>>, vector<1x1x8xf32>
    %607 = vector.shape_cast %606 : vector<1x1x8xf32> to vector<1x8xf32>
    %608 = vector.broadcast %607 : vector<1x8xf32> to vector<16x8xf32>
    %609 = arith.addf %605, %608 : vector<16x8xf32>
    %c20_414 = arith.constant 20 : index
    %c0_415 = arith.constant 0 : index
    %c0_416 = arith.constant 0 : index
    %610 = vector.load %arg9[%c20_414, %c0_415, %c0_416] : memref<24x32x8xf32, #tpu.memory_space<vmem>>, vector<1x32x8xf32>
    %611 = vector.shape_cast %610 : vector<1x32x8xf32> to vector<32x8xf32>
    %cst_417 = arith.constant dense<0.000000e+00> : vector<16x8xf32>
    %612 = tpu.matmul %4, %611, %cst_417 {dimension_numbers = #tpu.dot_dimension_numbers<[1], [0], [0], [1], [0, 0, 1, 1], [], []>} : vector<16x32xf32>, vector<32x8xf32>, vector<16x8xf32> -> vector<16x8xf32>
    %c20_418 = arith.constant 20 : index
    %c0_419 = arith.constant 0 : index
    %c0_420 = arith.constant 0 : index
    %613 = vector.load %arg10[%c20_418, %c0_419, %c0_420] : memref<24x1x8xf32, #tpu.memory_space<vmem>>, vector<1x1x8xf32>
    %614 = vector.shape_cast %613 : vector<1x1x8xf32> to vector<1x8xf32>
    %615 = vector.broadcast %614 : vector<1x8xf32> to vector<16x8xf32>
    %616 = arith.addf %612, %615 : vector<16x8xf32>
    %cst_421 = arith.constant dense<0.000000e+00> : vector<16x16xf32>
    %617 = tpu.matmul %602, %609, %cst_421 {dimension_numbers = #tpu.dot_dimension_numbers<[1], [1], [0], [0], [0, 0, 1, 0], [], []>} : vector<16x8xf32>, vector<16x8xf32>, vector<16x16xf32> -> vector<16x16xf32>
    %618 = arith.addf %617, %6 : vector<16x16xf32>
    %cst_422 = arith.constant dense<0xFF800000> : vector<16xf32>
    %619 = vector.multi_reduction <maximumf>, %618, %cst_422 [1] : vector<16x16xf32> to vector<16xf32>
    %620 = vector.shape_cast %619 : vector<16xf32> to vector<16x1xf32>
    %621 = vector.broadcast %620 : vector<16x1xf32> to vector<16x16xf32>
    %622 = arith.subf %618, %621 : vector<16x16xf32>
    %623 = math.exp %622 : vector<16x16xf32>
    %cst_423 = arith.constant dense<0.000000e+00> : vector<16xf32>
    %624 = vector.multi_reduction <add>, %623, %cst_423 [1] : vector<16x16xf32> to vector<16xf32>
    %625 = vector.shape_cast %624 : vector<16xf32> to vector<16x1xf32>
    %626 = tpu.reciprocal %625 {approx = true} : vector<16x1xf32> -> vector<16x1xf32>
    %627 = vector.broadcast %626 : vector<16x1xf32> to vector<16x16xf32>
    %628 = arith.mulf %623, %627 : vector<16x16xf32>
    %cst_424 = arith.constant dense<0.000000e+00> : vector<16x8xf32>
    %629 = tpu.matmul %628, %616, %cst_424 {dimension_numbers = #tpu.dot_dimension_numbers<[1], [0], [0], [1], [0, 0, 1, 1], [], []>} : vector<16x16xf32>, vector<16x8xf32>, vector<16x8xf32> -> vector<16x8xf32>
    %c4_425 = arith.constant 4 : index
    %c0_426 = arith.constant 0 : index
    %c0_427 = arith.constant 0 : index
    %630 = vector.load %arg11[%c4_425, %c0_426, %c0_427] : memref<8x8x32xf32, #tpu.memory_space<vmem>>, vector<1x8x32xf32>
    %631 = vector.shape_cast %630 : vector<1x8x32xf32> to vector<8x32xf32>
    %cst_428 = arith.constant dense<0.000000e+00> : vector<16x32xf32>
    %632 = tpu.matmul %629, %631, %cst_428 {dimension_numbers = #tpu.dot_dimension_numbers<[1], [0], [0], [1], [0, 0, 1, 1], [], []>} : vector<16x8xf32>, vector<8x32xf32>, vector<16x32xf32> -> vector<16x32xf32>
    %c13_429 = arith.constant 13 : index
    %c0_430 = arith.constant 0 : index
    %c0_431 = arith.constant 0 : index
    %633 = vector.load %arg9[%c13_429, %c0_430, %c0_431] : memref<24x32x8xf32, #tpu.memory_space<vmem>>, vector<1x32x8xf32>
    %634 = vector.shape_cast %633 : vector<1x32x8xf32> to vector<32x8xf32>
    %cst_432 = arith.constant dense<0.000000e+00> : vector<16x8xf32>
    %635 = tpu.matmul %595, %634, %cst_432 {dimension_numbers = #tpu.dot_dimension_numbers<[1], [0], [0], [1], [0, 0, 1, 1], [], []>} : vector<16x32xf32>, vector<32x8xf32>, vector<16x8xf32> -> vector<16x8xf32>
    %c13_433 = arith.constant 13 : index
    %c0_434 = arith.constant 0 : index
    %c0_435 = arith.constant 0 : index
    %636 = vector.load %arg10[%c13_433, %c0_434, %c0_435] : memref<24x1x8xf32, #tpu.memory_space<vmem>>, vector<1x1x8xf32>
    %637 = vector.shape_cast %636 : vector<1x1x8xf32> to vector<1x8xf32>
    %638 = vector.broadcast %637 : vector<1x8xf32> to vector<16x8xf32>
    %639 = arith.addf %635, %638 : vector<16x8xf32>
    %c17_436 = arith.constant 17 : index
    %c0_437 = arith.constant 0 : index
    %c0_438 = arith.constant 0 : index
    %640 = vector.load %arg9[%c17_436, %c0_437, %c0_438] : memref<24x32x8xf32, #tpu.memory_space<vmem>>, vector<1x32x8xf32>
    %641 = vector.shape_cast %640 : vector<1x32x8xf32> to vector<32x8xf32>
    %cst_439 = arith.constant dense<0.000000e+00> : vector<16x8xf32>
    %642 = tpu.matmul %4, %641, %cst_439 {dimension_numbers = #tpu.dot_dimension_numbers<[1], [0], [0], [1], [0, 0, 1, 1], [], []>} : vector<16x32xf32>, vector<32x8xf32>, vector<16x8xf32> -> vector<16x8xf32>
    %c17_440 = arith.constant 17 : index
    %c0_441 = arith.constant 0 : index
    %c0_442 = arith.constant 0 : index
    %643 = vector.load %arg10[%c17_440, %c0_441, %c0_442] : memref<24x1x8xf32, #tpu.memory_space<vmem>>, vector<1x1x8xf32>
    %644 = vector.shape_cast %643 : vector<1x1x8xf32> to vector<1x8xf32>
    %645 = vector.broadcast %644 : vector<1x8xf32> to vector<16x8xf32>
    %646 = arith.addf %642, %645 : vector<16x8xf32>
    %c21_443 = arith.constant 21 : index
    %c0_444 = arith.constant 0 : index
    %c0_445 = arith.constant 0 : index
    %647 = vector.load %arg9[%c21_443, %c0_444, %c0_445] : memref<24x32x8xf32, #tpu.memory_space<vmem>>, vector<1x32x8xf32>
    %648 = vector.shape_cast %647 : vector<1x32x8xf32> to vector<32x8xf32>
    %cst_446 = arith.constant dense<0.000000e+00> : vector<16x8xf32>
    %649 = tpu.matmul %4, %648, %cst_446 {dimension_numbers = #tpu.dot_dimension_numbers<[1], [0], [0], [1], [0, 0, 1, 1], [], []>} : vector<16x32xf32>, vector<32x8xf32>, vector<16x8xf32> -> vector<16x8xf32>
    %c21_447 = arith.constant 21 : index
    %c0_448 = arith.constant 0 : index
    %c0_449 = arith.constant 0 : index
    %650 = vector.load %arg10[%c21_447, %c0_448, %c0_449] : memref<24x1x8xf32, #tpu.memory_space<vmem>>, vector<1x1x8xf32>
    %651 = vector.shape_cast %650 : vector<1x1x8xf32> to vector<1x8xf32>
    %652 = vector.broadcast %651 : vector<1x8xf32> to vector<16x8xf32>
    %653 = arith.addf %649, %652 : vector<16x8xf32>
    %cst_450 = arith.constant dense<0.000000e+00> : vector<16x16xf32>
    %654 = tpu.matmul %639, %646, %cst_450 {dimension_numbers = #tpu.dot_dimension_numbers<[1], [1], [0], [0], [0, 0, 1, 0], [], []>} : vector<16x8xf32>, vector<16x8xf32>, vector<16x16xf32> -> vector<16x16xf32>
    %655 = arith.addf %654, %6 : vector<16x16xf32>
    %cst_451 = arith.constant dense<0xFF800000> : vector<16xf32>
    %656 = vector.multi_reduction <maximumf>, %655, %cst_451 [1] : vector<16x16xf32> to vector<16xf32>
    %657 = vector.shape_cast %656 : vector<16xf32> to vector<16x1xf32>
    %658 = vector.broadcast %657 : vector<16x1xf32> to vector<16x16xf32>
    %659 = arith.subf %655, %658 : vector<16x16xf32>
    %660 = math.exp %659 : vector<16x16xf32>
    %cst_452 = arith.constant dense<0.000000e+00> : vector<16xf32>
    %661 = vector.multi_reduction <add>, %660, %cst_452 [1] : vector<16x16xf32> to vector<16xf32>
    %662 = vector.shape_cast %661 : vector<16xf32> to vector<16x1xf32>
    %663 = tpu.reciprocal %662 {approx = true} : vector<16x1xf32> -> vector<16x1xf32>
    %664 = vector.broadcast %663 : vector<16x1xf32> to vector<16x16xf32>
    %665 = arith.mulf %660, %664 : vector<16x16xf32>
    %cst_453 = arith.constant dense<0.000000e+00> : vector<16x8xf32>
    %666 = tpu.matmul %665, %653, %cst_453 {dimension_numbers = #tpu.dot_dimension_numbers<[1], [0], [0], [1], [0, 0, 1, 1], [], []>} : vector<16x16xf32>, vector<16x8xf32>, vector<16x8xf32> -> vector<16x8xf32>
    %c5_454 = arith.constant 5 : index
    %c0_455 = arith.constant 0 : index
    %c0_456 = arith.constant 0 : index
    %667 = vector.load %arg11[%c5_454, %c0_455, %c0_456] : memref<8x8x32xf32, #tpu.memory_space<vmem>>, vector<1x8x32xf32>
    %668 = vector.shape_cast %667 : vector<1x8x32xf32> to vector<8x32xf32>
    %cst_457 = arith.constant dense<0.000000e+00> : vector<16x32xf32>
    %669 = tpu.matmul %666, %668, %cst_457 {dimension_numbers = #tpu.dot_dimension_numbers<[1], [0], [0], [1], [0, 0, 1, 1], [], []>} : vector<16x8xf32>, vector<8x32xf32>, vector<16x32xf32> -> vector<16x32xf32>
    %670 = arith.addf %632, %669 : vector<16x32xf32>
    %c14_458 = arith.constant 14 : index
    %c0_459 = arith.constant 0 : index
    %c0_460 = arith.constant 0 : index
    %671 = vector.load %arg9[%c14_458, %c0_459, %c0_460] : memref<24x32x8xf32, #tpu.memory_space<vmem>>, vector<1x32x8xf32>
    %672 = vector.shape_cast %671 : vector<1x32x8xf32> to vector<32x8xf32>
    %cst_461 = arith.constant dense<0.000000e+00> : vector<16x8xf32>
    %673 = tpu.matmul %595, %672, %cst_461 {dimension_numbers = #tpu.dot_dimension_numbers<[1], [0], [0], [1], [0, 0, 1, 1], [], []>} : vector<16x32xf32>, vector<32x8xf32>, vector<16x8xf32> -> vector<16x8xf32>
    %c14_462 = arith.constant 14 : index
    %c0_463 = arith.constant 0 : index
    %c0_464 = arith.constant 0 : index
    %674 = vector.load %arg10[%c14_462, %c0_463, %c0_464] : memref<24x1x8xf32, #tpu.memory_space<vmem>>, vector<1x1x8xf32>
    %675 = vector.shape_cast %674 : vector<1x1x8xf32> to vector<1x8xf32>
    %676 = vector.broadcast %675 : vector<1x8xf32> to vector<16x8xf32>
    %677 = arith.addf %673, %676 : vector<16x8xf32>
    %c18_465 = arith.constant 18 : index
    %c0_466 = arith.constant 0 : index
    %c0_467 = arith.constant 0 : index
    %678 = vector.load %arg9[%c18_465, %c0_466, %c0_467] : memref<24x32x8xf32, #tpu.memory_space<vmem>>, vector<1x32x8xf32>
    %679 = vector.shape_cast %678 : vector<1x32x8xf32> to vector<32x8xf32>
    %cst_468 = arith.constant dense<0.000000e+00> : vector<16x8xf32>
    %680 = tpu.matmul %4, %679, %cst_468 {dimension_numbers = #tpu.dot_dimension_numbers<[1], [0], [0], [1], [0, 0, 1, 1], [], []>} : vector<16x32xf32>, vector<32x8xf32>, vector<16x8xf32> -> vector<16x8xf32>
    %c18_469 = arith.constant 18 : index
    %c0_470 = arith.constant 0 : index
    %c0_471 = arith.constant 0 : index
    %681 = vector.load %arg10[%c18_469, %c0_470, %c0_471] : memref<24x1x8xf32, #tpu.memory_space<vmem>>, vector<1x1x8xf32>
    %682 = vector.shape_cast %681 : vector<1x1x8xf32> to vector<1x8xf32>
    %683 = vector.broadcast %682 : vector<1x8xf32> to vector<16x8xf32>
    %684 = arith.addf %680, %683 : vector<16x8xf32>
    %c22_472 = arith.constant 22 : index
    %c0_473 = arith.constant 0 : index
    %c0_474 = arith.constant 0 : index
    %685 = vector.load %arg9[%c22_472, %c0_473, %c0_474] : memref<24x32x8xf32, #tpu.memory_space<vmem>>, vector<1x32x8xf32>
    %686 = vector.shape_cast %685 : vector<1x32x8xf32> to vector<32x8xf32>
    %cst_475 = arith.constant dense<0.000000e+00> : vector<16x8xf32>
    %687 = tpu.matmul %4, %686, %cst_475 {dimension_numbers = #tpu.dot_dimension_numbers<[1], [0], [0], [1], [0, 0, 1, 1], [], []>} : vector<16x32xf32>, vector<32x8xf32>, vector<16x8xf32> -> vector<16x8xf32>
    %c22_476 = arith.constant 22 : index
    %c0_477 = arith.constant 0 : index
    %c0_478 = arith.constant 0 : index
    %688 = vector.load %arg10[%c22_476, %c0_477, %c0_478] : memref<24x1x8xf32, #tpu.memory_space<vmem>>, vector<1x1x8xf32>
    %689 = vector.shape_cast %688 : vector<1x1x8xf32> to vector<1x8xf32>
    %690 = vector.broadcast %689 : vector<1x8xf32> to vector<16x8xf32>
    %691 = arith.addf %687, %690 : vector<16x8xf32>
    %cst_479 = arith.constant dense<0.000000e+00> : vector<16x16xf32>
    %692 = tpu.matmul %677, %684, %cst_479 {dimension_numbers = #tpu.dot_dimension_numbers<[1], [1], [0], [0], [0, 0, 1, 0], [], []>} : vector<16x8xf32>, vector<16x8xf32>, vector<16x16xf32> -> vector<16x16xf32>
    %693 = arith.addf %692, %6 : vector<16x16xf32>
    %cst_480 = arith.constant dense<0xFF800000> : vector<16xf32>
    %694 = vector.multi_reduction <maximumf>, %693, %cst_480 [1] : vector<16x16xf32> to vector<16xf32>
    %695 = vector.shape_cast %694 : vector<16xf32> to vector<16x1xf32>
    %696 = vector.broadcast %695 : vector<16x1xf32> to vector<16x16xf32>
    %697 = arith.subf %693, %696 : vector<16x16xf32>
    %698 = math.exp %697 : vector<16x16xf32>
    %cst_481 = arith.constant dense<0.000000e+00> : vector<16xf32>
    %699 = vector.multi_reduction <add>, %698, %cst_481 [1] : vector<16x16xf32> to vector<16xf32>
    %700 = vector.shape_cast %699 : vector<16xf32> to vector<16x1xf32>
    %701 = tpu.reciprocal %700 {approx = true} : vector<16x1xf32> -> vector<16x1xf32>
    %702 = vector.broadcast %701 : vector<16x1xf32> to vector<16x16xf32>
    %703 = arith.mulf %698, %702 : vector<16x16xf32>
    %cst_482 = arith.constant dense<0.000000e+00> : vector<16x8xf32>
    %704 = tpu.matmul %703, %691, %cst_482 {dimension_numbers = #tpu.dot_dimension_numbers<[1], [0], [0], [1], [0, 0, 1, 1], [], []>} : vector<16x16xf32>, vector<16x8xf32>, vector<16x8xf32> -> vector<16x8xf32>
    %c6_483 = arith.constant 6 : index
    %c0_484 = arith.constant 0 : index
    %c0_485 = arith.constant 0 : index
    %705 = vector.load %arg11[%c6_483, %c0_484, %c0_485] : memref<8x8x32xf32, #tpu.memory_space<vmem>>, vector<1x8x32xf32>
    %706 = vector.shape_cast %705 : vector<1x8x32xf32> to vector<8x32xf32>
    %cst_486 = arith.constant dense<0.000000e+00> : vector<16x32xf32>
    %707 = tpu.matmul %704, %706, %cst_486 {dimension_numbers = #tpu.dot_dimension_numbers<[1], [0], [0], [1], [0, 0, 1, 1], [], []>} : vector<16x8xf32>, vector<8x32xf32>, vector<16x32xf32> -> vector<16x32xf32>
    %708 = arith.addf %670, %707 : vector<16x32xf32>
    %c15_487 = arith.constant 15 : index
    %c0_488 = arith.constant 0 : index
    %c0_489 = arith.constant 0 : index
    %709 = vector.load %arg9[%c15_487, %c0_488, %c0_489] : memref<24x32x8xf32, #tpu.memory_space<vmem>>, vector<1x32x8xf32>
    %710 = vector.shape_cast %709 : vector<1x32x8xf32> to vector<32x8xf32>
    %cst_490 = arith.constant dense<0.000000e+00> : vector<16x8xf32>
    %711 = tpu.matmul %595, %710, %cst_490 {dimension_numbers = #tpu.dot_dimension_numbers<[1], [0], [0], [1], [0, 0, 1, 1], [], []>} : vector<16x32xf32>, vector<32x8xf32>, vector<16x8xf32> -> vector<16x8xf32>
    %c15_491 = arith.constant 15 : index
    %c0_492 = arith.constant 0 : index
    %c0_493 = arith.constant 0 : index
    %712 = vector.load %arg10[%c15_491, %c0_492, %c0_493] : memref<24x1x8xf32, #tpu.memory_space<vmem>>, vector<1x1x8xf32>
    %713 = vector.shape_cast %712 : vector<1x1x8xf32> to vector<1x8xf32>
    %714 = vector.broadcast %713 : vector<1x8xf32> to vector<16x8xf32>
    %715 = arith.addf %711, %714 : vector<16x8xf32>
    %c19_494 = arith.constant 19 : index
    %c0_495 = arith.constant 0 : index
    %c0_496 = arith.constant 0 : index
    %716 = vector.load %arg9[%c19_494, %c0_495, %c0_496] : memref<24x32x8xf32, #tpu.memory_space<vmem>>, vector<1x32x8xf32>
    %717 = vector.shape_cast %716 : vector<1x32x8xf32> to vector<32x8xf32>
    %cst_497 = arith.constant dense<0.000000e+00> : vector<16x8xf32>
    %718 = tpu.matmul %4, %717, %cst_497 {dimension_numbers = #tpu.dot_dimension_numbers<[1], [0], [0], [1], [0, 0, 1, 1], [], []>} : vector<16x32xf32>, vector<32x8xf32>, vector<16x8xf32> -> vector<16x8xf32>
    %c19_498 = arith.constant 19 : index
    %c0_499 = arith.constant 0 : index
    %c0_500 = arith.constant 0 : index
    %719 = vector.load %arg10[%c19_498, %c0_499, %c0_500] : memref<24x1x8xf32, #tpu.memory_space<vmem>>, vector<1x1x8xf32>
    %720 = vector.shape_cast %719 : vector<1x1x8xf32> to vector<1x8xf32>
    %721 = vector.broadcast %720 : vector<1x8xf32> to vector<16x8xf32>
    %722 = arith.addf %718, %721 : vector<16x8xf32>
    %c23_501 = arith.constant 23 : index
    %c0_502 = arith.constant 0 : index
    %c0_503 = arith.constant 0 : index
    %723 = vector.load %arg9[%c23_501, %c0_502, %c0_503] : memref<24x32x8xf32, #tpu.memory_space<vmem>>, vector<1x32x8xf32>
    %724 = vector.shape_cast %723 : vector<1x32x8xf32> to vector<32x8xf32>
    %cst_504 = arith.constant dense<0.000000e+00> : vector<16x8xf32>
    %725 = tpu.matmul %4, %724, %cst_504 {dimension_numbers = #tpu.dot_dimension_numbers<[1], [0], [0], [1], [0, 0, 1, 1], [], []>} : vector<16x32xf32>, vector<32x8xf32>, vector<16x8xf32> -> vector<16x8xf32>
    %c23_505 = arith.constant 23 : index
    %c0_506 = arith.constant 0 : index
    %c0_507 = arith.constant 0 : index
    %726 = vector.load %arg10[%c23_505, %c0_506, %c0_507] : memref<24x1x8xf32, #tpu.memory_space<vmem>>, vector<1x1x8xf32>
    %727 = vector.shape_cast %726 : vector<1x1x8xf32> to vector<1x8xf32>
    %728 = vector.broadcast %727 : vector<1x8xf32> to vector<16x8xf32>
    %729 = arith.addf %725, %728 : vector<16x8xf32>
    %cst_508 = arith.constant dense<0.000000e+00> : vector<16x16xf32>
    %730 = tpu.matmul %715, %722, %cst_508 {dimension_numbers = #tpu.dot_dimension_numbers<[1], [1], [0], [0], [0, 0, 1, 0], [], []>} : vector<16x8xf32>, vector<16x8xf32>, vector<16x16xf32> -> vector<16x16xf32>
    %731 = arith.addf %730, %6 : vector<16x16xf32>
    %cst_509 = arith.constant dense<0xFF800000> : vector<16xf32>
    %732 = vector.multi_reduction <maximumf>, %731, %cst_509 [1] : vector<16x16xf32> to vector<16xf32>
    %733 = vector.shape_cast %732 : vector<16xf32> to vector<16x1xf32>
    %734 = vector.broadcast %733 : vector<16x1xf32> to vector<16x16xf32>
    %735 = arith.subf %731, %734 : vector<16x16xf32>
    %736 = math.exp %735 : vector<16x16xf32>
    %cst_510 = arith.constant dense<0.000000e+00> : vector<16xf32>
    %737 = vector.multi_reduction <add>, %736, %cst_510 [1] : vector<16x16xf32> to vector<16xf32>
    %738 = vector.shape_cast %737 : vector<16xf32> to vector<16x1xf32>
    %739 = tpu.reciprocal %738 {approx = true} : vector<16x1xf32> -> vector<16x1xf32>
    %740 = vector.broadcast %739 : vector<16x1xf32> to vector<16x16xf32>
    %741 = arith.mulf %736, %740 : vector<16x16xf32>
    %cst_511 = arith.constant dense<0.000000e+00> : vector<16x8xf32>
    %742 = tpu.matmul %741, %729, %cst_511 {dimension_numbers = #tpu.dot_dimension_numbers<[1], [0], [0], [1], [0, 0, 1, 1], [], []>} : vector<16x16xf32>, vector<16x8xf32>, vector<16x8xf32> -> vector<16x8xf32>
    %c7_512 = arith.constant 7 : index
    %c0_513 = arith.constant 0 : index
    %c0_514 = arith.constant 0 : index
    %743 = vector.load %arg11[%c7_512, %c0_513, %c0_514] : memref<8x8x32xf32, #tpu.memory_space<vmem>>, vector<1x8x32xf32>
    %744 = vector.shape_cast %743 : vector<1x8x32xf32> to vector<8x32xf32>
    %cst_515 = arith.constant dense<0.000000e+00> : vector<16x32xf32>
    %745 = tpu.matmul %742, %744, %cst_515 {dimension_numbers = #tpu.dot_dimension_numbers<[1], [0], [0], [1], [0, 0, 1, 1], [], []>} : vector<16x8xf32>, vector<8x32xf32>, vector<16x32xf32> -> vector<16x32xf32>
    %746 = arith.addf %708, %745 : vector<16x32xf32>
    %c1_516 = arith.constant 1 : index
    %c0_517 = arith.constant 0 : index
    %c0_518 = arith.constant 0 : index
    %747 = vector.load %arg12[%c1_516, %c0_517, %c0_518] : memref<2x1x32xf32, #tpu.memory_space<vmem>>, vector<1x1x32xf32>
    %748 = vector.shape_cast %747 : vector<1x1x32xf32> to vector<1x32xf32>
    %749 = vector.broadcast %748 : vector<1x32xf32> to vector<16x32xf32>
    %750 = arith.addf %746, %749 : vector<16x32xf32>
    %751 = arith.addf %595, %750 : vector<16x32xf32>
    %c4_519 = arith.constant 4 : index
    %c0_520 = arith.constant 0 : index
    %c0_521 = arith.constant 0 : index
    %752 = vector.load %arg13[%c4_519, %c0_520, %c0_521] : memref<6x1x32xf32, #tpu.memory_space<vmem>>, vector<1x1x32xf32>
    %753 = vector.shape_cast %752 : vector<1x1x32xf32> to vector<1x32xf32>
    %c4_522 = arith.constant 4 : index
    %c0_523 = arith.constant 0 : index
    %c0_524 = arith.constant 0 : index
    %754 = vector.load %arg14[%c4_522, %c0_523, %c0_524] : memref<6x1x32xf32, #tpu.memory_space<vmem>>, vector<1x1x32xf32>
    %755 = vector.shape_cast %754 : vector<1x1x32xf32> to vector<1x32xf32>
    %cst_525 = arith.constant dense<0.000000e+00> : vector<16xf32>
    %756 = vector.multi_reduction <add>, %751, %cst_525 [1] : vector<16x32xf32> to vector<16xf32>
    %757 = vector.shape_cast %756 : vector<16xf32> to vector<16x1xf32>
    %cst_526 = arith.constant 3.200000e+01 : f32
    %758 = vector.broadcast %cst_526 : f32 to vector<16x1xf32>
    %759 = arith.divf %757, %758 : vector<16x1xf32>
    %760 = vector.broadcast %759 : vector<16x1xf32> to vector<16x32xf32>
    %761 = arith.subf %751, %760 : vector<16x32xf32>
    %762 = arith.mulf %761, %761 : vector<16x32xf32>
    %cst_527 = arith.constant dense<0.000000e+00> : vector<16xf32>
    %763 = vector.multi_reduction <add>, %762, %cst_527 [1] : vector<16x32xf32> to vector<16xf32>
    %764 = vector.shape_cast %763 : vector<16xf32> to vector<16x1xf32>
    %cst_528 = arith.constant 3.200000e+01 : f32
    %765 = vector.broadcast %cst_528 : f32 to vector<16x1xf32>
    %766 = arith.divf %764, %765 : vector<16x1xf32>
    %767 = vector.broadcast %759 : vector<16x1xf32> to vector<16x32xf32>
    %768 = arith.subf %751, %767 : vector<16x32xf32>
    %cst_529 = arith.constant 9.99999974E-6 : f32
    %769 = vector.broadcast %cst_529 : f32 to vector<16x1xf32>
    %770 = arith.addf %766, %769 : vector<16x1xf32>
    %771 = math.rsqrt %770 : vector<16x1xf32>
    %772 = vector.broadcast %771 : vector<16x1xf32> to vector<16x32xf32>
    %773 = arith.mulf %768, %772 : vector<16x32xf32>
    %774 = vector.broadcast %753 : vector<1x32xf32> to vector<16x32xf32>
    %775 = arith.mulf %773, %774 : vector<16x32xf32>
    %776 = vector.broadcast %755 : vector<1x32xf32> to vector<16x32xf32>
    %777 = arith.addf %775, %776 : vector<16x32xf32>
    %c1_530 = arith.constant 1 : index
    %c0_531 = arith.constant 0 : index
    %c0_532 = arith.constant 0 : index
    %778 = vector.load %arg15[%c1_530, %c0_531, %c0_532] : memref<2x32x64xf32, #tpu.memory_space<vmem>>, vector<1x32x64xf32>
    %779 = vector.shape_cast %778 : vector<1x32x64xf32> to vector<32x64xf32>
    %cst_533 = arith.constant dense<0.000000e+00> : vector<16x64xf32>
    %780 = tpu.matmul %777, %779, %cst_533 {dimension_numbers = #tpu.dot_dimension_numbers<[1], [0], [0], [1], [0, 0, 1, 1], [], []>} : vector<16x32xf32>, vector<32x64xf32>, vector<16x64xf32> -> vector<16x64xf32>
    %c1_534 = arith.constant 1 : index
    %c0_535 = arith.constant 0 : index
    %c0_536 = arith.constant 0 : index
    %781 = vector.load %arg16[%c1_534, %c0_535, %c0_536] : memref<2x1x64xf32, #tpu.memory_space<vmem>>, vector<1x1x64xf32>
    %782 = vector.shape_cast %781 : vector<1x1x64xf32> to vector<1x64xf32>
    %783 = vector.broadcast %782 : vector<1x64xf32> to vector<16x64xf32>
    %784 = arith.addf %780, %783 : vector<16x64xf32>
    %cst_537 = arith.constant 0.000000e+00 : f32
    %785 = vector.broadcast %cst_537 : f32 to vector<16x64xf32>
    %786 = arith.maximumf %784, %785 : vector<16x64xf32>
    %c1_538 = arith.constant 1 : index
    %c0_539 = arith.constant 0 : index
    %c0_540 = arith.constant 0 : index
    %787 = vector.load %arg17[%c1_538, %c0_539, %c0_540] : memref<2x64x32xf32, #tpu.memory_space<vmem>>, vector<1x64x32xf32>
    %788 = vector.shape_cast %787 : vector<1x64x32xf32> to vector<64x32xf32>
    %cst_541 = arith.constant dense<0.000000e+00> : vector<16x32xf32>
    %789 = tpu.matmul %786, %788, %cst_541 {dimension_numbers = #tpu.dot_dimension_numbers<[1], [0], [0], [1], [0, 0, 1, 1], [], []>} : vector<16x64xf32>, vector<64x32xf32>, vector<16x32xf32> -> vector<16x32xf32>
    %c1_542 = arith.constant 1 : index
    %c0_543 = arith.constant 0 : index
    %c0_544 = arith.constant 0 : index
    %790 = vector.load %arg18[%c1_542, %c0_543, %c0_544] : memref<2x1x32xf32, #tpu.memory_space<vmem>>, vector<1x1x32xf32>
    %791 = vector.shape_cast %790 : vector<1x1x32xf32> to vector<1x32xf32>
    %792 = vector.broadcast %791 : vector<1x32xf32> to vector<16x32xf32>
    %793 = arith.addf %789, %792 : vector<16x32xf32>
    %794 = arith.addf %777, %793 : vector<16x32xf32>
    %c5_545 = arith.constant 5 : index
    %c0_546 = arith.constant 0 : index
    %c0_547 = arith.constant 0 : index
    %795 = vector.load %arg13[%c5_545, %c0_546, %c0_547] : memref<6x1x32xf32, #tpu.memory_space<vmem>>, vector<1x1x32xf32>
    %796 = vector.shape_cast %795 : vector<1x1x32xf32> to vector<1x32xf32>
    %c5_548 = arith.constant 5 : index
    %c0_549 = arith.constant 0 : index
    %c0_550 = arith.constant 0 : index
    %797 = vector.load %arg14[%c5_548, %c0_549, %c0_550] : memref<6x1x32xf32, #tpu.memory_space<vmem>>, vector<1x1x32xf32>
    %798 = vector.shape_cast %797 : vector<1x1x32xf32> to vector<1x32xf32>
    %cst_551 = arith.constant dense<0.000000e+00> : vector<16xf32>
    %799 = vector.multi_reduction <add>, %794, %cst_551 [1] : vector<16x32xf32> to vector<16xf32>
    %800 = vector.shape_cast %799 : vector<16xf32> to vector<16x1xf32>
    %cst_552 = arith.constant 3.200000e+01 : f32
    %801 = vector.broadcast %cst_552 : f32 to vector<16x1xf32>
    %802 = arith.divf %800, %801 : vector<16x1xf32>
    %803 = vector.broadcast %802 : vector<16x1xf32> to vector<16x32xf32>
    %804 = arith.subf %794, %803 : vector<16x32xf32>
    %805 = arith.mulf %804, %804 : vector<16x32xf32>
    %cst_553 = arith.constant dense<0.000000e+00> : vector<16xf32>
    %806 = vector.multi_reduction <add>, %805, %cst_553 [1] : vector<16x32xf32> to vector<16xf32>
    %807 = vector.shape_cast %806 : vector<16xf32> to vector<16x1xf32>
    %cst_554 = arith.constant 3.200000e+01 : f32
    %808 = vector.broadcast %cst_554 : f32 to vector<16x1xf32>
    %809 = arith.divf %807, %808 : vector<16x1xf32>
    %810 = vector.broadcast %802 : vector<16x1xf32> to vector<16x32xf32>
    %811 = arith.subf %794, %810 : vector<16x32xf32>
    %cst_555 = arith.constant 9.99999974E-6 : f32
    %812 = vector.broadcast %cst_555 : f32 to vector<16x1xf32>
    %813 = arith.addf %809, %812 : vector<16x1xf32>
    %814 = math.rsqrt %813 : vector<16x1xf32>
    %815 = vector.broadcast %814 : vector<16x1xf32> to vector<16x32xf32>
    %816 = arith.mulf %811, %815 : vector<16x32xf32>
    %817 = vector.broadcast %796 : vector<1x32xf32> to vector<16x32xf32>
    %818 = arith.mulf %816, %817 : vector<16x32xf32>
    %819 = vector.broadcast %798 : vector<1x32xf32> to vector<16x32xf32>
    %820 = arith.addf %818, %819 : vector<16x32xf32>
    %c0_556 = arith.constant 0 : index
    %c0_557 = arith.constant 0 : index
    %821 = vector.load %arg19[%c0_556, %c0_557] : memref<32x16xf32, #tpu.memory_space<vmem>>, vector<32x16xf32>
    %cst_558 = arith.constant dense<0.000000e+00> : vector<16x16xf32>
    %822 = tpu.matmul %820, %821, %cst_558 {dimension_numbers = #tpu.dot_dimension_numbers<[1], [0], [0], [1], [0, 0, 1, 1], [], []>} : vector<16x32xf32>, vector<32x16xf32>, vector<16x16xf32> -> vector<16x16xf32>
    %c0_559 = arith.constant 0 : index
    %c0_560 = arith.constant 0 : index
    %823 = vector.load %arg20[%c0_559, %c0_560] : memref<1x16xf32, #tpu.memory_space<vmem>>, vector<1x16xf32>
    %824 = vector.broadcast %823 : vector<1x16xf32> to vector<16x16xf32>
    %825 = arith.addf %822, %824 : vector<16x16xf32>
    %c0_561 = arith.constant 0 : index
    %c0_562 = arith.constant 0 : index
    %826 = vector.load %arg21[%c0_561, %c0_562] : memref<16x16xf32, #tpu.memory_space<vmem>>, vector<16x16xf32>
    tpu.vector_store %arg21[%c0_561, %c0_562], %825 {strides = array<i32>} : memref<16x16xf32, #tpu.memory_space<vmem>>, vector<16x16xf32>,
    return
  }
  func.func @transform_0(%arg0: i32) -> (i32, i32) {
    %c0_i32 = arith.constant 0 : i32
    %c0_i32_0 = arith.constant 0 : i32
    %c0_i32_1 = arith.constant 0 : i32
    return %c0_i32, %c0_i32_0 : i32, i32
  }
  func.func @transform_1(%arg0: i32) -> (i32, i32) {
    %c0_i32 = arith.constant 0 : i32
    %c0_i32_0 = arith.constant 0 : i32
    %c0_i32_1 = arith.constant 0 : i32
    return %c0_i32, %c0_i32_0 : i32, i32
  }
  func.func @transform_2(%arg0: i32) -> (i32, i32) {
    %c0_i32 = arith.constant 0 : i32
    %c0_i32_0 = arith.constant 0 : i32
    %c0_i32_1 = arith.constant 0 : i32
    return %c0_i32, %c0_i32_0 : i32, i32
  }
  func.func @transform_3(%arg0: i32) -> (i32, i32) {
    %c0_i32 = arith.constant 0 : i32
    %c0_i32_0 = arith.constant 0 : i32
    %c0_i32_1 = arith.constant 0 : i32
    return %c0_i32, %c0_i32_0 : i32, i32
  }
  func.func @transform_4(%arg0: i32) -> (i32, i32, i32) {
    %c0_i32 = arith.constant 0 : i32
    %c0_i32_0 = arith.constant 0 : i32
    %c0_i32_1 = arith.constant 0 : i32
    %c0_i32_2 = arith.constant 0 : i32
    return %c0_i32, %c0_i32_0, %c0_i32_1 : i32, i32, i32
  }
  func.func @transform_5(%arg0: i32) -> (i32, i32, i32) {
    %c0_i32 = arith.constant 0 : i32
    %c0_i32_0 = arith.constant 0 : i32
    %c0_i32_1 = arith.constant 0 : i32
    %c0_i32_2 = arith.constant 0 : i32
    return %c0_i32, %c0_i32_0, %c0_i32_1 : i32, i32, i32
  }
  func.func @transform_6(%arg0: i32) -> (i32, i32, i32) {
    %c0_i32 = arith.constant 0 : i32
    %c0_i32_0 = arith.constant 0 : i32
    %c0_i32_1 = arith.constant 0 : i32
    %c0_i32_2 = arith.constant 0 : i32
    return %c0_i32, %c0_i32_0, %c0_i32_1 : i32, i32, i32
  }
  func.func @transform_7(%arg0: i32) -> (i32, i32, i32) {
    %c0_i32 = arith.constant 0 : i32
    %c0_i32_0 = arith.constant 0 : i32
    %c0_i32_1 = arith.constant 0 : i32
    %c0_i32_2 = arith.constant 0 : i32
    return %c0_i32, %c0_i32_0, %c0_i32_1 : i32, i32, i32
  }
  func.func @transform_8(%arg0: i32) -> (i32, i32, i32) {
    %c0_i32 = arith.constant 0 : i32
    %c0_i32_0 = arith.constant 0 : i32
    %c0_i32_1 = arith.constant 0 : i32
    %c0_i32_2 = arith.constant 0 : i32
    return %c0_i32, %c0_i32_0, %c0_i32_1 : i32, i32, i32
  }
  func.func @transform_9(%arg0: i32) -> (i32, i32, i32) {
    %c0_i32 = arith.constant 0 : i32
    %c0_i32_0 = arith.constant 0 : i32
    %c0_i32_1 = arith.constant 0 : i32
    %c0_i32_2 = arith.constant 0 : i32
    return %c0_i32, %c0_i32_0, %c0_i32_1 : i32, i32, i32
  }
  func.func @transform_10(%arg0: i32) -> (i32, i32, i32) {
    %c0_i32 = arith.constant 0 : i32
    %c0_i32_0 = arith.constant 0 : i32
    %c0_i32_1 = arith.constant 0 : i32
    %c0_i32_2 = arith.constant 0 : i32
    return %c0_i32, %c0_i32_0, %c0_i32_1 : i32, i32, i32
  }
  func.func @transform_11(%arg0: i32) -> (i32, i32, i32) {
    %c0_i32 = arith.constant 0 : i32
    %c0_i32_0 = arith.constant 0 : i32
    %c0_i32_1 = arith.constant 0 : i32
    %c0_i32_2 = arith.constant 0 : i32
    return %c0_i32, %c0_i32_0, %c0_i32_1 : i32, i32, i32
  }
  func.func @transform_12(%arg0: i32) -> (i32, i32, i32) {
    %c0_i32 = arith.constant 0 : i32
    %c0_i32_0 = arith.constant 0 : i32
    %c0_i32_1 = arith.constant 0 : i32
    %c0_i32_2 = arith.constant 0 : i32
    return %c0_i32, %c0_i32_0, %c0_i32_1 : i32, i32, i32
  }
  func.func @transform_13(%arg0: i32) -> (i32, i32, i32) {
    %c0_i32 = arith.constant 0 : i32
    %c0_i32_0 = arith.constant 0 : i32
    %c0_i32_1 = arith.constant 0 : i32
    %c0_i32_2 = arith.constant 0 : i32
    return %c0_i32, %c0_i32_0, %c0_i32_1 : i32, i32, i32
  }
  func.func @transform_14(%arg0: i32) -> (i32, i32, i32) {
    %c0_i32 = arith.constant 0 : i32
    %c0_i32_0 = arith.constant 0 : i32
    %c0_i32_1 = arith.constant 0 : i32
    %c0_i32_2 = arith.constant 0 : i32
    return %c0_i32, %c0_i32_0, %c0_i32_1 : i32, i32, i32
  }
  func.func @transform_15(%arg0: i32) -> (i32, i32, i32) {
    %c0_i32 = arith.constant 0 : i32
    %c0_i32_0 = arith.constant 0 : i32
    %c0_i32_1 = arith.constant 0 : i32
    %c0_i32_2 = arith.constant 0 : i32
    return %c0_i32, %c0_i32_0, %c0_i32_1 : i32, i32, i32
  }
  func.func @transform_16(%arg0: i32) -> (i32, i32, i32) {
    %c0_i32 = arith.constant 0 : i32
    %c0_i32_0 = arith.constant 0 : i32
    %c0_i32_1 = arith.constant 0 : i32
    %c0_i32_2 = arith.constant 0 : i32
    return %c0_i32, %c0_i32_0, %c0_i32_1 : i32, i32, i32
  }
  func.func @transform_17(%arg0: i32) -> (i32, i32, i32) {
    %c0_i32 = arith.constant 0 : i32
    %c0_i32_0 = arith.constant 0 : i32
    %c0_i32_1 = arith.constant 0 : i32
    %c0_i32_2 = arith.constant 0 : i32
    return %c0_i32, %c0_i32_0, %c0_i32_1 : i32, i32, i32
  }
  func.func @transform_18(%arg0: i32) -> (i32, i32) {
    %c0_i32 = arith.constant 0 : i32
    %c0_i32_0 = arith.constant 0 : i32
    %c0_i32_1 = arith.constant 0 : i32
    return %c0_i32, %c0_i32_0 : i32, i32
  }
  func.func @transform_19(%arg0: i32) -> (i32, i32) {
    %c0_i32 = arith.constant 0 : i32
    %c0_i32_0 = arith.constant 0 : i32
    %c0_i32_1 = arith.constant 0 : i32
    return %c0_i32, %c0_i32_0 : i32, i32
  }
  func.func @transform_20(%arg0: i32) -> (i32, i32) {
    %c0_i32 = arith.constant 0 : i32
    %c0_i32_0 = arith.constant 0 : i32
    %c0_i32_1 = arith.constant 0 : i32
    return %c0_i32, %c0_i32_0 : i32, i32
  }
}

</mosaic_0001>

<bundles_post_ra>
// kernel: transformer_decoder.1
= control target key start
LH: loop header
LB: loop body
LE: loop exit
PB: predicated region body
PF: predicated region fallthrough
CT: control target
= control target key end

     0   :  { %s6582_s0 = inlined_call_operand.vmem [shape: f32[16,32], index: 0, kind: input, shape index: {}]   ;;  %s6583_s1 = inlined_call_operand.vmem [shape: f32[16,32], index: 1, kind: input, shape index: {}]   ;;  %s6584_s2 = inlined_call_operand.vmem [shape: f32[16,16], index: 2, kind: input, shape index: {}]   ;;  %s6585_s3 = inlined_call_operand.vmem [shape: f32[16,16], index: 3, kind: input, shape index: {}]   ;;  %s6586_s4 = inlined_call_operand.vmem [shape: f32[24,32,8], index: 4, kind: input, shape index: {}]   ;;  %s6587_s5 = inlined_call_operand.vmem [shape: f32[24,1,8], index: 5, kind: input, shape index: {}]   ;;  %s6588_s6 = inlined_call_operand.vmem [shape: f32[8,8,32], index: 6, kind: input, shape index: {}]   ;;  %s6589_s7 = inlined_call_operand.vmem [shape: f32[2,1,32], index: 7, kind: input, shape index: {}]   ;;  %s6590_s8 = inlined_call_operand.vmem [shape: f32[24,32,8], index: 8, kind: input, shape index: {}]   ;;  %s6591_s9 = inlined_call_operand.vmem [shape: f32[24,1,8], index: 9, kind: input, shape index: {}]   ;;  %s6592_s10 = inlined_call_operand.vmem [shape: f32[8,8,32], index: 10, kind: input, shape index: {}]   ;;  %s6593_s11 = inlined_call_operand.vmem [shape: f32[2,1,32], index: 11, kind: input, shape index: {}]   ;;  %s6594_s12 = inlined_call_operand.vmem [shape: f32[6,1,32], index: 12, kind: input, shape index: {}]   ;;  %s6595_s13 = inlined_call_operand.vmem [shape: f32[6,1,32], index: 13, kind: input, shape index: {}]   ;;  %s6596_s14 = inlined_call_operand.vmem [shape: f32[2,32,64], index: 14, kind: input, shape index: {}]   ;;  %s6597_s15 = inlined_call_operand.vmem [shape: f32[2,1,64], index: 15, kind: input, shape index: {}]   ;;  %s6598_s16 = inlined_call_operand.vmem [shape: f32[2,64,32], index: 16, kind: input, shape index: {}]   ;;  %s6599_s17 = inlined_call_operand.vmem [shape: f32[2,1,32], index: 17, kind: input, shape index: {}]   ;;  %s6600_s18 = inlined_call_operand.vmem [shape: f32[32,16], index: 18, kind: input, shape index: {}]   ;;  %s6601_s19 = inlined_call_operand.vmem [shape: f32[1,16], index: 19, kind: input, shape index: {}]   ;;  %s6602_s20 = inlined_call_operand.hbm [shape: f32[16,16], index: 20, kind: output, shape index: {}]  }
   0x1   :  { %6608 = sst [smem:[#allocation5_spill]] %s6582_s0 }
   0x2   :  { %6609 = sst [smem:[#allocation6_spill]] %s6583_s1 }
   0x3   :  { %6610 = sst [smem:[#allocation7_spill]] %s6584_s2 }
   0x4   :  { %6611 = sst [smem:[#allocation8_spill]] %s6585_s3 }
   0x5   :  { %6612 = sst [smem:[#allocation9_spill]] %s6586_s4 }
   0x6   :  { %s6613_s23 = sld [smem:[#allocation9_spill]]  ;;  %vm86_vm0 = vcmask 261120  }
   0x7   :  { %s6614_s26 = sld [smem:[#allocation5_spill]] }
   0x8   :  { %s6615_s4 = sld [smem:[#allocation6_spill]] }
   0xc   :  { %v81_v0 = vld [vmem:[%s6613_s23 + $0x18] sm:$0xff]  ;;  %v80_v1 = vld [vmem:[%s6613_s23 + $0x10] sm:$0xff]  ;;  %v79_v4 = vld [vmem:[%s6613_s23 + $0x8] sm:$0xff] }
   0xd   :  { %4688 = vmatpush.msra.mxu1 %v81_v0  ;;  %v67_v2 = vld [vmem:[%s6614_s26 + $0x8] sm:$0xff]  ;;  %105 = vmatpush.msra.mxu0 %v81_v0  ;;  %v66_v6 = vld [vmem:[%s6614_s26] sm:$0xff]  ;;  %v4189_v10 = vld [vmem:[%s6613_s23 + $0x98] sm:$0xff] }
   0xe   :  { %v71_v3 = vld [vmem:[%s6615_s4 + $0x8] sm:$0xff]  ;;  %v69_v5 = vmul.f32 5.656854, %v67_v2  ;;  %v70_v7 = vld [vmem:[%s6615_s4] sm:$0xff]  ;;  %v68_v11 = vmul.f32 5.656854, %v66_v6 }
   0xf   :  { %4689 = vmatpush.msra.mxu1 %v80_v1  ;;  %106 = vmatpush.msra.mxu0 %v80_v1  ;;  %v78_v8 = vld [vmem:[%s6613_s23] sm:$0xff]  ;;  %v4188_v12 = vld [vmem:[%s6613_s23 + $0x90] sm:$0xff]  ;;  %v4187_v14 = vld [vmem:[%s6613_s23 + $0x88] sm:$0xff] }
  0x10   :  { %v5082_v9 = vadd.f32 %v71_v3, %v69_v5  ;;  %v5090_v13 = vadd.f32 %v70_v7, %v68_v11  ;;  %v4186_v15 = vld [vmem:[%s6613_s23 + $0x80] sm:$0xff] }
  0x11   :  { %4690 = vmatpush.msra.mxu1 %v79_v4  ;;  %107 = vmatpush.msra.mxu0 %v79_v4 }
  0x13   :  { %4691 = vmatpush.msra.mxu1 %v78_v8  ;;  %108 = vmatpush.msra.mxu0 %v78_v8 }
  0x14   :  { %4185 = vmatmul.msk.f32.vlgmr.msra.gmra.mxu1 %vm86_vm0, %v5082_v9  ;;  %4184 = vmatmul.msk.f32.vlgmr.msra.gmra.mxu0 %vm86_vm0, %v5090_v13 }
  0x15   :  { %138 = vmatpush.msrb.mxu1 %v4189_v10 }
  0x17   :  { %139 = vmatpush.msrb.mxu1 %v4188_v12 }
  0x19   :  { %140 = vmatpush.msrb.mxu1 %v4187_v14 }
  0x1b   :  { %141 = vmatpush.msrb.mxu1 %v4186_v15 }
  0x1c   :  { %4191 = vmatmul.msk.f32.vlgmr.msrb.gmra.mxu1 %vm86_vm0, %v5090_v13 }
  0x24   :  { %4192 = vmatmul.msk.f32.gmra.mxu1 %vm86_vm0, %v5082_v9 }
  0x25   :  { %25 = vsyncpa [#allocation3], 0  ;;  %v4697_v18 = vld [vmem:[%s6587_s5 + $0x4] ss:$0 sm:$0xff]  ;;  %vm182_vm1 = vcmask 64512   ;;  %v4196_v26 = vld [vmem:[%s6613_s23 + $0x118] sm:$0xff] }
  0x26   :  { %v4696_v22 = vld [vmem:[%s6587_s5] ss:$0 sm:$0xff]  ;;  %v4195_v27 = vld [vmem:[%s6613_s23 + $0x110] sm:$0xff]  ;;  %171 = vmatpush.msra.mxu2 %v4196_v26  ;;  %v4194_v28 = vld [vmem:[%s6613_s23 + $0x108] sm:$0xff]  ;;  %s6616_s27 = sld [smem:[#allocation7_spill]]  ;;  %vm218_vm2 = vcmask 130048  }
  0x27   :  { %v4193_v29 = vld [vmem:[%s6613_s23 + $0x100] sm:$0xff]  ;;  %v4216_v30 = vld [vmem:[%s6613_s23 + $0xb8] sm:$0xff]  ;;  %v4215_v31 = vld [vmem:[%s6613_s23 + $0xb0] sm:$0xff]  ;;  %s6617_s29 = sld [smem:[#allocation8_spill]] }
  0x28   :  { %172 = vmatpush.msra.mxu2 %v4195_v27  ;;  %v4214_v32 = vld [vmem:[%s6613_s23 + $0xa8] sm:$0xff]  ;;  %v4213_v33 = vld [vmem:[%s6613_s23 + $0xa0] sm:$0xff]  ;;  %v4209_v42 = vld [vmem:[%s6613_s23 + $0x38] sm:$0xff] }
  0x29   :  { %v4208_v43 = vld [vmem:[%s6613_s23 + $0x30] sm:$0xff]  ;;  %293 = vmatpush.msra.mxu1 %v4209_v42  ;;  %v4207_v44 = vld [vmem:[%s6613_s23 + $0x28] sm:$0xff]  ;;  %v4206_v45 = vld [vmem:[%s6613_s23 + $0x20] sm:$0xff] }
  0x2a   :  { %173 = vmatpush.msra.mxu2 %v4194_v28  ;;  %v4698_v50 = vld [vmem:[%s6587_s5 + $0x8] ss:$0 sm:$0xff]  ;;  %v4699_v62 = vld [vmem:[%s6587_s5 + $0x5] ss:$0 sm:$0xff]  ;;  %v4223_v3 = vld [vmem:[%s6613_s23 + $0x138] sm:$0xff] }
  0x2b   :  { %294 = vmatpush.msra.mxu1 %v4208_v43  ;;  %v4222_v4 = vld [vmem:[%s6613_s23 + $0x130] sm:$0xff]  ;;  %v4221_v5 = vld [vmem:[%s6613_s23 + $0x128] sm:$0xff]  ;;  %v4220_v6 = vld [vmem:[%s6613_s23 + $0x120] sm:$0xff] }
  0x2c   :  { %174 = vmatpush.msra.mxu2 %v4193_v29  ;;  %v5147_v34 = vld [vmem:[%s6616_s27] sm:$0xff]  ;;  %v5156_v38 = vld [vmem:[%s6616_s27 + $0x8] sm:$0xff] }
  0x2d   :  { %4198 = vmatmul.msk.f32.vlgmr.msra.gmra.mxu2 %vm86_vm0, %v5090_v13  ;;  %295 = vmatpush.msra.mxu1 %v4207_v44  ;;  %v4700_v15 = vld [vmem:[%s6587_s5 + $0x1] ss:$0 sm:$0xff] }
  0x2e   :  { %326 = vmatpush.msrb.mxu2 %v4216_v30 }
  0x2f   :  { %296 = vmatpush.msra.mxu1 %v4206_v45  ;;  %v4248_v45 = vld [vmem:[%s6613_s23 + $0xd8] sm:$0xff] }
  0x30   :  { %327 = vmatpush.msrb.mxu2 %v4215_v31  ;;  %4211 = vmatmul.msk.f32.vlgmr.msra.gmra.mxu1 %vm86_vm0, %v5090_v13 }
  0x32   :  { %328 = vmatpush.msrb.mxu2 %v4214_v32 }
  0x34   :  { %329 = vmatpush.msrb.mxu2 %v4213_v33 }
  0x35   :  { %4199 = vmatmul.msk.f32.gmra.mxu2 %vm86_vm0, %v5082_v9 }
  0x38   :  { %4212 = vmatmul.msk.f32.gmra.mxu1 %vm86_vm0, %v5082_v9 }
  0x3d   :  { %4218 = vmatmul.msk.f32.vlgmr.msrb.gmra.mxu2 %vm86_vm0, %v5090_v13 }
  0x45   :  { %4219 = vmatmul.msk.f32.gmra.mxu2 %vm86_vm0, %v5082_v9 }
  0x91   :  { %v113_v16 = vpop.f32.mrf.mxu1  ;;  %v110_v21 = vpop.f32.mrf.mxu0 }
  0x92   :  { %v111_v24 = vadd.f32 %v4696_v22, %v110_v21  ;;  %v114_v25 = vadd.f32 %v4696_v22, %v113_v16 }
  0x99   :  { %v143_v17 = vpop.f32.mrf.mxu1 }
  0x9a   :  { %v144_v23 = vadd.f32 %v4697_v18, %v143_v17 }
  0xa1   :  { %v146_v19 = vpop.f32.mrf.mxu1 }
  0xa2   :  { %v147_v20 = vadd.f32 %v4697_v18, %v146_v19  ;;  %v270_v19 = vld [vmem:[%s6588_s6] sm:$0xff] }
  0xa4   :  { %4200 = vmatpush.xpose.msk.msra.mxu3 %vm182_vm1, %v147_v20 }
  0xa8   :  { %4201 = vmatpush.xpose.msk.msra.mxu3 %vm182_vm1, %v144_v23  ;;  %v4701_v23 = vld [vmem:[%s6587_s5 + $0x9] ss:$0 sm:$0xff] }
  0xab   :  { %4202 = vmatmul.msk.f32.vlgmr.msra.gmra.mxu3 %vm182_vm1, %v111_v24 }
  0xac   :  { %359 = vmatpush.msrb.mxu3 %v4223_v3  ;;  %v4703_v3 = vld [vmem:[%s6587_s5 + $0x2] ss:$0 sm:$0xff] }
  0xad   :  { %v298_v14 = vpop.f32.mrf.mxu1 }
  0xae   :  { %360 = vmatpush.msrb.mxu3 %v4222_v4  ;;  %v299_v16 = vadd.f32 %v4700_v15, %v298_v14  ;;  %v4252_v14 = vld [vmem:[%s6613_s23 + $0x140] sm:$0xff] }
  0xb0   :  { %v176_v47 = vpop.f32.mrf.mxu2  ;;  %361 = vmatpush.msrb.mxu3 %v4221_v5 }
  0xb1   :  { %v177_v55 = vadd.f32 %v4698_v50, %v176_v47  ;;  %v4246_v47 = vld [vmem:[%s6613_s23 + $0xc8] sm:$0xff] }
  0xb2   :  { %362 = vmatpush.msrb.mxu3 %v4220_v6 }
  0xb3   :  { %4203 = vmatmul.msk.f32.gmra.mxu3 %vm182_vm1, %v114_v25 }
  0xb4   :  { %508 = vmatpush.msra.mxu3 %v270_v19 }
  0xb5   :  { %v301_v17 = vpop.f32.mrf.mxu1 }
  0xb6   :  { %v302_v18 = vadd.f32 %v4700_v15, %v301_v17 }
  0xb8   :  { %v179_v52 = vpop.f32.mrf.mxu2 }
  0xb9   :  { %v180_v54 = vadd.f32 %v4698_v50, %v179_v52  ;;  %v4239_v52 = vld [vmem:[%s6613_s23 + $0x48] sm:$0xff] }
  0xbb   :  { %261 = vmatpush.msrb.mxu0 %v180_v54  ;;  %4225 = vmatmul.msk.f32.vlgmr.msrb.gmra.mxu3 %vm86_vm0, %v5090_v13 }
  0xbd   :  { %262 = vmatpush.msrb.mxu0 %v177_v55 }
  0xc0   :  { %v331_v61 = vpop.f32.mrf.mxu2 }
  0xc1   :  { %v332_v1 = vadd.f32 %v4699_v62, %v331_v61 }
  0xc3   :  { %4226 = vmatmul.msk.f32.gmra.mxu3 %vm86_vm0, %v5082_v9 }
  0xc8   :  { %v334_v63 = vpop.f32.mrf.mxu2 }
  0xc9   :  { %v335_v0 = vadd.f32 %v4699_v62, %v334_v63  ;;  %v4702_v63 = vld [vmem:[%s6587_s5 + $0x6] ss:$0 sm:$0xff] }
  0xcb   :  { %4227 = vmatpush.xpose.msk.msra.mxu0 %vm182_vm1, %v335_v0 }
  0xcf   :  { %4228 = vmatpush.xpose.msk.msra.mxu0 %vm182_vm1, %v332_v1 }
 0x12e   :  { %v212_v35 = vpop.f32.mrf.mxu3 }
 0x12f   :  { %v213_v36 = vadd.f32 %v212_v35, %v5147_v34 }
 0x131   :  { %v219_v37 = vsel %vm218_vm2, %v213_v36, -inf }
 0x132   :  { %220 = vmax.xlane.f32.xlu0 %v219_v37 }
 0x136   :  { %v215_v39 = vpop.f32.mrf.mxu3 }
 0x137   :  { %v216_v40 = vadd.f32 %v215_v39, %v5156_v38 }
 0x139   :  { %v222_v41 = vsel %vm218_vm2, %v216_v40, -inf }
 0x13a   :  { %223 = vmax.xlane.f32.xlu0 %v222_v41 }
 0x13e   :  { %v364_v21 = vpop.f32.mrf.mxu3 }
 0x13f   :  { %v365_v25 = vadd.f32 %v4701_v23, %v364_v21 }
 0x146   :  { %v367_v24 = vpop.f32.mrf.mxu3 }
 0x147   :  { %v368_v26 = vadd.f32 %v4701_v23, %v367_v24  ;;  %v4278_v23 = vld [vmem:[%s6613_s23 + $0xf8] sm:$0xff]  ;;  %v4277_v24 = vld [vmem:[%s6613_s23 + $0xf0] sm:$0xff] }
 0x149   :  { %447 = vmatpush.msrb.mxu1 %v368_v26 }
 0x14b   :  { %448 = vmatpush.msrb.mxu1 %v365_v25  ;;  %v4276_v25 = vld [vmem:[%s6613_s23 + $0xe8] sm:$0xff] }
 0x14d   :  { %571 = vmatpush.msra.mxu1 %v4248_v45  ;;  %v4271_v45 = vld [vmem:[%s6613_s23 + $0x78] sm:$0xff] }
 0x1a5   :  { %v221_v46 = vpop.xlane.xlu0 %220 }
 0x1a6   :  { %v225_v48 = vsub.f32 %v213_v36, %v221_v46  ;;  %v4247_v46 = vld [vmem:[%s6613_s23 + $0xd0] sm:$0xff] }
 0x1a7   :  { %572 = vmatpush.msra.mxu1 %v4247_v46  ;;  %v4270_v46 = vld [vmem:[%s6613_s23 + $0x70] sm:$0xff] }
 0x1a8   :  { %v227_v49 = vmul.f32 1.442695, %v225_v48  ;;  %v4245_v48 = vld [vmem:[%s6613_s23 + $0xc0] sm:$0xff] }
 0x1a9   :  { %573 = vmatpush.msra.mxu1 %v4246_v47  ;;  %v4269_v47 = vld [vmem:[%s6613_s23 + $0x68] sm:$0xff] }
 0x1aa   :  { %4765 = vpow2.f32 %v227_v49  ;;  %v4241_v49 = vld [vmem:[%s6613_s23 + $0x58] sm:$0xff] }
 0x1ab   :  { %574 = vmatpush.msra.mxu1 %v4245_v48  ;;  %v4268_v48 = vld [vmem:[%s6613_s23 + $0x60] sm:$0xff] }
 0x1ad   :  { %v224_v51 = vpop.xlane.xlu0 %223 }
 0x1ae   :  { %v226_v53 = vsub.f32 %v216_v40, %v224_v51  ;;  %v4240_v51 = vld [vmem:[%s6613_s23 + $0x50] sm:$0xff] }
 0x1b0   :  { %v4766_v56 = vpop.eup %4765  ;;  %v229_v57 = vmul.f32 1.442695, %v226_v53  ;;  %v4238_v53 = vld [vmem:[%s6613_s23 + $0x40] sm:$0xff] }
 0x1b1   :  { %v231_v58 = vsel %vm218_vm2, %v4766_v56, 0.0 }
 0x1b2   :  { %4767 = vpow2.f32 %v229_v57  ;;  %232 = vadd.xlane.f32.xlu1 %v231_v58 }
 0x1b8   :  { %v4768_v59 = vpop.eup %4767 }
 0x1b9   :  { %v234_v60 = vsel %vm218_vm2, %v4768_v59, 0.0 }
 0x1ba   :  { %235 = vadd.xlane.f32.xlu1 %v234_v60 }
 0x225   :  { %v233_v2 = vpop.xlane.xlu1 %232 }
 0x226   :  { %4769 = vrcp.f32 %v233_v2 }
 0x22c   :  { %v4770_v7 = vpop.eup %4769 }
 0x22d   :  { %v236_v8 = vpop.xlane.xlu1 %235  ;;  %v239_v10 = vmul.f32 %v4770_v7, %v4766_v56 }
 0x22e   :  { %4771 = vrcp.f32 %v236_v8  ;;  %v4255_v8 = vld [vmem:[%s6613_s23 + $0x158] sm:$0xff] }
 0x22f   :  { %4204 = vmatmul.msk.f32.vlgmr.msrb.gmra.mxu0 %vm218_vm2, %v239_v10  ;;  %v4254_v10 = vld [vmem:[%s6613_s23 + $0x150] sm:$0xff] }
 0x230   :  { %538 = vmatpush.msrb.mxu0 %v4241_v49  ;;  %v4265_v49 = vld [vmem:[%s6588_s6 + $0x10] sm:$0xff] }
 0x232   :  { %539 = vmatpush.msrb.mxu0 %v4240_v51 }
 0x234   :  { %v4772_v11 = vpop.eup %4771  ;;  %540 = vmatpush.msrb.mxu0 %v4239_v52  ;;  %v4705_v52 = vld [vmem:[%s6587_s5 + $0x7] ss:$0 sm:$0xff] }
 0x235   :  { %v240_v12 = vmul.f32 %v4772_v11, %v4768_v59  ;;  %v4233_v59 = vld [vmem:[%s6588_s6 + $0x8] sm:$0xff] }
 0x236   :  { %541 = vmatpush.msrb.mxu0 %v4238_v53  ;;  %479 = vmatpush.msra.mxu2 %v4233_v59 }
 0x237   :  { %4205 = vmatmul.msk.f32.gmra.mxu0 %vm218_vm2, %v240_v12  ;;  %v4253_v12 = vld [vmem:[%s6613_s23 + $0x148] sm:$0xff] }
 0x238   :  { %604 = vmatpush.msrb.mxu2 %v4255_v8  ;;  %v4282_v8 = vld [vmem:[%s6613_s23 + $0x160] sm:$0xff] }
 0x23a   :  { %605 = vmatpush.msrb.mxu2 %v4254_v10 }
 0x23c   :  { %606 = vmatpush.msrb.mxu2 %v4253_v12 }
 0x23e   :  { %607 = vmatpush.msrb.mxu2 %v4252_v14 }
 0x23f   :  { %4229 = vmatmul.msk.f32.vlgmr.msra.gmra.mxu0 %vm182_vm1, %v299_v16 }
 0x247   :  { %4230 = vmatmul.msk.f32.gmra.mxu0 %vm182_vm1, %v302_v18 }
 0x24f   :  { %4243 = vmatmul.msk.f32.vlgmr.msrb.gmra.mxu0 %vm86_vm0, %v5090_v13 }
 0x257   :  { %4244 = vmatmul.msk.f32.gmra.mxu0 %vm86_vm0, %v5082_v9 }
 0x2ac   :  { %v264_v20 = vpop.f32.mrf.mxu0 }
 0x2ad   :  { %4236 = vmatmul.msk.f32.vlgmr.msra.gmra.mxu3 %vm182_vm1, %v264_v20 }
 0x2b4   :  { %v267_v22 = vpop.f32.mrf.mxu0 }
 0x2b5   :  { %4237 = vmatmul.msk.f32.gmra.mxu3 %vm182_vm1, %v267_v22 }
 0x2bc   :  { %v399_v27 = vpop.f32.mrf.mxu0 }
 0x2bd   :  { %v400_v28 = vadd.f32 %v399_v27, %v5147_v34  ;;  %v4275_v27 = vld [vmem:[%s6613_s23 + $0xe0] sm:$0xff] }
 0x2bf   :  { %v405_v29 = vsel %vm218_vm2, %v400_v28, -inf }
 0x2c0   :  { %406 = vmax.xlane.f32.xlu2 %v405_v29 }
 0x2c4   :  { %v402_v30 = vpop.f32.mrf.mxu0 }
 0x2c5   :  { %v403_v31 = vadd.f32 %v402_v30, %v5156_v38 }
 0x2c7   :  { %v408_v32 = vsel %vm218_vm2, %v403_v31, -inf }
 0x2c8   :  { %409 = vmax.xlane.f32.xlu2 %v408_v32  ;;  %v4704_v32 = vld [vmem:[%s6587_s5 + $0xa] ss:$0 sm:$0xff] }
 0x2cc   :  { %v543_v2 = vpop.f32.mrf.mxu0 }
 0x2cd   :  { %v544_v5 = vadd.f32 %v4703_v3, %v543_v2 }
 0x2d4   :  { %v546_v6 = vpop.f32.mrf.mxu0 }
 0x2d5   :  { %v547_v7 = vadd.f32 %v4703_v3, %v546_v6  ;;  %v4283_v6 = vld [vmem:[%s6613_s23 + $0x168] sm:$0xff] }
 0x330   :  { %v5280_v11 = vpop.f32.mrf.mxu3 }
 0x333   :  { %v407_v33 = vpop.xlane.xlu2 %406 }
 0x334   :  { %v411_v35 = vsub.f32 %v400_v28, %v407_v33 }
 0x336   :  { %v413_v36 = vmul.f32 1.442695, %v411_v35 }
 0x338   :  { %4773 = vpow2.f32 %v413_v36  ;;  %v5290_v15 = vpop.f32.mrf.mxu3 }
 0x33b   :  { %v410_v37 = vpop.xlane.xlu2 %409 }
 0x33c   :  { %v412_v39 = vsub.f32 %v403_v31, %v410_v37 }
 0x33e   :  { %v4774_v40 = vpop.eup %4773  ;;  %v415_v41 = vmul.f32 1.442695, %v412_v39 }
 0x33f   :  { %v417_v42 = vsel %vm218_vm2, %v4774_v40, 0.0 }
 0x340   :  { %4775 = vpow2.f32 %v415_v41  ;;  %418 = vadd.xlane.f32.xlu0 %v417_v42 }
 0x346   :  { %v4776_v43 = vpop.eup %4775 }
 0x347   :  { %v420_v44 = vsel %vm218_vm2, %v4776_v43, 0.0 }
 0x348   :  { %421 = vadd.xlane.f32.xlu1 %v420_v44 }
 0x3b3   :  { %v419_v50 = vpop.xlane.xlu0 %418 }
 0x3b4   :  { %4777 = vrcp.f32 %v419_v50 }
 0x3ba   :  { %v4778_v54 = vpop.eup %4777 }
 0x3bb   :  { %v425_v55 = vmul.f32 %v4778_v54, %v4774_v40  ;;  %v422_v56 = vpop.xlane.xlu1 %421 }
 0x3bc   :  { %4779 = vrcp.f32 %v422_v56 }
 0x3bd   :  { %4231 = vmatmul.msk.f32.vlgmr.msrb.gmra.mxu1 %vm218_vm2, %v425_v55 }
 0x3be   :  { %724 = vmatpush.msrb.mxu1 %v4265_v49 }
 0x3c2   :  { %v4780_v57 = vpop.eup %4779 }
 0x3c3   :  { %v426_v58 = vmul.f32 %v4780_v57, %v4776_v43 }
 0x3c5   :  { %4232 = vmatmul.msk.f32.gmra.mxu1 %vm218_vm2, %v426_v58 }
 0x3cd   :  { %4250 = vmatmul.msk.f32.vlgmr.msra.gmra.mxu1 %vm86_vm0, %v5090_v13 }
 0x3d5   :  { %4251 = vmatmul.msk.f32.gmra.mxu1 %vm86_vm0, %v5082_v9 }
 0x43a   :  { %v450_v60 = vpop.f32.mrf.mxu1 }
 0x43b   :  { %4234 = vmatmul.msk.f32.vlgmr.msra.gmra.mxu2 %vm182_vm1, %v450_v60 }
 0x43c   :  { %756 = vmatpush.msra.mxu2 %v4271_v45 }
 0x43e   :  { %757 = vmatpush.msra.mxu2 %v4270_v46 }
 0x440   :  { %758 = vmatpush.msra.mxu2 %v4269_v47 }
 0x442   :  { %v453_v61 = vpop.f32.mrf.mxu1  ;;  %759 = vmatpush.msra.mxu2 %v4268_v48  ;;  %v4708_v48 = vld [vmem:[%s6589_s7] ss:$0 sm:$0xff] }
 0x443   :  { %4235 = vmatmul.msk.f32.gmra.mxu2 %vm182_vm1, %v453_v61 }
 0x44a   :  { %v576_v62 = vpop.f32.mrf.mxu1 }
 0x44b   :  { %v577_v4 = vadd.f32 %v4702_v63, %v576_v62  ;;  %4257 = vmatmul.msk.f32.vlgmr.msrb.gmra.mxu2 %vm86_vm0, %v5090_v13 }
 0x452   :  { %v579_v0 = vpop.f32.mrf.mxu1 }
 0x453   :  { %v580_v1 = vadd.f32 %v4702_v63, %v579_v0  ;;  %4258 = vmatmul.msk.f32.gmra.mxu2 %vm86_vm0, %v5082_v9  ;;  %v4706_v0 = vld [vmem:[%s6587_s5 + $0x3] ss:$0 sm:$0xff] }
 0x455   :  { %4259 = vmatpush.xpose.msk.msrb.mxu3 %vm182_vm1, %v580_v1 }
 0x459   :  { %4260 = vmatpush.xpose.msk.msrb.mxu3 %vm182_vm1, %v577_v4  ;;  %v4285_v4 = vld [vmem:[%s6613_s23 + $0x178] sm:$0xff] }
 0x45b   :  { %4273 = vmatmul.msk.f32.vlgmr.msra.gmra.mxu2 %vm86_vm0, %v5090_v13 }
 0x45c   :  { %4261 = vmatmul.msk.f32.vlgmr.msrb.gmra.mxu3 %vm182_vm1, %v544_v5  ;;  %v4284_v5 = vld [vmem:[%s6613_s23 + $0x170] sm:$0xff] }
 0x45d   :  { %789 = vmatpush.msra.mxu3 %v4278_v23 }
 0x45f   :  { %790 = vmatpush.msra.mxu3 %v4277_v24 }
 0x461   :  { %791 = vmatpush.msra.mxu3 %v4276_v25 }
 0x463   :  { %792 = vmatpush.msra.mxu3 %v4275_v27  ;;  %4274 = vmatmul.msk.f32.gmra.mxu2 %vm86_vm0, %v5082_v9 }
 0x464   :  { %4262 = vmatmul.msk.f32.gmra.mxu3 %vm182_vm1, %v547_v7 }
 0x46c   :  { %4280 = vmatmul.msk.f32.vlgmr.msra.gmra.mxu3 %vm86_vm0, %v5090_v13 }
 0x474   :  { %4281 = vmatmul.msk.f32.gmra.mxu3 %vm86_vm0, %v5082_v9 }
 0x4be   :  { %v5298_v22 = vpop.f32.mrf.mxu2 }
 0x4bf   :  { %v511_v46 = vadd.f32 %v5280_v11, %v5298_v22 }
 0x4c6   :  { %v5309_v26 = vpop.f32.mrf.mxu2 }
 0x4ce   :  { %v609_v29 = vpop.f32.mrf.mxu2 }
 0x4cf   :  { %v610_v37 = vadd.f32 %v4704_v32, %v609_v29 }
 0x4d6   :  { %v612_v35 = vpop.f32.mrf.mxu2 }
 0x4d7   :  { %v613_v39 = vadd.f32 %v4704_v32, %v612_v35 }
 0x4d9   :  { %692 = vmatpush.msra.mxu0 %v613_v39 }
 0x4db   :  { %693 = vmatpush.msra.mxu0 %v610_v37 }
 0x4dd   :  { %822 = vmatpush.msrb.mxu0 %v4285_v4 }
 0x4de   :  { %v761_v63 = vpop.f32.mrf.mxu2 }
 0x4df   :  { %v644_v16 = vpop.f32.mrf.mxu3  ;;  %v762_v1 = vadd.f32 %v4706_v0, %v761_v63  ;;  %823 = vmatpush.msrb.mxu0 %v4284_v5  ;;  %v4301_v63 = vld [vmem:[%s6590_s8 + $0x88] sm:$0xff] }
 0x4e0   :  { %v645_v17 = vadd.f32 %v644_v16, %v5147_v34 }
 0x4e1   :  { %824 = vmatpush.msrb.mxu0 %v4283_v6 }
 0x4e2   :  { %v650_v18 = vsel %vm218_vm2, %v645_v17, -inf }
 0x4e3   :  { %651 = vmax.xlane.f32.xlu2 %v650_v18  ;;  %825 = vmatpush.msrb.mxu0 %v4282_v8 }
 0x4e6   :  { %v764_v2 = vpop.f32.mrf.mxu2 }
 0x4e7   :  { %v647_v19 = vpop.f32.mrf.mxu3  ;;  %v765_v3 = vadd.f32 %v4706_v0, %v764_v2 }
 0x4e8   :  { %v648_v20 = vadd.f32 %v647_v19, %v5156_v38 }
 0x4ea   :  { %v653_v21 = vsel %vm218_vm2, %v648_v20, -inf }
 0x4eb   :  { %654 = vmax.xlane.f32.xlu0 %v653_v21  ;;  %v4707_v21 = vld [vmem:[%s6587_s5 + $0xb] ss:$0 sm:$0xff] }
 0x4ef   :  { %v794_v51 = vpop.f32.mrf.mxu3 }
 0x4f0   :  { %v795_v58 = vadd.f32 %v4705_v52, %v794_v51 }
 0x4f7   :  { %v797_v56 = vpop.f32.mrf.mxu3 }
 0x4f8   :  { %v798_v57 = vadd.f32 %v4705_v52, %v797_v56  ;;  %v514_v52 = vadd.f32 %v5290_v15, %v5309_v26  ;;  %v4303_v15 = vld [vmem:[%s6590_s8 + $0x98] sm:$0xff]  ;;  %v4302_v26 = vld [vmem:[%s6590_s8 + $0x90] sm:$0xff] }
 0x4fa   :  { %4289 = vmatpush.xpose.msk.msra.mxu1 %vm182_vm1, %v798_v57 }
 0x4fe   :  { %4290 = vmatpush.xpose.msk.msra.mxu1 %vm182_vm1, %v795_v58 }
 0x556   :  { %v652_v28 = vpop.xlane.xlu2 %651 }
 0x557   :  { %v656_v30 = vsub.f32 %v645_v17, %v652_v28 }
 0x559   :  { %v658_v31 = vmul.f32 1.442695, %v656_v30 }
 0x55b   :  { %4781 = vpow2.f32 %v658_v31 }
 0x55e   :  { %v655_v33 = vpop.xlane.xlu0 %654 }
 0x55f   :  { %v657_v36 = vsub.f32 %v648_v20, %v655_v33 }
 0x561   :  { %v4782_v40 = vpop.eup %4781  ;;  %v660_v41 = vmul.f32 1.442695, %v657_v36  ;;  %v4295_v36 = vld [vmem:[%s6588_s6 + $0x18] sm:$0xff] }
 0x562   :  { %v662_v42 = vsel %vm218_vm2, %v4782_v40, 0.0  ;;  %942 = vmatpush.msrb.mxu3 %v4295_v36 }
 0x563   :  { %4783 = vpow2.f32 %v660_v41  ;;  %663 = vadd.xlane.f32.xlu1 %v662_v42 }
 0x569   :  { %v4784_v43 = vpop.eup %4783 }
 0x56a   :  { %v665_v44 = vsel %vm218_vm2, %v4784_v43, 0.0 }
 0x56b   :  { %666 = vadd.xlane.f32.xlu2 %v665_v44 }
 0x5d6   :  { %v664_v50 = vpop.xlane.xlu1 %663 }
 0x5d7   :  { %4785 = vrcp.f32 %v664_v50 }
 0x5dd   :  { %v4786_v53 = vpop.eup %4785 }
 0x5de   :  { %v670_v54 = vmul.f32 %v4786_v53, %v4782_v40  ;;  %v667_v55 = vpop.xlane.xlu2 %666 }
 0x5df   :  { %4787 = vrcp.f32 %v667_v55 }
 0x5e0   :  { %4263 = vmatmul.msk.f32.vlgmr.msra.gmra.mxu0 %vm218_vm2, %v670_v54 }
 0x5e5   :  { %v4788_v59 = vpop.eup %4787 }
 0x5e6   :  { %v671_v60 = vmul.f32 %v4788_v59, %v4784_v43  ;;  %v4949_v59 = vmov 32.0  }
 0x5e8   :  { %4264 = vmatmul.msk.f32.gmra.mxu0 %vm218_vm2, %v671_v60 }
 0x5f0   :  { %4287 = vmatmul.msk.f32.vlgmr.msrb.gmra.mxu0 %vm86_vm0, %v5090_v13 }
 0x5f8   :  { %4288 = vmatmul.msk.f32.gmra.mxu0 %vm86_vm0, %v5082_v9 }
 0x65d   :  { %v695_v61 = vpop.f32.mrf.mxu0 }
 0x65e   :  { %4266 = vmatmul.msk.f32.vlgmr.msrb.gmra.mxu1 %vm182_vm1, %v695_v61 }
 0x65f   :  { %1082 = vmatpush.msrb.mxu1 %v4303_v15 }
 0x661   :  { %1083 = vmatpush.msrb.mxu1 %v4302_v26 }
 0x663   :  { %1084 = vmatpush.msrb.mxu1 %v4301_v63  ;;  %v4309_v63 = vld [vmem:[%s6590_s8 + $0x110] sm:$0xff] }
 0x665   :  { %v698_v62 = vpop.f32.mrf.mxu0 }
 0x666   :  { %4267 = vmatmul.msk.f32.gmra.mxu1 %vm182_vm1, %v698_v62 }
 0x66d   :  { %v827_v20 = vpop.f32.mrf.mxu0 }
 0x66e   :  { %4291 = vmatmul.msk.f32.vlgmr.msra.gmra.mxu1 %vm182_vm1, %v762_v1  ;;  %v828_v28 = vadd.f32 %v4707_v21, %v827_v20  ;;  %v1025_v20 = vld [vmem:[%s6590_s8 + $0x10] sm:$0xff] }
 0x675   :  { %v830_v25 = vpop.f32.mrf.mxu0 }
 0x676   :  { %4292 = vmatmul.msk.f32.gmra.mxu1 %vm182_vm1, %v765_v3 }
 0x6db   :  { %v726_v7 = vpop.f32.mrf.mxu1 }
 0x6dc   :  { %v732_v47 = vadd.f32 %v726_v7, %v511_v46  ;;  %v4710_v46 = vld [vmem:[%s6595_s13] ss:$0 sm:$0xff] }
 0x6e3   :  { %v729_v10 = vpop.f32.mrf.mxu1 }
 0x6e4   :  { %v733_v54 = vadd.f32 %v729_v10, %v514_v52 }
 0x6eb   :  { %v862_v12 = vpop.f32.mrf.mxu1 }
 0x6ec   :  { %v863_v14 = vadd.f32 %v862_v12, %v5147_v34  ;;  %v831_v34 = vadd.f32 %v4707_v21, %v830_v25  ;;  %v4322_v21 = vld [vmem:[%s6590_s8 + $0x30] sm:$0xff]  ;;  %v1023_v25 = vld [vmem:[%s6590_s8] sm:$0xff] }
 0x6ee   :  { %v868_v16 = vsel %vm218_vm2, %v863_v14, -inf  ;;  %910 = vmatpush.msrb.mxu2 %v831_v34 }
 0x6ef   :  { %869 = vmax.xlane.f32.xlu0 %v868_v16 }
 0x6f0   :  { %911 = vmatpush.msrb.mxu2 %v828_v28 }
 0x6f3   :  { %v865_v17 = vpop.f32.mrf.mxu1 }
 0x6f4   :  { %v866_v18 = vadd.f32 %v865_v17, %v5156_v38  ;;  %v4300_v17 = vld [vmem:[%s6590_s8 + $0x80] sm:$0xff] }
 0x6f5   :  { %1085 = vmatpush.msrb.mxu1 %v4300_v17 }
 0x6f6   :  { %v871_v19 = vsel %vm218_vm2, %v866_v18, -inf  ;;  %4305 = vmatmul.msk.f32.vlgmr.msrb.gmra.mxu1 %vm86_vm0, %v5090_v13 }
 0x6f7   :  { %872 = vmax.xlane.f32.xlu1 %v871_v19  ;;  %v4323_v19 = vld [vmem:[%s6590_s8 + $0x38] sm:$0xff] }
 0x6f8   :  { %1235 = vmatpush.msra.mxu1 %v4323_v19 }
 0x6fa   :  { %1236 = vmatpush.msra.mxu1 %v4322_v21 }
 0x6fe   :  { %4306 = vmatmul.msk.f32.gmra.mxu1 %vm86_vm0, %v5082_v9 }
 0x762   :  { %v870_v23 = vpop.xlane.xlu0 %869 }
 0x763   :  { %v874_v24 = vsub.f32 %v863_v14, %v870_v23  ;;  %v1024_v23 = vld [vmem:[%s6590_s8 + $0x8] sm:$0xff] }
 0x765   :  { %v876_v27 = vmul.f32 1.442695, %v874_v24  ;;  %v4321_v24 = vld [vmem:[%s6590_s8 + $0x28] sm:$0xff] }
 0x766   :  { %1237 = vmatpush.msra.mxu1 %v4321_v24  ;;  %v4714_v24 = vld [vmem:[%s6591_s9 + $0x8] ss:$0 sm:$0xff] }
 0x767   :  { %4789 = vpow2.f32 %v876_v27  ;;  %v4320_v27 = vld [vmem:[%s6590_s8 + $0x20] sm:$0xff] }
 0x768   :  { %1238 = vmatpush.msra.mxu1 %v4320_v27 }
 0x76a   :  { %v873_v29 = vpop.xlane.xlu1 %872 }
 0x76b   :  { %v875_v30 = vsub.f32 %v866_v18, %v873_v29  ;;  %v1026_v18 = vld [vmem:[%s6590_s8 + $0x18] sm:$0xff] }
 0x76c   :  { %1049 = vmatpush.msra.mxu0 %v1026_v18 }
 0x76d   :  { %v4790_v38 = vpop.eup %4789  ;;  %v878_v31 = vmul.f32 1.442695, %v875_v30 }
 0x76e   :  { %v880_v32 = vsel %vm218_vm2, %v4790_v38, 0.0  ;;  %1050 = vmatpush.msra.mxu0 %v1025_v20 }
 0x76f   :  { %4791 = vpow2.f32 %v878_v31  ;;  %881 = vadd.xlane.f32.xlu2 %v880_v32 }
 0x770   :  { %1051 = vmatpush.msra.mxu0 %v1024_v23 }
 0x772   :  { %1052 = vmatpush.msra.mxu0 %v1023_v25 }
 0x775   :  { %v4792_v33 = vpop.eup %4791 }
 0x776   :  { %v883_v35 = vsel %vm218_vm2, %v4792_v33, 0.0 }
 0x777   :  { %884 = vadd.xlane.f32.xlu0 %v883_v35 }
 0x7e2   :  { %v882_v37 = vpop.xlane.xlu2 %881 }
 0x7e3   :  { %4793 = vrcp.f32 %v882_v37 }
 0x7e9   :  { %v4794_v39 = vpop.eup %4793 }
 0x7ea   :  { %v888_v40 = vmul.f32 %v4794_v39, %v4790_v38  ;;  %v885_v41 = vpop.xlane.xlu0 %884 }
 0x7eb   :  { %4795 = vrcp.f32 %v885_v41 }
 0x7ec   :  { %4293 = vmatmul.msk.f32.vlgmr.msrb.gmra.mxu2 %vm218_vm2, %v888_v40  ;;  %4797 = vrcp.f32 %v4949_v59  ;;  %v4712_v59 = vld [vmem:[%s6591_s9] ss:$0 sm:$0xff] }
 0x7f1   :  { %v4796_v42 = vpop.eup %4795 }
 0x7f2   :  { %v889_v43 = vmul.f32 %v4796_v42, %v4792_v33  ;;  %v4798_v60 = vpop.eup %4797  ;;  %v4709_v42 = vld [vmem:[%s6594_s12] ss:$0 sm:$0xff] }
 0x7f3   :  { %v969_v61 = vmul.f32 32.0, %v4798_v60  ;;  %vm973_vm3 = vweird.f32 %v4798_v60 }
 0x7f4   :  { %4294 = vmatmul.msk.f32.gmra.mxu2 %vm218_vm2, %v889_v43 }
 0x7f5   :  { %v970_v62 = vsub.f32 1.0, %v969_v61 }
 0x7f7   :  { %v971_v0 = vmul.f32 %v4798_v60, %v970_v62  ;;  %v4310_v62 = vld [vmem:[%s6590_s8 + $0x118] sm:$0xff] }
 0x7f8   :  { %1115 = vmatpush.msra.mxu2 %v4310_v62 }
 0x7f9   :  { %v972_v1 = vadd.f32 %v4798_v60, %v971_v0  ;;  %v4308_v0 = vld [vmem:[%s6590_s8 + $0x108] sm:$0xff] }
 0x7fa   :  { %1116 = vmatpush.msra.mxu2 %v4309_v63 }
 0x7fb   :  { %v5408_v2 = vsel %vm973_vm3, %v4798_v60, %v972_v1  ;;  %v4307_v1 = vld [vmem:[%s6590_s8 + $0x100] sm:$0xff]  ;;  %vm2011_vm3 = vcmask 523264  }
 0x7fc   :  { %1117 = vmatpush.msra.mxu2 %v4308_v0 }
 0x7fe   :  { %1118 = vmatpush.msra.mxu2 %v4307_v1 }
 0x7ff   :  { %4312 = vmatmul.msk.f32.vlgmr.msra.gmra.mxu2 %vm86_vm0, %v5090_v13 }
 0x807   :  { %4313 = vmatmul.msk.f32.gmra.mxu2 %vm86_vm0, %v5082_v9 }
 0x86f   :  { %v913_v44 = vpop.f32.mrf.mxu2 }
 0x870   :  { %4296 = vmatmul.msk.f32.vlgmr.msrb.gmra.mxu3 %vm182_vm1, %v913_v44 }
 0x877   :  { %v916_v45 = vpop.f32.mrf.mxu2 }
 0x878   :  { %4297 = vmatmul.msk.f32.gmra.mxu3 %vm182_vm1, %v916_v45 }
 0x882   :  { %v1120_v20 = vpop.f32.mrf.mxu2 }
 0x88a   :  { %v1123_v27 = vpop.f32.mrf.mxu2 }
 0x8f3   :  { %v944_v49 = vpop.f32.mrf.mxu3 }
 0x8f4   :  { %v950_v50 = vadd.f32 %v944_v49, %v732_v47 }
 0x8f6   :  { %v956_v51 = vadd.f32 %v4708_v48, %v950_v50 }
 0x8f8   :  { %v958_v53 = vadd.f32 %v956_v51, %v5090_v13 }
 0x8fa   :  { %v962_v55 = vsel %vm86_vm0, %v958_v53, 0.0 }
 0x8fb   :  { %963 = vadd.xlane.f32.xlu1 %v962_v55  ;;  %v947_v56 = vpop.f32.mrf.mxu3 }
 0x8fc   :  { %v951_v57 = vadd.f32 %v947_v56, %v733_v54  ;;  %v1087_v56 = vpop.f32.mrf.mxu1 }
 0x8fe   :  { %v957_v11 = vadd.f32 %v4708_v48, %v951_v57  ;;  %v4711_v57 = vld [vmem:[%s6591_s9 + $0x4] ss:$0 sm:$0xff] }
 0x900   :  { %v959_v22 = vadd.f32 %v957_v11, %v5082_v9 }
 0x902   :  { %v965_v58 = vsel %vm86_vm0, %v959_v22, 0.0 }
 0x903   :  { %966 = vadd.xlane.f32.xlu2 %v965_v58  ;;  %v1088_v58 = vadd.f32 %v4711_v57, %v1087_v56  ;;  %v4713_v56 = vld [vmem:[%s6591_s9 + $0x1] ss:$0 sm:$0xff] }
 0x904   :  { %v1090_v11 = vpop.f32.mrf.mxu1 }
 0x96e   :  { %v964_v3 = vpop.xlane.xlu1 %963 }
 0x96f   :  { %v975_v4 = vmul.f32 %v5408_v2, %v964_v3  ;;  %v4330_v3 = vld [vmem:[%s6590_s8 + $0xb8] sm:$0xff] }
 0x970   :  { %1268 = vmatpush.msrb.mxu2 %v4330_v3 }
 0x971   :  { %v977_v5 = vsub.f32 %v958_v53, %v975_v4  ;;  %v4329_v4 = vld [vmem:[%s6590_s8 + $0xb0] sm:$0xff] }
 0x972   :  { %1269 = vmatpush.msrb.mxu2 %v4329_v4 }
 0x973   :  { %v979_v6 = vmul.f32 %v977_v5, %v977_v5 }
 0x975   :  { %v981_v7 = vsel %vm86_vm0, %v979_v6, 0.0  ;;  %v4327_v6 = vld [vmem:[%s6590_s8 + $0xa0] sm:$0xff] }
 0x976   :  { %982 = vadd.xlane.f32.xlu0 %v981_v7  ;;  %v967_v8 = vpop.xlane.xlu2 %966  ;;  %v5506_v7 = vld [vmem:[%s6617_s29] sm:$0xff] }
 0x977   :  { %v976_v10 = vmul.f32 %v5408_v2, %v967_v8 }
 0x979   :  { %v978_v12 = vsub.f32 %v959_v22, %v976_v10  ;;  %v1091_v22 = vadd.f32 %v4711_v57, %v1090_v11  ;;  %v4335_v57 = vld [vmem:[%s6590_s8 + $0x128] sm:$0xff]  ;;  %v4334_v11 = vld [vmem:[%s6590_s8 + $0x120] sm:$0xff] }
 0x97b   :  { %v980_v14 = vmul.f32 %v978_v12, %v978_v12  ;;  %4314 = vmatpush.xpose.msk.msra.mxu3 %vm182_vm1, %v1091_v22 }
 0x97d   :  { %v984_v16 = vsel %vm86_vm0, %v980_v14, 0.0  ;;  %v5515_v14 = vld [vmem:[%s6617_s29 + $0x8] sm:$0xff] }
 0x97e   :  { %985 = vadd.xlane.f32.xlu1 %v984_v16 }
 0x97f   :  { %4315 = vmatpush.xpose.msk.msra.mxu3 %vm182_vm1, %v1088_v58 }
 0x9e9   :  { %v983_v28 = vpop.xlane.xlu0 %982 }
 0x9ea   :  { %v987_v34 = vmul.f32 %v983_v28, %v5408_v2 }
 0x9ec   :  { %v989_v29 = vadd.f32 1e-05, %v987_v34  ;;  %v1121_v34 = vadd.f32 %v4714_v24, %v1120_v20 }
 0x9ee   :  { %4799 = vrsqrt.f32 %v989_v29  ;;  %vm997_vm5 = vweird.f32 %v989_v29 }
 0x9f1   :  { %v986_v30 = vpop.xlane.xlu1 %985 }
 0x9f2   :  { %v988_v38 = vmul.f32 %v986_v30, %v5408_v2 }
 0x9f4   :  { %v4800_v31 = vpop.eup %4799  ;;  %v990_v32 = vadd.f32 1e-05, %v988_v38 }
 0x9f5   :  { %v992_v33 = vmul.f32 %v4800_v31, %v989_v29  ;;  %vm998_vm4 = vweird.f32 %v4800_v31  ;;  %v1124_v29 = vadd.f32 %v4714_v24, %v1123_v27  ;;  %v4362_v27 = vld [vmem:[%s6590_s8 + $0xd8] sm:$0xff] }
 0x9f6   :  { %4801 = vrsqrt.f32 %v990_v32  ;;  %vm999_vm6 = vmor %vm997_vm5, %vm998_vm4  ;;  %vm1007_vm8 = vweird.f32 %v990_v32 }
 0x9f7   :  { %v993_v35 = vmul.f32 %v4800_v31, %v992_v33  ;;  %1203 = vmatpush.msrb.mxu0 %v1124_v29  ;;  %v4359_v29 = vld [vmem:[%s6590_s8 + $0xc0] sm:$0xff] }
 0x9f9   :  { %v994_v36 = vmul.f32 0.5, %v993_v35  ;;  %1204 = vmatpush.msrb.mxu0 %v1121_v34  ;;  %v4360_v34 = vld [vmem:[%s6590_s8 + $0xc8] sm:$0xff] }
 0x9fb   :  { %v995_v37 = vsub.f32 1.5, %v994_v36  ;;  %v4715_v36 = vld [vmem:[%s6591_s9 + $0x5] ss:$0 sm:$0xff] }
 0x9fc   :  { %v4802_v39 = vpop.eup %4801 }
 0x9fd   :  { %v996_v40 = vmul.f32 %v4800_v31, %v995_v37  ;;  %v1002_v41 = vmul.f32 %v4802_v39, %v990_v32  ;;  %vm1008_vm7 = vweird.f32 %v4802_v39 }
 0x9fe   :  { %vm1009_vm9 = vmor %vm1007_vm8, %vm1008_vm7 }
 0x9ff   :  { %v1000_v43 = vsel %vm999_vm6, %v4800_v31, %v996_v40  ;;  %v1003_v44 = vmul.f32 %v4802_v39, %v1002_v41 }
 0xa00   :  { %v1011_v45 = vmul.f32 %v1000_v43, %v977_v5  ;;  %v4328_v5 = vld [vmem:[%s6590_s8 + $0xa8] sm:$0xff] }
 0xa01   :  { %v1004_v47 = vmul.f32 0.5, %v1003_v44  ;;  %1270 = vmatpush.msrb.mxu2 %v4328_v5  ;;  %v4717_v5 = vld [vmem:[%s6591_s9 + $0x9] ss:$0 sm:$0xff] }
 0xa02   :  { %v1016_v48 = vmul.f32 %v4709_v42, %v1011_v45  ;;  %v4355_v45 = vld [vmem:[%s6590_s8 + $0x58] sm:$0xff] }
 0xa03   :  { %v1005_v49 = vsub.f32 1.5, %v1004_v47  ;;  %1271 = vmatpush.msrb.mxu2 %v4327_v6  ;;  %v4353_v47 = vld [vmem:[%s6590_s8 + $0x48] sm:$0xff] }
 0xa04   :  { %v5453_v50 = vadd.f32 %v4710_v46, %v1016_v48  ;;  %4332 = vmatmul.msk.f32.vlgmr.msrb.gmra.mxu2 %vm86_vm0, %v5090_v13  ;;  %v4352_v48 = vld [vmem:[%s6590_s8 + $0x40] sm:$0xff] }
 0xa05   :  { %v1006_v51 = vmul.f32 %v4802_v39, %v1005_v49 }
 0xa06   :  { %4298 = vmatmul.msk.f32.vlgmr.msra.gmra.mxu0 %vm86_vm0, %v5453_v50  ;;  %4325 = vmatmul.msk.f32.vlgmr.msra.gmra.mxu1 %vm86_vm0, %v5453_v50 }
 0xa07   :  { %v1010_v52 = vsel %vm1009_vm9, %v4802_v39, %v1006_v51 }
 0xa08   :  { %v1012_v53 = vmul.f32 %v1010_v52, %v978_v12  ;;  %v4337_v52 = vld [vmem:[%s6590_s8 + $0x138] sm:$0xff] }
 0xa09   :  { %1301 = vmatpush.msrb.mxu3 %v4337_v52 }
 0xa0a   :  { %v1017_v54 = vmul.f32 %v4709_v42, %v1012_v53  ;;  %v4336_v53 = vld [vmem:[%s6590_s8 + $0x130] sm:$0xff] }
 0xa0b   :  { %1302 = vmatpush.msrb.mxu3 %v4336_v53 }
 0xa0c   :  { %v5459_v55 = vadd.f32 %v4710_v46, %v1017_v54  ;;  %4333 = vmatmul.msk.f32.gmra.mxu2 %vm86_vm0, %v5082_v9  ;;  %v4354_v46 = vld [vmem:[%s6590_s8 + $0x50] sm:$0xff] }
 0xa0d   :  { %1303 = vmatpush.msrb.mxu3 %v4335_v57 }
 0xa0e   :  { %4299 = vmatmul.msk.f32.gmra.mxu0 %vm86_vm0, %v5459_v55  ;;  %4326 = vmatmul.msk.f32.gmra.mxu1 %vm86_vm0, %v5459_v55 }
 0xa0f   :  { %1304 = vmatpush.msrb.mxu3 %v4334_v11 }
 0xa83   :  { %v1054_v60 = vpop.f32.mrf.mxu0  ;;  %v1240_v54 = vpop.f32.mrf.mxu1 }
 0xa84   :  { %v1055_v61 = vadd.f32 %v4712_v59, %v1054_v60  ;;  %v1241_v22 = vadd.f32 %v4713_v56, %v1240_v54  ;;  %v1212_v60 = vld [vmem:[%s6592_s10] sm:$0xff] }
 0xa85   :  { %v4716_v54 = vld [vmem:[%s6591_s9 + $0x2] ss:$0 sm:$0xff] }
 0xa86   :  { %4316 = vmatmul.msk.f32.vlgmr.msra.gmra.mxu3 %vm182_vm1, %v1055_v61 }
 0xa87   :  { %v1273_v35 = vpop.f32.mrf.mxu2  ;;  %1450 = vmatpush.msra.mxu3 %v1212_v60 }
 0xa88   :  { %v1274_v40 = vadd.f32 %v4715_v36, %v1273_v35 }
 0xa8b   :  { %v1057_v15 = vpop.f32.mrf.mxu0  ;;  %v1243_v58 = vpop.f32.mrf.mxu1 }
 0xa8c   :  { %v1058_v26 = vadd.f32 %v4712_v59, %v1057_v15  ;;  %v1244_v59 = vadd.f32 %v4713_v56, %v1243_v58 }
 0xa8e   :  { %4317 = vmatmul.msk.f32.gmra.mxu3 %vm182_vm1, %v1058_v26 }
 0xa8f   :  { %v1276_v37 = vpop.f32.mrf.mxu2 }
 0xa90   :  { %v1277_v39 = vadd.f32 %v4715_v36, %v1276_v37  ;;  %v4347_v36 = vld [vmem:[%s6592_s10 + $0x8] sm:$0xff]  ;;  %v4369_v37 = vld [vmem:[%s6590_s8 + $0x158] sm:$0xff] }
 0xa91   :  { %1421 = vmatpush.msra.mxu2 %v4347_v36 }
 0xa92   :  { %4341 = vmatpush.xpose.msk.msra.mxu0 %vm182_vm1, %v1277_v39  ;;  %v4368_v39 = vld [vmem:[%s6590_s8 + $0x150] sm:$0xff] }
 0xa93   :  { %1546 = vmatpush.msrb.mxu2 %v4369_v37 }
 0xa95   :  { %1547 = vmatpush.msrb.mxu2 %v4368_v39 }
 0xa96   :  { %4342 = vmatpush.xpose.msk.msra.mxu0 %vm182_vm1, %v1274_v40  ;;  %4339 = vmatmul.msk.f32.vlgmr.msrb.gmra.mxu3 %vm86_vm0, %v5090_v13  ;;  %v4367_v40 = vld [vmem:[%s6590_s8 + $0x148] sm:$0xff] }
 0xa97   :  { %1548 = vmatpush.msrb.mxu2 %v4367_v40 }
 0xa9e   :  { %4340 = vmatmul.msk.f32.gmra.mxu3 %vm86_vm0, %v5082_v9 }
 0xb09   :  { %v1155_v8 = vpop.f32.mrf.mxu3 }
 0xb0a   :  { %v1156_v10 = vadd.f32 %v1155_v8, %v5506_v7 }
 0xb0c   :  { %v1161_v12 = vsel %vm218_vm2, %v1156_v10, -inf }
 0xb0d   :  { %1162 = vmax.xlane.f32.xlu2 %v1161_v12 }
 0xb11   :  { %v1158_v16 = vpop.f32.mrf.mxu3 }
 0xb12   :  { %v1159_v17 = vadd.f32 %v1158_v16, %v5515_v14 }
 0xb14   :  { %v1164_v18 = vsel %vm218_vm2, %v1159_v17, -inf }
 0xb15   :  { %1165 = vmax.xlane.f32.xlu0 %v1164_v18 }
 0xb19   :  { %v1306_v0 = vpop.f32.mrf.mxu3 }
 0xb1a   :  { %v1307_v8 = vadd.f32 %v4717_v5, %v1306_v0 }
 0xb21   :  { %v1309_v6 = vpop.f32.mrf.mxu3 }
 0xb80   :  { %v1163_v19 = vpop.xlane.xlu2 %1162 }
 0xb81   :  { %v1167_v21 = vsub.f32 %v1156_v10, %v1163_v19  ;;  %v1310_v10 = vadd.f32 %v4717_v5, %v1309_v6 }
 0xb83   :  { %v1169_v23 = vmul.f32 1.442695, %v1167_v21  ;;  %1389 = vmatpush.msrb.mxu1 %v1310_v10  ;;  %v4392_v10 = vld [vmem:[%s6590_s8 + $0xf8] sm:$0xff] }
 0xb85   :  { %4803 = vpow2.f32 %v1169_v23  ;;  %1390 = vmatpush.msrb.mxu1 %v1307_v8 }
 0xb87   :  { %1513 = vmatpush.msra.mxu1 %v4362_v27 }
 0xb88   :  { %v1166_v25 = vpop.xlane.xlu0 %1165 }
 0xb89   :  { %v1168_v28 = vsub.f32 %v1159_v17, %v1166_v25 }
 0xb8b   :  { %v4804_v30 = vpop.eup %4803  ;;  %v1171_v38 = vmul.f32 1.442695, %v1168_v28  ;;  %v4361_v28 = vld [vmem:[%s6590_s8 + $0xd0] sm:$0xff] }
 0xb8c   :  { %v1173_v31 = vsel %vm218_vm2, %v4804_v30, 0.0  ;;  %1514 = vmatpush.msra.mxu1 %v4361_v28 }
 0xb8d   :  { %4805 = vpow2.f32 %v1171_v38  ;;  %1174 = vadd.xlane.f32.xlu1 %v1173_v31 }
 0xb8e   :  { %1515 = vmatpush.msra.mxu1 %v4360_v34 }
 0xb90   :  { %1516 = vmatpush.msra.mxu1 %v4359_v29  ;;  %v4379_v29 = vld [vmem:[%s6592_s10 + $0x10] sm:$0xff] }
 0xb93   :  { %v4806_v32 = vpop.eup %4805 }
 0xb94   :  { %v1176_v33 = vsel %vm218_vm2, %v4806_v32, 0.0 }
 0xb95   :  { %1177 = vadd.xlane.f32.xlu2 %v1176_v33 }
 0xc00   :  { %v1175_v41 = vpop.xlane.xlu1 %1174 }
 0xc01   :  { %4807 = vrcp.f32 %v1175_v41  ;;  %v4366_v41 = vld [vmem:[%s6590_s8 + $0x140] sm:$0xff] }
 0xc02   :  { %1549 = vmatpush.msrb.mxu2 %v4366_v41 }
 0xc07   :  { %v4808_v42 = vpop.eup %4807 }
 0xc08   :  { %v1181_v43 = vmul.f32 %v4808_v42, %v4804_v30  ;;  %v1178_v44 = vpop.xlane.xlu2 %1177  ;;  %v4385_v42 = vld [vmem:[%s6590_s8 + $0x78] sm:$0xff] }
 0xc09   :  { %4809 = vrcp.f32 %v1178_v44  ;;  %v4384_v44 = vld [vmem:[%s6590_s8 + $0x70] sm:$0xff] }
 0xc0a   :  { %4318 = vmatmul.msk.f32.vlgmr.msrb.gmra.mxu0 %vm218_vm2, %v1181_v43 }
 0xc0b   :  { %1480 = vmatpush.msrb.mxu0 %v4355_v45  ;;  %v4383_v45 = vld [vmem:[%s6590_s8 + $0x68] sm:$0xff] }
 0xc0d   :  { %1481 = vmatpush.msrb.mxu0 %v4354_v46  ;;  %v4382_v46 = vld [vmem:[%s6590_s8 + $0x60] sm:$0xff] }
 0xc0f   :  { %v4810_v49 = vpop.eup %4809  ;;  %1482 = vmatpush.msrb.mxu0 %v4353_v47 }
 0xc10   :  { %v1182_v51 = vmul.f32 %v4810_v49, %v4806_v32  ;;  %v4718_v49 = vld [vmem:[%s6591_s9 + $0x6] ss:$0 sm:$0xff] }
 0xc11   :  { %1483 = vmatpush.msrb.mxu0 %v4352_v48 }
 0xc12   :  { %4319 = vmatmul.msk.f32.gmra.mxu0 %vm218_vm2, %v1182_v51 }
 0xc1a   :  { %4343 = vmatmul.msk.f32.vlgmr.msra.gmra.mxu0 %vm182_vm1, %v1241_v22 }
 0xc22   :  { %4344 = vmatmul.msk.f32.gmra.mxu0 %vm182_vm1, %v1244_v59 }
 0xc2a   :  { %4357 = vmatmul.msk.f32.vlgmr.msrb.gmra.mxu0 %vm86_vm0, %v5453_v50 }
 0xc32   :  { %4358 = vmatmul.msk.f32.gmra.mxu0 %vm86_vm0, %v5459_v55 }
 0xc87   :  { %v1206_v61 = vpop.f32.mrf.mxu0 }
 0xc88   :  { %4350 = vmatmul.msk.f32.vlgmr.msra.gmra.mxu3 %vm182_vm1, %v1206_v61 }
 0xc8f   :  { %v1209_v15 = vpop.f32.mrf.mxu0 }
 0xc90   :  { %4351 = vmatmul.msk.f32.gmra.mxu3 %vm182_vm1, %v1209_v15  ;;  %v4719_v15 = vld [vmem:[%s6591_s9 + $0xa] ss:$0 sm:$0xff] }
 0xc97   :  { %v1341_v26 = vpop.f32.mrf.mxu0 }
 0xc98   :  { %v1342_v62 = vadd.f32 %v1341_v26, %v5506_v7 }
 0xc9a   :  { %v1347_v63 = vsel %vm218_vm2, %v1342_v62, -inf }
 0xc9b   :  { %1348 = vmax.xlane.f32.xlu0 %v1347_v63 }
 0xc9f   :  { %v1344_v1 = vpop.f32.mrf.mxu0 }
 0xca0   :  { %v1345_v3 = vadd.f32 %v1344_v1, %v5515_v14 }
 0xca2   :  { %v1350_v4 = vsel %vm218_vm2, %v1345_v3, -inf }
 0xca3   :  { %1351 = vmax.xlane.f32.xlu1 %v1350_v4 }
 0xca7   :  { %v1485_v53 = vpop.f32.mrf.mxu0 }
 0xca8   :  { %v1486_v57 = vadd.f32 %v4716_v54, %v1485_v53 }
 0xcaf   :  { %v1488_v11 = vpop.f32.mrf.mxu0 }
 0xcb0   :  { %v1489_v22 = vadd.f32 %v4716_v54, %v1488_v11  ;;  %v4396_v54 = vld [vmem:[%s6590_s8 + $0x160] sm:$0xff] }
 0xd0b   :  { %v5653_v60 = vpop.f32.mrf.mxu3 }
 0xd0e   :  { %v1349_v12 = vpop.xlane.xlu0 %1348 }
 0xd0f   :  { %v1353_v16 = vsub.f32 %v1342_v62, %v1349_v12  ;;  %v4391_v12 = vld [vmem:[%s6590_s8 + $0xf0] sm:$0xff] }
 0xd11   :  { %v1355_v17 = vmul.f32 1.442695, %v1353_v16  ;;  %v4390_v16 = vld [vmem:[%s6590_s8 + $0xe8] sm:$0xff] }
 0xd13   :  { %4811 = vpow2.f32 %v1355_v17  ;;  %v5658_v62 = vpop.f32.mrf.mxu3  ;;  %v4389_v17 = vld [vmem:[%s6590_s8 + $0xe0] sm:$0xff] }
 0xd16   :  { %v1352_v18 = vpop.xlane.xlu1 %1351 }
 0xd17   :  { %v1354_v19 = vsub.f32 %v1345_v3, %v1352_v18 }
 0xd19   :  { %v4812_v20 = vpop.eup %4811  ;;  %v1357_v21 = vmul.f32 1.442695, %v1354_v19 }
 0xd1a   :  { %v1359_v23 = vsel %vm218_vm2, %v4812_v20, 0.0 }
 0xd1b   :  { %4813 = vpow2.f32 %v1357_v21  ;;  %1360 = vadd.xlane.f32.xlu2 %v1359_v23 }
 0xd21   :  { %v4814_v24 = vpop.eup %4813 }
 0xd22   :  { %v1362_v25 = vsel %vm218_vm2, %v4814_v24, 0.0 }
 0xd23   :  { %1363 = vadd.xlane.f32.xlu0 %v1362_v25 }
 0xd8e   :  { %v1361_v30 = vpop.xlane.xlu2 %1360 }
 0xd8f   :  { %4815 = vrcp.f32 %v1361_v30 }
 0xd95   :  { %v4816_v38 = vpop.eup %4815 }
 0xd96   :  { %v1367_v31 = vmul.f32 %v4816_v38, %v4812_v20  ;;  %v1364_v32 = vpop.xlane.xlu0 %1363 }
 0xd97   :  { %4817 = vrcp.f32 %v1364_v32 }
 0xd98   :  { %4345 = vmatmul.msk.f32.vlgmr.msrb.gmra.mxu1 %vm218_vm2, %v1367_v31  ;;  %v4721_v31 = vld [vmem:[%s6591_s9 + $0x7] ss:$0 sm:$0xff] }
 0xd99   :  { %1666 = vmatpush.msrb.mxu1 %v4379_v29 }
 0xd9d   :  { %v4818_v33 = vpop.eup %4817 }
 0xd9e   :  { %v1368_v35 = vmul.f32 %v4818_v33, %v4814_v24 }
 0xda0   :  { %4346 = vmatmul.msk.f32.gmra.mxu1 %vm218_vm2, %v1368_v35 }
 0xda8   :  { %4364 = vmatmul.msk.f32.vlgmr.msra.gmra.mxu1 %vm86_vm0, %v5090_v13 }
 0xdb0   :  { %4365 = vmatmul.msk.f32.gmra.mxu1 %vm86_vm0, %v5082_v9 }
 0xe15   :  { %v1392_v43 = vpop.f32.mrf.mxu1 }
 0xe16   :  { %4348 = vmatmul.msk.f32.vlgmr.msra.gmra.mxu2 %vm182_vm1, %v1392_v43 }
 0xe17   :  { %1698 = vmatpush.msra.mxu2 %v4385_v42 }
 0xe19   :  { %1699 = vmatpush.msra.mxu2 %v4384_v44 }
 0xe1b   :  { %1700 = vmatpush.msra.mxu2 %v4383_v45  ;;  %v4720_v45 = vld [vmem:[%s6591_s9 + $0x3] ss:$0 sm:$0xff] }
 0xe1d   :  { %v1395_v47 = vpop.f32.mrf.mxu1  ;;  %1701 = vmatpush.msra.mxu2 %v4382_v46 }
 0xe1e   :  { %4349 = vmatmul.msk.f32.gmra.mxu2 %vm182_vm1, %v1395_v47 }
 0xe25   :  { %v1518_v48 = vpop.f32.mrf.mxu1 }
 0xe26   :  { %4371 = vmatmul.msk.f32.vlgmr.msrb.gmra.mxu2 %vm86_vm0, %v5090_v13  ;;  %v1519_v56 = vadd.f32 %v4718_v49, %v1518_v48 }
 0xe2d   :  { %v1521_v51 = vpop.f32.mrf.mxu1 }
 0xe2e   :  { %v1522_v52 = vadd.f32 %v4718_v49, %v1521_v51  ;;  %4372 = vmatmul.msk.f32.gmra.mxu2 %vm86_vm0, %v5082_v9  ;;  %v4399_v49 = vld [vmem:[%s6590_s8 + $0x178] sm:$0xff]  ;;  %v4398_v51 = vld [vmem:[%s6590_s8 + $0x170] sm:$0xff] }
 0xe30   :  { %4373 = vmatpush.xpose.msk.msrb.mxu3 %vm182_vm1, %v1522_v52  ;;  %v4397_v52 = vld [vmem:[%s6590_s8 + $0x168] sm:$0xff] }
 0xe34   :  { %4374 = vmatpush.xpose.msk.msrb.mxu3 %vm182_vm1, %v1519_v56 }
 0xe36   :  { %4387 = vmatmul.msk.f32.vlgmr.msra.gmra.mxu2 %vm86_vm0, %v5453_v50 }
 0xe37   :  { %4375 = vmatmul.msk.f32.vlgmr.msrb.gmra.mxu3 %vm182_vm1, %v1486_v57 }
 0xe38   :  { %1731 = vmatpush.msra.mxu3 %v4392_v10 }
 0xe3a   :  { %1732 = vmatpush.msra.mxu3 %v4391_v12 }
 0xe3c   :  { %1733 = vmatpush.msra.mxu3 %v4390_v16 }
 0xe3e   :  { %4388 = vmatmul.msk.f32.gmra.mxu2 %vm86_vm0, %v5459_v55  ;;  %1734 = vmatpush.msra.mxu3 %v4389_v17 }
 0xe3f   :  { %4376 = vmatmul.msk.f32.gmra.mxu3 %vm182_vm1, %v1489_v22 }
 0xe47   :  { %4394 = vmatmul.msk.f32.vlgmr.msra.gmra.mxu3 %vm86_vm0, %v5090_v13 }
 0xe4f   :  { %4395 = vmatmul.msk.f32.gmra.mxu3 %vm86_vm0, %v5082_v9 }
 0xe99   :  { %v5649_v58 = vpop.f32.mrf.mxu2 }
 0xe9a   :  { %v1453_v29 = vadd.f32 %v5653_v60, %v5649_v58 }
 0xea1   :  { %v5651_v59 = vpop.f32.mrf.mxu2 }
 0xea9   :  { %v1551_v61 = vpop.f32.mrf.mxu2 }
 0xeaa   :  { %v1552_v63 = vadd.f32 %v4719_v15, %v1551_v61 }
 0xeb1   :  { %v1554_v26 = vpop.f32.mrf.mxu2 }
 0xeb2   :  { %v1555_v0 = vadd.f32 %v4719_v15, %v1554_v26 }
 0xeb4   :  { %1634 = vmatpush.msra.mxu0 %v1555_v0  ;;  %v4722_v0 = vld [vmem:[%s6591_s9 + $0xb] ss:$0 sm:$0xff] }
 0xeb6   :  { %1635 = vmatpush.msra.mxu0 %v1552_v63 }
 0xeb8   :  { %1764 = vmatpush.msrb.mxu0 %v4399_v49 }
 0xeb9   :  { %v1703_v44 = vpop.f32.mrf.mxu2 }
 0xeba   :  { %v1586_v1 = vpop.f32.mrf.mxu3  ;;  %v1704_v46 = vadd.f32 %v4720_v45, %v1703_v44  ;;  %1765 = vmatpush.msrb.mxu0 %v4398_v51  ;;  %v1962_v51 = vld [vmem:[%s6596_s14 + $0x10] sm:$0xff] }
 0xebb   :  { %v1587_v3 = vadd.f32 %v1586_v1, %v5506_v7 }
 0xebc   :  { %1766 = vmatpush.msrb.mxu0 %v4397_v52  ;;  %v1961_v52 = vld [vmem:[%s6596_s14 + $0x8] sm:$0xff] }
 0xebd   :  { %v1592_v4 = vsel %vm218_vm2, %v1587_v3, -inf }
 0xebe   :  { %1593 = vmax.xlane.f32.xlu1 %v1592_v4  ;;  %1767 = vmatpush.msrb.mxu0 %v4396_v54 }
 0xec1   :  { %v1706_v47 = vpop.f32.mrf.mxu2 }
 0xec2   :  { %v1589_v5 = vpop.f32.mrf.mxu3  ;;  %v1707_v48 = vadd.f32 %v4720_v45, %v1706_v47 }
 0xec3   :  { %v1590_v6 = vadd.f32 %v1589_v5, %v5515_v14 }
 0xec5   :  { %v1595_v8 = vsel %vm218_vm2, %v1590_v6, -inf }
 0xec6   :  { %1596 = vmax.xlane.f32.xlu2 %v1595_v8 }
 0xeca   :  { %v1736_v38 = vpop.f32.mrf.mxu3 }
 0xecb   :  { %v1737_v39 = vadd.f32 %v4721_v31, %v1736_v38  ;;  %v4723_v38 = vld [vmem:[%s6593_s11] ss:$0 sm:$0xff] }
 0xed2   :  { %v1739_v36 = vpop.f32.mrf.mxu3 }
 0xed3   :  { %v1740_v37 = vadd.f32 %v4721_v31, %v1739_v36 }
 0xed5   :  { %4403 = vmatpush.xpose.msk.msra.mxu1 %vm182_vm1, %v1740_v37 }
 0xed9   :  { %4404 = vmatpush.xpose.msk.msra.mxu1 %vm182_vm1, %v1737_v39 }
 0xf31   :  { %v1594_v18 = vpop.xlane.xlu1 %1593 }
 0xf32   :  { %v1598_v19 = vsub.f32 %v1587_v3, %v1594_v18 }
 0xf34   :  { %v1600_v20 = vmul.f32 1.442695, %v1598_v19  ;;  %v4409_v19 = vld [vmem:[%s6592_s10 + $0x18] sm:$0xff] }
 0xf35   :  { %1884 = vmatpush.msrb.mxu3 %v4409_v19  ;;  %v4725_v19 = vld [vmem:[%s6595_s13 + $0x1] ss:$0 sm:$0xff] }
 0xf36   :  { %4819 = vpow2.f32 %v1600_v20 }
 0xf39   :  { %v1597_v21 = vpop.xlane.xlu2 %1596 }
 0xf3a   :  { %v1599_v23 = vsub.f32 %v1590_v6, %v1597_v21 }
 0xf3c   :  { %v4820_v24 = vpop.eup %4819  ;;  %v1602_v25 = vmul.f32 1.442695, %v1599_v23 }
 0xf3d   :  { %v1604_v27 = vsel %vm218_vm2, %v4820_v24, 0.0 }
 0xf3e   :  { %4821 = vpow2.f32 %v1602_v25  ;;  %1605 = vadd.xlane.f32.xlu0 %v1604_v27 }
 0xf44   :  { %v4822_v28 = vpop.eup %4821 }
 0xf45   :  { %v1607_v34 = vsel %vm218_vm2, %v4822_v28, 0.0 }
 0xf46   :  { %1608 = vadd.xlane.f32.xlu1 %v1607_v34 }
 0xfb1   :  { %v1606_v30 = vpop.xlane.xlu0 %1605 }
 0xfb2   :  { %4823 = vrcp.f32 %v1606_v30 }
 0xfb8   :  { %v4824_v32 = vpop.eup %4823 }
 0xfb9   :  { %v1612_v33 = vmul.f32 %v4824_v32, %v4820_v24  ;;  %v1609_v35 = vpop.xlane.xlu1 %1608 }
 0xfba   :  { %4825 = vrcp.f32 %v1609_v35  ;;  %v1456_v35 = vadd.f32 %v5658_v62, %v5651_v59 }
 0xfbb   :  { %4377 = vmatmul.msk.f32.vlgmr.msra.gmra.mxu0 %vm218_vm2, %v1612_v33 }
 0xfc0   :  { %v4826_v40 = vpop.eup %4825 }
 0xfc1   :  { %v1613_v41 = vmul.f32 %v4826_v40, %v4822_v28 }
 0xfc3   :  { %4378 = vmatmul.msk.f32.gmra.mxu0 %vm218_vm2, %v1613_v41 }
 0xfcb   :  { %4401 = vmatmul.msk.f32.vlgmr.msrb.gmra.mxu0 %vm86_vm0, %v5090_v13 }
 0xfd3   :  { %4402 = vmatmul.msk.f32.gmra.mxu0 %vm86_vm0, %v5082_v9 }
0x1038   :  { %v1637_v42 = vpop.f32.mrf.mxu0 }
0x1039   :  { %4380 = vmatmul.msk.f32.vlgmr.msrb.gmra.mxu1 %vm182_vm1, %v1637_v42 }
0x1040   :  { %v1640_v43 = vpop.f32.mrf.mxu0 }
0x1041   :  { %4381 = vmatmul.msk.f32.gmra.mxu1 %vm182_vm1, %v1640_v43 }
0x1048   :  { %v1769_v63 = vpop.f32.mrf.mxu0 }
0x1049   :  { %4405 = vmatmul.msk.f32.vlgmr.msra.gmra.mxu1 %vm182_vm1, %v1704_v46  ;;  %v1770_v6 = vadd.f32 %v4722_v0, %v1769_v63  ;;  %v2003_v63 = vld [vmem:[%s6598_s16 + $0x20] sm:$0xff] }
0x1050   :  { %v1772_v4 = vpop.f32.mrf.mxu0 }
0x1051   :  { %4406 = vmatmul.msk.f32.gmra.mxu1 %vm182_vm1, %v1707_v48 }
0x10b6   :  { %v1668_v53 = vpop.f32.mrf.mxu1 }
0x10b7   :  { %v1674_v30 = vadd.f32 %v1668_v53, %v1453_v29  ;;  %v1960_v53 = vld [vmem:[%s6596_s14] sm:$0xff] }
0x10be   :  { %v1671_v56 = vpop.f32.mrf.mxu1 }
0x10bf   :  { %v1675_v37 = vadd.f32 %v1671_v56, %v1456_v35 }
0x10c6   :  { %v1804_v57 = vpop.f32.mrf.mxu1 }
0x10c7   :  { %v1805_v11 = vadd.f32 %v1804_v57, %v5506_v7  ;;  %v1773_v7 = vadd.f32 %v4722_v0, %v1772_v4 }
0x10c9   :  { %v1810_v22 = vsel %vm218_vm2, %v1805_v11, -inf  ;;  %1852 = vmatpush.msrb.mxu2 %v1773_v7 }
0x10ca   :  { %1811 = vmax.xlane.f32.xlu2 %v1810_v22  ;;  %v2005_v22 = vld [vmem:[%s6598_s16 + $0x30] sm:$0xff] }
0x10cb   :  { %1853 = vmatpush.msrb.mxu2 %v1770_v6 }
0x10ce   :  { %v1807_v61 = vpop.f32.mrf.mxu1 }
0x10cf   :  { %v1808_v15 = vadd.f32 %v1807_v61, %v5515_v14  ;;  %v2004_v61 = vld [vmem:[%s6598_s16 + $0x28] sm:$0xff] }
0x10d1   :  { %v1813_v26 = vsel %vm218_vm2, %v1808_v15, -inf }
0x10d2   :  { %1814 = vmax.xlane.f32.xlu0 %v1813_v26 }
0x113d   :  { %v1812_v1 = vpop.xlane.xlu2 %1811 }
0x113e   :  { %v1816_v3 = vsub.f32 %v1805_v11, %v1812_v1  ;;  %v2006_v11 = vld [vmem:[%s6598_s16 + $0x38] sm:$0xff] }
0x113f   :  { %2026 = vmatpush.msrb.mxu1 %v2006_v11  ;;  %v4437_v11 = vld [vmem:[%s6613_s23 + $0x298] sm:$0xff] }
0x1140   :  { %v1818_v5 = vmul.f32 1.442695, %v1816_v3  ;;  %v2002_v3 = vld [vmem:[%s6598_s16 + $0x18] sm:$0xff] }
0x1141   :  { %2027 = vmatpush.msrb.mxu1 %v2005_v22  ;;  %v4422_v22 = vld [vmem:[%s6613_s23 + $0x190] sm:$0xff] }
0x1142   :  { %4827 = vpow2.f32 %v1818_v5 }
0x1143   :  { %2028 = vmatpush.msrb.mxu1 %v2004_v61  ;;  %v4429_v61 = vld [vmem:[%s6613_s23 + $0x210] sm:$0xff] }
0x1145   :  { %v1815_v8 = vpop.xlane.xlu0 %1814  ;;  %2029 = vmatpush.msrb.mxu1 %v2003_v63  ;;  %v4428_v63 = vld [vmem:[%s6613_s23 + $0x208] sm:$0xff] }
0x1146   :  { %v1817_v10 = vsub.f32 %v1808_v15, %v1815_v8 }
0x1147   :  { %2030 = vmatpush.msrb.mxu1 %v2002_v3  ;;  %v4427_v3 = vld [vmem:[%s6613_s23 + $0x200] sm:$0xff] }
0x1148   :  { %v4828_v14 = vpop.eup %4827  ;;  %v1820_v12 = vmul.f32 1.442695, %v1817_v10 }
0x1149   :  { %v1822_v16 = vsel %vm218_vm2, %v4828_v14, 0.0 }
0x114a   :  { %4829 = vpow2.f32 %v1820_v12  ;;  %1823 = vadd.xlane.f32.xlu1 %v1822_v16  ;;  %v4724_v12 = vld [vmem:[%s6594_s12 + $0x1] ss:$0 sm:$0xff] }
0x1150   :  { %v4830_v17 = vpop.eup %4829 }
0x1151   :  { %v1825_v18 = vsel %vm218_vm2, %v4830_v17, 0.0 }
0x1152   :  { %1826 = vadd.xlane.f32.xlu2 %v1825_v18 }
0x11bd   :  { %v1824_v20 = vpop.xlane.xlu1 %1823 }
0x11be   :  { %4831 = vrcp.f32 %v1824_v20 }
0x11c4   :  { %v4832_v21 = vpop.eup %4831 }
0x11c5   :  { %v1830_v23 = vmul.f32 %v4832_v21, %v4828_v14  ;;  %v1827_v24 = vpop.xlane.xlu2 %1826 }
0x11c6   :  { %4833 = vrcp.f32 %v1827_v24 }
0x11c7   :  { %4407 = vmatmul.msk.f32.vlgmr.msrb.gmra.mxu2 %vm218_vm2, %v1830_v23 }
0x11cc   :  { %v4834_v25 = vpop.eup %4833 }
0x11cd   :  { %v1831_v27 = vmul.f32 %v4834_v25, %v4830_v17 }
0x11cf   :  { %4408 = vmatmul.msk.f32.gmra.mxu2 %vm218_vm2, %v1831_v27 }
0x124a   :  { %v1855_v28 = vpop.f32.mrf.mxu2 }
0x124b   :  { %4410 = vmatmul.msk.f32.vlgmr.msrb.gmra.mxu3 %vm182_vm1, %v1855_v28 }
0x1252   :  { %v1858_v34 = vpop.f32.mrf.mxu2 }
0x1253   :  { %4411 = vmatmul.msk.f32.gmra.mxu3 %vm182_vm1, %v1858_v34 }
0x12ce   :  { %v1886_v31 = vpop.f32.mrf.mxu3 }
0x12cf   :  { %v1892_v32 = vadd.f32 %v1886_v31, %v1674_v30  ;;  %v2001_v30 = vld [vmem:[%s6598_s16 + $0x10] sm:$0xff]  ;;  %v1999_v31 = vld [vmem:[%s6598_s16] sm:$0xff] }
0x12d0   :  { %2031 = vmatpush.msrb.mxu1 %v2001_v30 }
0x12d1   :  { %v1898_v33 = vadd.f32 %v4723_v38, %v1892_v32  ;;  %v4726_v32 = vld [vmem:[%s6597_s15] ss:$0 sm:$0xff] }
0x12d3   :  { %v1900_v36 = vadd.f32 %v1898_v33, %v5453_v50 }
0x12d5   :  { %v1906_v39 = vsel %vm86_vm0, %v1900_v36, 0.0 }
0x12d6   :  { %1907 = vadd.xlane.f32.xlu0 %v1906_v39  ;;  %v1889_v40 = vpop.f32.mrf.mxu3 }
0x12d7   :  { %v1893_v41 = vadd.f32 %v1889_v40, %v1675_v37 }
0x12d9   :  { %v1899_v58 = vadd.f32 %v4723_v38, %v1893_v41  ;;  %v2000_v38 = vld [vmem:[%s6598_s16 + $0x8] sm:$0xff]  ;;  %v4727_v41 = vld [vmem:[%s6599_s17] ss:$0 sm:$0xff] }
0x12da   :  { %2032 = vmatpush.msrb.mxu1 %v2000_v38 }
0x12db   :  { %v1901_v60 = vadd.f32 %v1899_v58, %v5459_v55  ;;  %v1963_v55 = vld [vmem:[%s6596_s14 + $0x18] sm:$0xff] }
0x12dc   :  { %1986 = vmatpush.msra.mxu0 %v1963_v55  ;;  %2033 = vmatpush.msrb.mxu1 %v1999_v31  ;;  %v4728_v31 = vld [vmem:[%s6594_s12 + $0x2] ss:$0 sm:$0xff] }
0x12dd   :  { %v1909_v42 = vsel %vm86_vm0, %v1901_v60, 0.0 }
0x12de   :  { %1910 = vadd.xlane.f32.xlu1 %v1909_v42  ;;  %1987 = vmatpush.msra.mxu0 %v1962_v51 }
0x12e0   :  { %1988 = vmatpush.msra.mxu0 %v1961_v52 }
0x12e2   :  { %1989 = vmatpush.msra.mxu0 %v1960_v53 }
0x12e4   :  { %2195 = vmatpush.msrb.mxu0 %v4437_v11  ;;  %v4464_v11 = vld [vmem:[%s6613_s23 + $0x2b0] sm:$0xff] }
0x1349   :  { %v1908_v43 = vpop.xlane.xlu0 %1907 }
0x134a   :  { %v1912_v44 = vmul.f32 %v1908_v43, %v5408_v2 }
0x134c   :  { %v1914_v45 = vsub.f32 %v1900_v36, %v1912_v44 }
0x134e   :  { %v1916_v46 = vmul.f32 %v1914_v45, %v1914_v45 }
0x1350   :  { %v1918_v59 = vsel %vm86_vm0, %v1916_v46, 0.0 }
0x1351   :  { %1919 = vadd.xlane.f32.xlu2 %v1918_v59  ;;  %v1911_v50 = vpop.xlane.xlu1 %1910 }
0x1352   :  { %v1913_v62 = vmul.f32 %v1911_v50, %v5408_v2 }
0x1354   :  { %v1915_v47 = vsub.f32 %v1901_v60, %v1913_v62 }
0x1356   :  { %v1917_v48 = vmul.f32 %v1915_v47, %v1915_v47 }
0x1358   :  { %v1921_v49 = vsel %vm86_vm0, %v1917_v48, 0.0 }
0x1359   :  { %1922 = vadd.xlane.f32.xlu0 %v1921_v49 }
0x13c4   :  { %v1920_v54 = vpop.xlane.xlu2 %1919 }
0x13c5   :  { %v1924_v56 = vmul.f32 %v1920_v54, %v5408_v2 }
0x13c7   :  { %v1926_v57 = vadd.f32 1e-05, %v1924_v56  ;;  %v4423_v56 = vld [vmem:[%s6613_s23 + $0x198] sm:$0xff] }
0x13c8   :  { %2129 = vmatpush.msra.mxu2 %v4423_v56  ;;  %v4465_v56 = vld [vmem:[%s6613_s23 + $0x2b8] sm:$0xff] }
0x13c9   :  { %4835 = vrsqrt.f32 %v1926_v57  ;;  %vm1934_vm11 = vweird.f32 %v1926_v57 }
0x13ca   :  { %2130 = vmatpush.msra.mxu2 %v4422_v22  ;;  %v4733_v22 = vld [vmem:[%s6587_s5 + $0x11] ss:$0 sm:$0xff] }
0x13cc   :  { %v1923_v15 = vpop.xlane.xlu0 %1922 }
0x13cd   :  { %v1925_v26 = vmul.f32 %v1923_v15, %v5408_v2  ;;  %v4436_v15 = vld [vmem:[%s6613_s23 + $0x290] sm:$0xff] }
0x13ce   :  { %2196 = vmatpush.msrb.mxu0 %v4436_v15 }
0x13cf   :  { %v4836_v0 = vpop.eup %4835  ;;  %v1927_v1 = vadd.f32 1e-05, %v1925_v26  ;;  %v4421_v26 = vld [vmem:[%s6613_s23 + $0x188] sm:$0xff] }
0x13d0   :  { %v1929_v4 = vmul.f32 %v4836_v0, %v1926_v57  ;;  %vm1935_vm10 = vweird.f32 %v4836_v0  ;;  %v4430_v57 = vld [vmem:[%s6613_s23 + $0x218] sm:$0xff]  ;;  %2131 = vmatpush.msra.mxu2 %v4421_v26 }
0x13d1   :  { %4837 = vrsqrt.f32 %v1927_v1  ;;  %vm1936_vm12 = vmor %vm1934_vm11, %vm1935_vm10  ;;  %vm1944_vm14 = vweird.f32 %v1927_v1  ;;  %2162 = vmatpush.msra.mxu3 %v4430_v57 }
0x13d2   :  { %v1930_v5 = vmul.f32 %v4836_v0, %v1929_v4  ;;  %v4434_v4 = vld [vmem:[%s6613_s23 + $0x280] sm:$0xff] }
0x13d3   :  { %2163 = vmatpush.msra.mxu3 %v4429_v61  ;;  %v4463_v61 = vld [vmem:[%s6613_s23 + $0x2a8] sm:$0xff] }
0x13d4   :  { %v1931_v6 = vmul.f32 0.5, %v1930_v5 }
0x13d5   :  { %2164 = vmatpush.msra.mxu3 %v4428_v63  ;;  %v4462_v63 = vld [vmem:[%s6613_s23 + $0x2a0] sm:$0xff] }
0x13d6   :  { %v1932_v7 = vsub.f32 1.5, %v1931_v6 }
0x13d7   :  { %v4838_v8 = vpop.eup %4837  ;;  %2165 = vmatpush.msra.mxu3 %v4427_v3 }
0x13d8   :  { %v1933_v10 = vmul.f32 %v4836_v0, %v1932_v7  ;;  %v1939_v14 = vmul.f32 %v4838_v8, %v1927_v1  ;;  %vm1945_vm13 = vweird.f32 %v4838_v8  ;;  %v4420_v1 = vld [vmem:[%s6613_s23 + $0x180] sm:$0xff] }
0x13d9   :  { %vm1946_vm15 = vmor %vm1944_vm14, %vm1945_vm13  ;;  %2132 = vmatpush.msra.mxu2 %v4420_v1 }
0x13da   :  { %v1937_v16 = vsel %vm1936_vm12, %v4836_v0, %v1933_v10  ;;  %v1940_v17 = vmul.f32 %v4838_v8, %v1939_v14  ;;  %v4435_v0 = vld [vmem:[%s6613_s23 + $0x288] sm:$0xff]  ;;  %v4458_v10 = vld [vmem:[%s6613_s23 + $0x238] sm:$0xff]  ;;  %v4450_v14 = vld [vmem:[%s6613_s23 + $0x1b0] sm:$0xff] }
0x13db   :  { %v1948_v18 = vmul.f32 %v1937_v16, %v1914_v45  ;;  %2197 = vmatpush.msrb.mxu0 %v4435_v0 }
0x13dc   :  { %v1941_v20 = vmul.f32 0.5, %v1940_v17  ;;  %v4449_v17 = vld [vmem:[%s6613_s23 + $0x1a8] sm:$0xff] }
0x13dd   :  { %v1953_v21 = vmul.f32 %v4724_v12, %v1948_v18  ;;  %2198 = vmatpush.msrb.mxu0 %v4434_v4  ;;  %v4456_v18 = vld [vmem:[%s6613_s23 + $0x228] sm:$0xff] }
0x13de   :  { %v1942_v23 = vsub.f32 1.5, %v1941_v20  ;;  %v4448_v20 = vld [vmem:[%s6613_s23 + $0x1a0] sm:$0xff] }
0x13df   :  { %v1958_v24 = vadd.f32 %v4725_v19, %v1953_v21  ;;  %v4455_v21 = vld [vmem:[%s6613_s23 + $0x220] sm:$0xff] }
0x13e0   :  { %v1943_v25 = vmul.f32 %v4838_v8, %v1942_v23 }
0x13e1   :  { %4414 = vmatmul.msk.f32.vlgmr.msra.gmra.mxu0 %vm86_vm0, %v1958_v24 }
0x13e2   :  { %v1947_v27 = vsel %vm1946_vm15, %v4838_v8, %v1943_v25  ;;  %v4451_v8 = vld [vmem:[%s6613_s23 + $0x1b8] sm:$0xff]  ;;  %2349 = vmatpush.msra.mxu0 %v4458_v10  ;;  %v5952_v10 = vld [vmem:[%s6616_s27 + $0x8] sm:$0xff] }
0x13e3   :  { %v1949_v28 = vmul.f32 %v1947_v27, %v1915_v47  ;;  %2316 = vmatpush.msrb.mxu3 %v4451_v8 }
0x13e5   :  { %v1954_v34 = vmul.f32 %v4724_v12, %v1949_v28  ;;  %v4457_v12 = vld [vmem:[%s6613_s23 + $0x230] sm:$0xff]  ;;  %2317 = vmatpush.msrb.mxu3 %v4450_v14 }
0x13e6   :  { %2350 = vmatpush.msra.mxu0 %v4457_v12 }
0x13e7   :  { %v1959_v29 = vadd.f32 %v4725_v19, %v1954_v34  ;;  %2318 = vmatpush.msrb.mxu3 %v4449_v17  ;;  %v4735_v17 = vld [vmem:[%s6587_s5 + $0x15] ss:$0 sm:$0xff] }
0x13e8   :  { %2351 = vmatpush.msra.mxu0 %v4456_v18 }
0x13e9   :  { %4415 = vmatmul.msk.f32.gmra.mxu0 %vm86_vm0, %v1959_v29  ;;  %2319 = vmatpush.msrb.mxu3 %v4448_v20 }
0x13ea   :  { %2352 = vmatpush.msra.mxu0 %v4455_v21 }
0x145e   :  { %v1991_v33 = vpop.f32.mrf.mxu0 }
0x145f   :  { %v1992_v35 = vadd.f32 %v4726_v32, %v1991_v33 }
0x1461   :  { %v1997_v36 = vmax.f32 %v1992_v35, 0.0  ;;  %v4729_v35 = vld [vmem:[%s6595_s13 + $0x2] ss:$0 sm:$0xff] }
0x1463   :  { %4416 = vmatmul.msk.f32.vlgmr.msrb.gmra.mxu1 %vm2011_vm3, %v1997_v36 }
0x1466   :  { %v1994_v37 = vpop.f32.mrf.mxu0 }
0x1467   :  { %v1995_v39 = vadd.f32 %v4726_v32, %v1994_v37 }
0x1469   :  { %v1998_v40 = vmax.f32 %v1995_v39, 0.0 }
0x146b   :  { %4417 = vmatmul.msk.f32.gmra.mxu1 %vm2011_vm3, %v1998_v40 }
0x14e0   :  { %v2035_v58 = vpop.f32.mrf.mxu1 }
0x14e1   :  { %v2036_v60 = vadd.f32 %v4727_v41, %v2035_v58 }
0x14e3   :  { %v2041_v42 = vadd.f32 %v2036_v60, %v1958_v24 }
0x14e5   :  { %v2047_v43 = vsel %vm86_vm0, %v2041_v42, 0.0 }
0x14e6   :  { %2048 = vadd.xlane.f32.xlu1 %v2047_v43 }
0x14e8   :  { %v2038_v44 = vpop.f32.mrf.mxu1 }
0x14e9   :  { %v2039_v45 = vadd.f32 %v4727_v41, %v2038_v44 }
0x14eb   :  { %v2042_v46 = vadd.f32 %v2039_v45, %v1959_v29 }
0x14ed   :  { %v2050_v59 = vsel %vm86_vm0, %v2042_v46, 0.0 }
0x14ee   :  { %2051 = vadd.xlane.f32.xlu2 %v2050_v59  ;;  %v4730_v59 = vld [vmem:[%s6587_s5 + $0x14] ss:$0 sm:$0xff] }
0x1559   :  { %v2049_v50 = vpop.xlane.xlu1 %2048 }
0x155a   :  { %v2053_v62 = vmul.f32 %v2049_v50, %v5408_v2 }
0x155c   :  { %v5803_v47 = vsub.f32 %v2041_v42, %v2053_v62 }
0x155e   :  { %v2057_v48 = vmul.f32 %v5803_v47, %v5803_v47 }
0x1560   :  { %v2059_v49 = vsel %vm86_vm0, %v2057_v48, 0.0  ;;  %v4732_v48 = vld [vmem:[%s6587_s5 + $0x10] ss:$0 sm:$0xff] }
0x1561   :  { %v2052_v55 = vpop.xlane.xlu2 %2051  ;;  %2060 = vadd.xlane.f32.xlu0 %v2059_v49 }
0x1562   :  { %v2054_v51 = vmul.f32 %v2052_v55, %v5408_v2 }
0x1564   :  { %v5809_v52 = vsub.f32 %v2042_v46, %v2054_v51 }
0x1566   :  { %v2058_v53 = vmul.f32 %v5809_v52, %v5809_v52 }
0x1568   :  { %v2062_v54 = vsel %vm86_vm0, %v2058_v53, 0.0  ;;  %v4731_v53 = vld [vmem:[%s6587_s5 + $0xc] ss:$0 sm:$0xff] }
0x1569   :  { %2063 = vadd.xlane.f32.xlu1 %v2062_v54 }
0x15d4   :  { %v2061_v5 = vpop.xlane.xlu0 %2060 }
0x15d5   :  { %v2065_v6 = vmul.f32 %v2061_v5, %v5408_v2  ;;  %v5945_v5 = vld [vmem:[%s6616_s27] sm:$0xff] }
0x15d7   :  { %v2067_v7 = vadd.f32 1e-05, %v2065_v6 }
0x15d9   :  { %4839 = vrsqrt.f32 %v2067_v7  ;;  %vm2075_vm5 = vweird.f32 %v2067_v7 }
0x15dc   :  { %v2064_v16 = vpop.xlane.xlu1 %2063 }
0x15dd   :  { %v2066_v19 = vmul.f32 %v2064_v16, %v5408_v2 }
0x15df   :  { %v4840_v23 = vpop.eup %4839  ;;  %v2068_v24 = vadd.f32 1e-05, %v2066_v19 }
0x15e0   :  { %v2070_v25 = vmul.f32 %v4840_v23, %v2067_v7  ;;  %vm2076_vm4 = vweird.f32 %v4840_v23 }
0x15e1   :  { %4841 = vrsqrt.f32 %v2068_v24  ;;  %vm2077_vm6 = vmor %vm2075_vm5, %vm2076_vm4  ;;  %vm2085_vm8 = vweird.f32 %v2068_v24 }
0x15e2   :  { %v2071_v27 = vmul.f32 %v4840_v23, %v2070_v25 }
0x15e4   :  { %v2072_v28 = vmul.f32 0.5, %v2071_v27 }
0x15e6   :  { %v2073_v34 = vsub.f32 1.5, %v2072_v28 }
0x15e7   :  { %v4842_v29 = vpop.eup %4841 }
0x15e8   :  { %v2074_v30 = vmul.f32 %v4840_v23, %v2073_v34  ;;  %v2080_v38 = vmul.f32 %v4842_v29, %v2068_v24  ;;  %vm2086_vm7 = vweird.f32 %v4842_v29 }
0x15e9   :  { %vm2087_vm9 = vmor %vm2085_vm8, %vm2086_vm7 }
0x15ea   :  { %v2078_v32 = vsel %vm2077_vm6, %v4840_v23, %v2074_v30  ;;  %v2081_v33 = vmul.f32 %v4842_v29, %v2080_v38 }
0x15eb   :  { %v2089_v36 = vmul.f32 %v2078_v32, %v5803_v47 }
0x15ec   :  { %v2082_v37 = vmul.f32 0.5, %v2081_v33 }
0x15ed   :  { %v2094_v39 = vmul.f32 %v4728_v31, %v2089_v36  ;;  %v4483_v36 = vld [vmem:[%s6613_s23 + $0x1d8] sm:$0xff] }
0x15ee   :  { %v2083_v40 = vsub.f32 1.5, %v2082_v37  ;;  %v4482_v37 = vld [vmem:[%s6613_s23 + $0x1d0] sm:$0xff] }
0x15ef   :  { %v5883_v41 = vadd.f32 %v4729_v35, %v2094_v39  ;;  %v4481_v39 = vld [vmem:[%s6613_s23 + $0x1c8] sm:$0xff] }
0x15f0   :  { %v2084_v58 = vmul.f32 %v4842_v29, %v2083_v40  ;;  %v4480_v40 = vld [vmem:[%s6613_s23 + $0x1c0] sm:$0xff] }
0x15f1   :  { %4425 = vmatmul.msk.f32.vlgmr.msra.gmra.mxu2 %vm86_vm0, %v5883_v41  ;;  %4432 = vmatmul.msk.f32.vlgmr.msra.gmra.mxu3 %vm86_vm0, %v5883_v41 }
0x15f2   :  { %v2088_v60 = vsel %vm2087_vm9, %v4842_v29, %v2084_v58  ;;  %4439 = vmatmul.msk.f32.vlgmr.msrb.gmra.mxu0 %vm86_vm0, %v5883_v41 }
0x15f3   :  { %v2090_v42 = vmul.f32 %v2088_v60, %v5809_v52 }
0x15f5   :  { %v2095_v43 = vmul.f32 %v4728_v31, %v2090_v42 }
0x15f7   :  { %v5892_v44 = vadd.f32 %v4729_v35, %v2095_v43  ;;  %v4734_v43 = vld [vmem:[%s6587_s5 + $0xd] ss:$0 sm:$0xff] }
0x15f9   :  { %4426 = vmatmul.msk.f32.gmra.mxu2 %vm86_vm0, %v5892_v44  ;;  %4433 = vmatmul.msk.f32.gmra.mxu3 %vm86_vm0, %v5892_v44 }
0x15fa   :  { %4440 = vmatmul.msk.f32.gmra.mxu0 %vm86_vm0, %v5892_v44 }
0x1601   :  { %4453 = vmatmul.msk.f32.vlgmr.msrb.gmra.mxu3 %vm86_vm0, %v5883_v41 }
0x1602   :  { %4460 = vmatmul.msk.f32.vlgmr.msra.gmra.mxu0 %vm86_vm0, %v5883_v41 }
0x1609   :  { %4454 = vmatmul.msk.f32.gmra.mxu3 %vm86_vm0, %v5892_v44 }
0x160a   :  { %4461 = vmatmul.msk.f32.gmra.mxu0 %vm86_vm0, %v5892_v44 }
0x166f   :  { %v2200_v45 = vpop.f32.mrf.mxu0 }
0x1670   :  { %v2201_v47 = vadd.f32 %v4730_v59, %v2200_v45 }
0x1674   :  { %v2167_v46 = vpop.f32.mrf.mxu3  ;;  %v2134_v51 = vpop.f32.mrf.mxu2 }
0x1675   :  { %v2168_v54 = vadd.f32 %v4732_v48, %v2167_v46  ;;  %v2135_v57 = vadd.f32 %v4731_v53, %v2134_v51 }
0x1677   :  { %v2203_v50 = vpop.f32.mrf.mxu0 }
0x1678   :  { %v2204_v62 = vadd.f32 %v4730_v59, %v2203_v50  ;;  %v4447_v50 = vld [vmem:[%s6588_s6 + $0x20] sm:$0xff] }
0x167a   :  { %2283 = vmatpush.msrb.mxu2 %v2204_v62 }
0x167c   :  { %2284 = vmatpush.msrb.mxu2 %v2201_v47  ;;  %v2170_v49 = vpop.f32.mrf.mxu3  ;;  %v2137_v0 = vpop.f32.mrf.mxu2 }
0x167d   :  { %v2171_v55 = vadd.f32 %v4732_v48, %v2170_v49  ;;  %v2138_v1 = vadd.f32 %v4731_v53, %v2137_v0 }
0x167f   :  { %v2354_v52 = vpop.f32.mrf.mxu0  ;;  %4441 = vmatpush.xpose.msk.msra.mxu1 %vm182_vm1, %v2171_v55 }
0x1680   :  { %v2355_v3 = vadd.f32 %v4733_v22, %v2354_v52 }
0x1683   :  { %4442 = vmatpush.xpose.msk.msra.mxu1 %vm182_vm1, %v2168_v54 }
0x1684   :  { %v2321_v42 = vpop.f32.mrf.mxu3 }
0x1685   :  { %v2322_v45 = vadd.f32 %v4734_v43, %v2321_v42 }
0x1686   :  { %4443 = vmatmul.msk.f32.vlgmr.msra.gmra.mxu1 %vm182_vm1, %v2135_v57 }
0x1687   :  { %2382 = vmatpush.msrb.mxu1 %v4465_v56  ;;  %v2357_v15 = vpop.f32.mrf.mxu0 }
0x1688   :  { %v2358_v26 = vadd.f32 %v4733_v22, %v2357_v15 }
0x1689   :  { %2383 = vmatpush.msrb.mxu1 %v4464_v11 }
0x168a   :  { %4469 = vmatpush.xpose.msk.msra.mxu2 %vm182_vm1, %v2358_v26 }
0x168b   :  { %2384 = vmatpush.msrb.mxu1 %v4463_v61 }
0x168c   :  { %v2324_v46 = vpop.f32.mrf.mxu3 }
0x168d   :  { %2385 = vmatpush.msrb.mxu1 %v4462_v63  ;;  %v2325_v59 = vadd.f32 %v4734_v43, %v2324_v46 }
0x168e   :  { %4470 = vmatpush.xpose.msk.msra.mxu2 %vm182_vm1, %v2355_v3  ;;  %4444 = vmatmul.msk.f32.gmra.mxu1 %vm182_vm1, %v2138_v1  ;;  %v4490_v1 = vld [vmem:[%s6613_s23 + $0x258] sm:$0xff]  ;;  %v4489_v3 = vld [vmem:[%s6613_s23 + $0x250] sm:$0xff] }
0x168f   :  { %2531 = vmatpush.msra.mxu1 %v4447_v50 }
0x1696   :  { %4467 = vmatmul.msk.f32.vlgmr.msrb.gmra.mxu1 %vm86_vm0, %v5883_v41 }
0x169e   :  { %4468 = vmatmul.msk.f32.gmra.mxu1 %vm86_vm0, %v5892_v44 }
0x1703   :  { %v2235_v4 = vpop.f32.mrf.mxu1 }
0x1704   :  { %v2236_v6 = vadd.f32 %v5945_v5, %v2235_v4  ;;  %v4488_v4 = vld [vmem:[%s6613_s23 + $0x248] sm:$0xff] }
0x1706   :  { %v2241_v7 = vsel %vm218_vm2, %v2236_v6, -inf }
0x1707   :  { %2242 = vmax.xlane.f32.xlu2 %v2241_v7 }
0x170b   :  { %v2238_v8 = vpop.f32.mrf.mxu1 }
0x170c   :  { %v2239_v14 = vadd.f32 %v5952_v10, %v2238_v8 }
0x170e   :  { %v2244_v12 = vsel %vm218_vm2, %v2239_v14, -inf }
0x170f   :  { %2245 = vmax.xlane.f32.xlu0 %v2244_v12 }
0x1713   :  { %v2387_v16 = vpop.f32.mrf.mxu1 }
0x1714   :  { %v2388_v20 = vadd.f32 %v4735_v17, %v2387_v16 }
0x171b   :  { %v2390_v18 = vpop.f32.mrf.mxu1 }
0x171c   :  { %v2391_v19 = vadd.f32 %v4735_v17, %v2390_v18  ;;  %v4475_v18 = vld [vmem:[%s6588_s6 + $0x28] sm:$0xff] }
0x171d   :  { %2502 = vmatpush.msrb.mxu0 %v4475_v18  ;;  %v4527_v18 = vld [vmem:[%s6613_s23 + $0x2f8] sm:$0xff] }
0x171e   :  { %2470 = vmatpush.msra.mxu3 %v2391_v19  ;;  %v4497_v19 = vld [vmem:[%s6613_s23 + $0x2d8] sm:$0xff] }
0x171f   :  { %2627 = vmatpush.msra.mxu0 %v4497_v19  ;;  %v4526_v19 = vld [vmem:[%s6613_s23 + $0x2f0] sm:$0xff] }
0x1720   :  { %2471 = vmatpush.msra.mxu3 %v2388_v20  ;;  %v4496_v20 = vld [vmem:[%s6613_s23 + $0x2d0] sm:$0xff] }
0x1721   :  { %2628 = vmatpush.msra.mxu0 %v4496_v20  ;;  %v4525_v20 = vld [vmem:[%s6613_s23 + $0x2e8] sm:$0xff] }
0x1722   :  { %2594 = vmatpush.msrb.mxu3 %v4490_v1 }
0x1724   :  { %2595 = vmatpush.msrb.mxu3 %v4489_v3 }
0x1726   :  { %2596 = vmatpush.msrb.mxu3 %v4488_v4 }
0x177a   :  { %v2243_v21 = vpop.xlane.xlu2 %2242 }
0x177b   :  { %v2247_v23 = vsub.f32 %v2236_v6, %v2243_v21  ;;  %v4487_v6 = vld [vmem:[%s6613_s23 + $0x240] sm:$0xff]  ;;  %v4495_v21 = vld [vmem:[%s6613_s23 + $0x2c8] sm:$0xff] }
0x177c   :  { %2597 = vmatpush.msrb.mxu3 %v4487_v6  ;;  %2629 = vmatpush.msra.mxu0 %v4495_v21  ;;  %v4524_v21 = vld [vmem:[%s6613_s23 + $0x2e0] sm:$0xff] }
0x177d   :  { %v2249_v24 = vmul.f32 1.442695, %v2247_v23  ;;  %v4494_v23 = vld [vmem:[%s6613_s23 + $0x2c0] sm:$0xff] }
0x177e   :  { %2630 = vmatpush.msra.mxu0 %v4494_v23 }
0x177f   :  { %4843 = vpow2.f32 %v2249_v24  ;;  %v4513_v24 = vld [vmem:[%s6613_s23 + $0x1f8] sm:$0xff] }
0x1782   :  { %v2246_v25 = vpop.xlane.xlu0 %2245 }
0x1783   :  { %v2248_v27 = vsub.f32 %v2239_v14, %v2246_v25 }
0x1785   :  { %v4844_v28 = vpop.eup %4843  ;;  %v2251_v34 = vmul.f32 1.442695, %v2248_v27  ;;  %v4512_v27 = vld [vmem:[%s6613_s23 + $0x1f0] sm:$0xff] }
0x1786   :  { %v2253_v29 = vsel %vm218_vm2, %v4844_v28, 0.0 }
0x1787   :  { %4845 = vpow2.f32 %v2251_v34  ;;  %2254 = vadd.xlane.f32.xlu1 %v2253_v29  ;;  %v4510_v34 = vld [vmem:[%s6613_s23 + $0x1e0] sm:$0xff] }
0x178d   :  { %v4846_v30 = vpop.eup %4845 }
0x178e   :  { %v2256_v38 = vsel %vm218_vm2, %v4846_v30, 0.0 }
0x178f   :  { %2257 = vadd.xlane.f32.xlu2 %v2256_v38  ;;  %v4737_v38 = vld [vmem:[%s6587_s5 + $0x12] ss:$0 sm:$0xff] }
0x17fa   :  { %v2255_v31 = vpop.xlane.xlu1 %2254 }
0x17fb   :  { %4847 = vrcp.f32 %v2255_v31 }
0x1801   :  { %v4848_v32 = vpop.eup %4847 }
0x1802   :  { %v2261_v33 = vmul.f32 %v4848_v32, %v4844_v28  ;;  %v2258_v35 = vpop.xlane.xlu2 %2257  ;;  %v4511_v28 = vld [vmem:[%s6613_s23 + $0x1e8] sm:$0xff] }
0x1803   :  { %4849 = vrcp.f32 %v2258_v35  ;;  %v4736_v35 = vld [vmem:[%s6587_s5 + $0xe] ss:$0 sm:$0xff] }
0x1804   :  { %4445 = vmatmul.msk.f32.vlgmr.msrb.gmra.mxu2 %vm218_vm2, %v2261_v33 }
0x1805   :  { %2561 = vmatpush.msrb.mxu2 %v4483_v36 }
0x1807   :  { %2562 = vmatpush.msrb.mxu2 %v4482_v37  ;;  %v4520_v37 = vld [vmem:[%s6613_s23 + $0x278] sm:$0xff] }
0x1809   :  { %v4850_v58 = vpop.eup %4849  ;;  %2563 = vmatpush.msrb.mxu2 %v4481_v39 }
0x180a   :  { %v2262_v60 = vmul.f32 %v4850_v58, %v4846_v30  ;;  %v4518_v58 = vld [vmem:[%s6613_s23 + $0x268] sm:$0xff] }
0x180b   :  { %2564 = vmatpush.msrb.mxu2 %v4480_v40  ;;  %v4519_v40 = vld [vmem:[%s6613_s23 + $0x270] sm:$0xff] }
0x180c   :  { %4446 = vmatmul.msk.f32.gmra.mxu2 %vm218_vm2, %v2262_v60  ;;  %v4517_v60 = vld [vmem:[%s6613_s23 + $0x260] sm:$0xff] }
0x1814   :  { %4471 = vmatmul.msk.f32.vlgmr.msra.gmra.mxu2 %vm182_vm1, %v2322_v45 }
0x181c   :  { %4472 = vmatmul.msk.f32.gmra.mxu2 %vm182_vm1, %v2325_v59 }
0x1824   :  { %4485 = vmatmul.msk.f32.vlgmr.msrb.gmra.mxu2 %vm86_vm0, %v5883_v41 }
0x182c   :  { %4486 = vmatmul.msk.f32.gmra.mxu2 %vm86_vm0, %v5892_v44 }
0x1887   :  { %v2286_v62 = vpop.f32.mrf.mxu2 }
0x1888   :  { %4478 = vmatmul.msk.f32.vlgmr.msra.gmra.mxu1 %vm182_vm1, %v2286_v62 }
0x188f   :  { %v2289_v47 = vpop.f32.mrf.mxu2 }
0x1890   :  { %4479 = vmatmul.msk.f32.gmra.mxu1 %vm182_vm1, %v2289_v47 }
0x1897   :  { %v2422_v48 = vpop.f32.mrf.mxu2 }
0x1898   :  { %v2423_v49 = vadd.f32 %v5945_v5, %v2422_v48  ;;  %v4738_v48 = vld [vmem:[%s6587_s5 + $0x16] ss:$0 sm:$0xff] }
0x189a   :  { %v2428_v55 = vsel %vm218_vm2, %v2423_v49, -inf }
0x189b   :  { %2429 = vmax.xlane.f32.xlu0 %v2428_v55 }
0x189f   :  { %v2425_v51 = vpop.f32.mrf.mxu2 }
0x18a0   :  { %v2426_v52 = vadd.f32 %v5952_v10, %v2425_v51  ;;  %v4507_v51 = vld [vmem:[%s6588_s6 + $0x30] sm:$0xff] }
0x18a2   :  { %v2431_v53 = vsel %vm218_vm2, %v2426_v52, -inf }
0x18a3   :  { %2432 = vmax.xlane.f32.xlu1 %v2431_v53 }
0x18a7   :  { %v2566_v33 = vpop.f32.mrf.mxu2 }
0x18a8   :  { %v2567_v39 = vadd.f32 %v4736_v35, %v2566_v33 }
0x18af   :  { %v2569_v42 = vpop.f32.mrf.mxu2 }
0x18b0   :  { %v2570_v43 = vadd.f32 %v4736_v35, %v2569_v42 }
0x1905   :  { %v6076_v45 = vpop.f32.mrf.mxu1 }
0x190d   :  { %v2536_v59 = vpop.f32.mrf.mxu1 }
0x190e   :  { %v2430_v54 = vpop.xlane.xlu0 %2429 }
0x190f   :  { %v2434_v56 = vsub.f32 %v2423_v49, %v2430_v54 }
0x1911   :  { %v2436_v57 = vmul.f32 1.442695, %v2434_v56 }
0x1913   :  { %4851 = vpow2.f32 %v2436_v57 }
0x1916   :  { %v2433_v11 = vpop.xlane.xlu1 %2432 }
0x1917   :  { %v2435_v22 = vsub.f32 %v2426_v52, %v2433_v11 }
0x1919   :  { %v4852_v61 = vpop.eup %4851  ;;  %v2438_v15 = vmul.f32 1.442695, %v2435_v22 }
0x191a   :  { %v2440_v26 = vsel %vm218_vm2, %v4852_v61, 0.0 }
0x191b   :  { %4853 = vpow2.f32 %v2438_v15  ;;  %2441 = vadd.xlane.f32.xlu2 %v2440_v26  ;;  %v4740_v15 = vld [vmem:[%s6587_s5 + $0x13] ss:$0 sm:$0xff] }
0x1921   :  { %v4854_v63 = vpop.eup %4853 }
0x1922   :  { %v2443_v0 = vsel %vm218_vm2, %v4854_v63, 0.0 }
0x1923   :  { %2444 = vadd.xlane.f32.xlu0 %v2443_v0 }
0x198e   :  { %v2442_v7 = vpop.xlane.xlu2 %2441 }
0x198f   :  { %4855 = vrcp.f32 %v2442_v7 }
0x1995   :  { %v4856_v8 = vpop.eup %4855 }
0x1996   :  { %v2448_v14 = vmul.f32 %v4856_v8, %v4852_v61  ;;  %v2445_v12 = vpop.xlane.xlu0 %2444 }
0x1997   :  { %4857 = vrcp.f32 %v2445_v12 }
0x1998   :  { %4473 = vmatmul.msk.f32.vlgmr.msra.gmra.mxu3 %vm218_vm2, %v2448_v14 }
0x1999   :  { %2747 = vmatpush.msra.mxu3 %v4507_v51 }
0x199d   :  { %v4858_v16 = vpop.eup %4857 }
0x199e   :  { %v2449_v17 = vmul.f32 %v4858_v16, %v4854_v63 }
0x19a0   :  { %4474 = vmatmul.msk.f32.gmra.mxu3 %vm218_vm2, %v2449_v17 }
0x19a8   :  { %4492 = vmatmul.msk.f32.vlgmr.msrb.gmra.mxu3 %vm86_vm0, %v5883_v41 }
0x19b0   :  { %4493 = vmatmul.msk.f32.gmra.mxu3 %vm86_vm0, %v5892_v44 }
0x1a1b   :  { %v2473_v25 = vpop.f32.mrf.mxu3 }
0x1a1c   :  { %4476 = vmatmul.msk.f32.vlgmr.msrb.gmra.mxu0 %vm182_vm1, %v2473_v25 }
0x1a1d   :  { %2779 = vmatpush.msrb.mxu0 %v4513_v24 }
0x1a1f   :  { %2780 = vmatpush.msrb.mxu0 %v4512_v27 }
0x1a21   :  { %2781 = vmatpush.msrb.mxu0 %v4511_v28 }
0x1a23   :  { %v2476_v29 = vpop.f32.mrf.mxu3  ;;  %2782 = vmatpush.msrb.mxu0 %v4510_v34 }
0x1a24   :  { %4477 = vmatmul.msk.f32.gmra.mxu0 %vm182_vm1, %v2476_v29 }
0x1a2b   :  { %v2599_v30 = vpop.f32.mrf.mxu3 }
0x1a2c   :  { %4499 = vmatmul.msk.f32.vlgmr.msra.gmra.mxu0 %vm86_vm0, %v5883_v41  ;;  %v2600_v36 = vadd.f32 %v4737_v38, %v2599_v30 }
0x1a33   :  { %v2602_v31 = vpop.f32.mrf.mxu3 }
0x1a34   :  { %v2603_v32 = vadd.f32 %v4737_v38, %v2602_v31  ;;  %4500 = vmatmul.msk.f32.gmra.mxu0 %vm86_vm0, %v5892_v44  ;;  %v4739_v31 = vld [vmem:[%s6587_s5 + $0xf] ss:$0 sm:$0xff] }
0x1a36   :  { %4501 = vmatpush.xpose.msk.msrb.mxu1 %vm182_vm1, %v2603_v32 }
0x1a3a   :  { %4502 = vmatpush.xpose.msk.msrb.mxu1 %vm182_vm1, %v2600_v36 }
0x1a3c   :  { %4515 = vmatmul.msk.f32.vlgmr.msrb.gmra.mxu0 %vm86_vm0, %v5883_v41 }
0x1a3d   :  { %4503 = vmatmul.msk.f32.vlgmr.msrb.gmra.mxu1 %vm182_vm1, %v2567_v39 }
0x1a3e   :  { %2812 = vmatpush.msra.mxu1 %v4520_v37  ;;  %v4741_v37 = vld [vmem:[%s6587_s5 + $0x17] ss:$0 sm:$0xff] }
0x1a40   :  { %2813 = vmatpush.msra.mxu1 %v4519_v40 }
0x1a42   :  { %2814 = vmatpush.msra.mxu1 %v4518_v58 }
0x1a44   :  { %2815 = vmatpush.msra.mxu1 %v4517_v60  ;;  %4516 = vmatmul.msk.f32.gmra.mxu0 %vm86_vm0, %v5892_v44 }
0x1a45   :  { %4504 = vmatmul.msk.f32.gmra.mxu1 %vm182_vm1, %v2570_v43 }
0x1a4d   :  { %4522 = vmatmul.msk.f32.vlgmr.msra.gmra.mxu1 %vm86_vm0, %v5883_v41 }
0x1a55   :  { %4523 = vmatmul.msk.f32.gmra.mxu1 %vm86_vm0, %v5892_v44 }
0x1a99   :  { %v6078_v46 = vpop.f32.mrf.mxu0 }
0x1a9a   :  { %v2534_v60 = vadd.f32 %v6076_v45, %v6078_v46 }
0x1aa1   :  { %v2507_v50 = vpop.f32.mrf.mxu0 }
0x1aa2   :  { %v6080_v62 = vadd.f32 %v2536_v59, %v2507_v50 }
0x1aa9   :  { %v2632_v47 = vpop.f32.mrf.mxu0 }
0x1aaa   :  { %v2633_v52 = vadd.f32 %v4738_v48, %v2632_v47 }
0x1ab1   :  { %v2635_v49 = vpop.f32.mrf.mxu0 }
0x1ab2   :  { %v2636_v55 = vadd.f32 %v4738_v48, %v2635_v49 }
0x1ab4   :  { %2715 = vmatpush.msra.mxu2 %v2636_v55 }
0x1ab6   :  { %2716 = vmatpush.msra.mxu2 %v2633_v52 }
0x1ab8   :  { %2845 = vmatpush.msrb.mxu2 %v4527_v18 }
0x1ab9   :  { %v2784_v38 = vpop.f32.mrf.mxu0 }
0x1aba   :  { %v2667_v53 = vpop.f32.mrf.mxu1  ;;  %2846 = vmatpush.msrb.mxu2 %v4526_v19  ;;  %v2785_v32 = vadd.f32 %v4739_v31, %v2784_v38 }
0x1abb   :  { %v2668_v54 = vadd.f32 %v5945_v5, %v2667_v53 }
0x1abc   :  { %2847 = vmatpush.msrb.mxu2 %v4525_v20 }
0x1abd   :  { %v2673_v56 = vsel %vm218_vm2, %v2668_v54, -inf }
0x1abe   :  { %2674 = vmax.xlane.f32.xlu1 %v2673_v56  ;;  %2848 = vmatpush.msrb.mxu2 %v4524_v21 }
0x1ac1   :  { %v2787_v35 = vpop.f32.mrf.mxu0 }
0x1ac2   :  { %v2670_v57 = vpop.f32.mrf.mxu1  ;;  %v2788_v36 = vadd.f32 %v4739_v31, %v2787_v35  ;;  %v4546_v35 = vld [vmem:[%s6590_s8 + $0x198] sm:$0xff] }
0x1ac3   :  { %v2671_v11 = vadd.f32 %v5952_v10, %v2670_v57 }
0x1ac5   :  { %v2676_v22 = vsel %vm218_vm2, %v2671_v11, -inf }
0x1ac6   :  { %2677 = vmax.xlane.f32.xlu2 %v2676_v22 }
0x1aca   :  { %v2817_v61 = vpop.f32.mrf.mxu1 }
0x1acb   :  { %v2818_v0 = vadd.f32 %v4740_v15, %v2817_v61 }
0x1ad2   :  { %v2820_v26 = vpop.f32.mrf.mxu1 }
0x1ad3   :  { %v2821_v63 = vadd.f32 %v4740_v15, %v2820_v26 }
0x1ad5   :  { %4531 = vmatpush.xpose.msk.msrb.mxu3 %vm182_vm1, %v2821_v63 }
0x1ad9   :  { %4532 = vmatpush.xpose.msk.msrb.mxu3 %vm182_vm1, %v2818_v0 }
0x1b31   :  { %v2675_v1 = vpop.xlane.xlu1 %2674 }
0x1b32   :  { %v2679_v3 = vsub.f32 %v2668_v54, %v2675_v1 }
0x1b34   :  { %v2681_v4 = vmul.f32 1.442695, %v2679_v3 }
0x1b36   :  { %4859 = vpow2.f32 %v2681_v4 }
0x1b39   :  { %v2678_v6 = vpop.xlane.xlu2 %2677 }
0x1b3a   :  { %v2680_v7 = vsub.f32 %v2671_v11, %v2678_v6  ;;  %v4742_v6 = vld [vmem:[%s6589_s7 + $0x1] ss:$0 sm:$0xff] }
0x1b3c   :  { %v4860_v8 = vpop.eup %4859  ;;  %v2683_v14 = vmul.f32 1.442695, %v2680_v7 }
0x1b3d   :  { %v2685_v12 = vsel %vm218_vm2, %v4860_v8, 0.0 }
0x1b3e   :  { %4861 = vpow2.f32 %v2683_v14  ;;  %2686 = vadd.xlane.f32.xlu0 %v2685_v12 }
0x1b44   :  { %v4862_v16 = vpop.eup %4861 }
0x1b45   :  { %v2688_v17 = vsel %vm218_vm2, %v4862_v16, 0.0 }
0x1b46   :  { %2689 = vadd.xlane.f32.xlu1 %v2688_v17 }
0x1bb1   :  { %v2687_v23 = vpop.xlane.xlu0 %2686 }
0x1bb2   :  { %4863 = vrcp.f32 %v2687_v23  ;;  %v4553_v23 = vld [vmem:[%s6590_s8 + $0x218] sm:$0xff] }
0x1bb8   :  { %v4864_v24 = vpop.eup %4863 }
0x1bb9   :  { %v2693_v25 = vmul.f32 %v4864_v24, %v4860_v8  ;;  %v2690_v27 = vpop.xlane.xlu1 %2689  ;;  %v4552_v24 = vld [vmem:[%s6590_s8 + $0x210] sm:$0xff] }
0x1bba   :  { %4865 = vrcp.f32 %v2690_v27 }
0x1bbb   :  { %4505 = vmatmul.msk.f32.vlgmr.msra.gmra.mxu2 %vm218_vm2, %v2693_v25 }
0x1bbc   :  { %3070 = vmatpush.msra.mxu2 %v4546_v35 }
0x1bc0   :  { %v4866_v28 = vpop.eup %4865 }
0x1bc1   :  { %v2694_v34 = vmul.f32 %v4866_v28, %v4862_v16 }
0x1bc3   :  { %4506 = vmatmul.msk.f32.gmra.mxu2 %vm218_vm2, %v2694_v34 }
0x1bcb   :  { %4529 = vmatmul.msk.f32.vlgmr.msrb.gmra.mxu2 %vm86_vm0, %v5883_v41 }
0x1bd3   :  { %4530 = vmatmul.msk.f32.gmra.mxu2 %vm86_vm0, %v5892_v44 }
0x1c3e   :  { %v2718_v29 = vpop.f32.mrf.mxu2 }
0x1c3f   :  { %4508 = vmatmul.msk.f32.vlgmr.msra.gmra.mxu3 %vm182_vm1, %v2718_v29 }
0x1c40   :  { %3103 = vmatpush.msra.mxu3 %v4553_v23  ;;  %v4559_v23 = vld [vmem:[%s6590_s8 + $0x290] sm:$0xff] }
0x1c42   :  { %3104 = vmatpush.msra.mxu3 %v4552_v24  ;;  %v4558_v24 = vld [vmem:[%s6590_s8 + $0x288] sm:$0xff] }
0x1c46   :  { %v2721_v30 = vpop.f32.mrf.mxu2 }
0x1c47   :  { %4509 = vmatmul.msk.f32.gmra.mxu3 %vm182_vm1, %v2721_v30 }
0x1c4e   :  { %v2850_v33 = vpop.f32.mrf.mxu2 }
0x1c4f   :  { %4533 = vmatmul.msk.f32.vlgmr.msrb.gmra.mxu3 %vm182_vm1, %v2785_v32  ;;  %v2851_v58 = vadd.f32 %v4741_v37, %v2850_v33  ;;  %v4550_v33 = vld [vmem:[%s6590_s8 + $0x200] sm:$0xff] }
0x1c56   :  { %v2853_v39 = vpop.f32.mrf.mxu2 }
0x1c57   :  { %v2854_v40 = vadd.f32 %v4741_v37, %v2853_v39  ;;  %4534 = vmatmul.msk.f32.gmra.mxu3 %vm182_vm1, %v2788_v36  ;;  %v4574_v36 = vld [vmem:[%s6590_s8 + $0x1b8] sm:$0xff]  ;;  %v4545_v37 = vld [vmem:[%s6590_s8 + $0x190] sm:$0xff] }
0x1c58   :  { %v4573_v39 = vld [vmem:[%s6590_s8 + $0x1b0] sm:$0xff]  ;;  %3071 = vmatpush.msra.mxu2 %v4545_v37 }
0x1c59   :  { %2933 = vmatpush.msra.mxu0 %v2854_v40  ;;  %v4544_v40 = vld [vmem:[%s6590_s8 + $0x188] sm:$0xff]  ;;  %v4748_v37 = vld [vmem:[%s6591_s9 + $0x14] ss:$0 sm:$0xff] }
0x1c5a   :  { %3072 = vmatpush.msra.mxu2 %v4544_v40 }
0x1c5b   :  { %2934 = vmatpush.msra.mxu0 %v2851_v58  ;;  %v4572_v58 = vld [vmem:[%s6590_s8 + $0x1a8] sm:$0xff] }
0x1cc2   :  { %v2749_v42 = vpop.f32.mrf.mxu3 }
0x1cc3   :  { %v2755_v43 = vadd.f32 %v2749_v42, %v2534_v60  ;;  %v4543_v60 = vld [vmem:[%s6590_s8 + $0x180] sm:$0xff] }
0x1cc4   :  { %v4571_v42 = vld [vmem:[%s6590_s8 + $0x1a0] sm:$0xff]  ;;  %3073 = vmatpush.msra.mxu2 %v4543_v60 }
0x1cca   :  { %v2752_v59 = vpop.f32.mrf.mxu3 }
0x1ccb   :  { %v2756_v50 = vadd.f32 %v2752_v59, %v6080_v62 }
0x1cd2   :  { %v2885_v47 = vpop.f32.mrf.mxu3 }
0x1cd3   :  { %v2886_v48 = vadd.f32 %v5945_v5, %v2885_v47 }
0x1cd5   :  { %v2891_v49 = vsel %vm218_vm2, %v2886_v48, -inf }
0x1cd6   :  { %2892 = vmax.xlane.f32.xlu2 %v2891_v49 }
0x1cda   :  { %v2888_v55 = vpop.f32.mrf.mxu3 }
0x1cdb   :  { %v2889_v51 = vadd.f32 %v5952_v10, %v2888_v55  ;;  %v4537_v10 = vld [vmem:[%s6588_s6 + $0x38] sm:$0xff] }
0x1cdc   :  { %2965 = vmatpush.msrb.mxu1 %v4537_v10 }
0x1cdd   :  { %v2894_v52 = vsel %vm218_vm2, %v2889_v51, -inf }
0x1cde   :  { %2895 = vmax.xlane.f32.xlu0 %v2894_v52 }
0x1d49   :  { %v2893_v53 = vpop.xlane.xlu2 %2892 }
0x1d4a   :  { %v2897_v54 = vsub.f32 %v2886_v48, %v2893_v53 }
0x1d4c   :  { %v2899_v45 = vmul.f32 1.442695, %v2897_v54 }
0x1d4e   :  { %4867 = vpow2.f32 %v2899_v45 }
0x1d51   :  { %v2896_v46 = vpop.xlane.xlu0 %2895 }
0x1d52   :  { %v2898_v56 = vsub.f32 %v2889_v51, %v2896_v46 }
0x1d54   :  { %v4868_v57 = vpop.eup %4867  ;;  %v2901_v62 = vmul.f32 1.442695, %v2898_v56 }
0x1d55   :  { %v2903_v11 = vsel %vm218_vm2, %v4868_v57, 0.0 }
0x1d56   :  { %4869 = vpow2.f32 %v2901_v62  ;;  %2904 = vadd.xlane.f32.xlu1 %v2903_v11 }
0x1d5c   :  { %v4870_v5 = vpop.eup %4869 }
0x1d5d   :  { %v2906_v22 = vsel %vm218_vm2, %v4870_v5, 0.0 }
0x1d5e   :  { %2907 = vadd.xlane.f32.xlu2 %v2906_v22 }
0x1dc9   :  { %v2905_v61 = vpop.xlane.xlu1 %2904 }
0x1dca   :  { %4871 = vrcp.f32 %v2905_v61 }
0x1dd0   :  { %v4872_v15 = vpop.eup %4871 }
0x1dd1   :  { %v2911_v26 = vmul.f32 %v4872_v15, %v4868_v57  ;;  %v2908_v63 = vpop.xlane.xlu2 %2907  ;;  %v4743_v57 = vld [vmem:[%s6594_s12 + $0x3] ss:$0 sm:$0xff] }
0x1dd2   :  { %4873 = vrcp.f32 %v2908_v63 }
0x1dd3   :  { %4535 = vmatmul.msk.f32.vlgmr.msra.gmra.mxu0 %vm218_vm2, %v2911_v26 }
0x1dd8   :  { %v4874_v0 = vpop.eup %4873 }
0x1dd9   :  { %v2912_v1 = vmul.f32 %v4874_v0, %v4870_v5  ;;  %v4744_v5 = vld [vmem:[%s6595_s13 + $0x3] ss:$0 sm:$0xff] }
0x1ddb   :  { %4536 = vmatmul.msk.f32.gmra.mxu0 %vm218_vm2, %v2912_v1 }
0x1e50   :  { %v2936_v3 = vpop.f32.mrf.mxu0 }
0x1e51   :  { %4538 = vmatmul.msk.f32.vlgmr.msrb.gmra.mxu1 %vm182_vm1, %v2936_v3 }
0x1e58   :  { %v2939_v4 = vpop.f32.mrf.mxu0 }
0x1e59   :  { %4539 = vmatmul.msk.f32.gmra.mxu1 %vm182_vm1, %v2939_v4 }
0x1ece   :  { %v2967_v7 = vpop.f32.mrf.mxu1 }
0x1ecf   :  { %v2973_v8 = vadd.f32 %v2967_v7, %v2755_v43  ;;  %v4745_v7 = vld [vmem:[%s6591_s9 + $0x10] ss:$0 sm:$0xff] }
0x1ed1   :  { %v2980_v14 = vadd.f32 %v4742_v6, %v2973_v8 }
0x1ed3   :  { %v2982_v12 = vadd.f32 %v2980_v14, %v5883_v41  ;;  %v4551_v41 = vld [vmem:[%s6590_s8 + $0x208] sm:$0xff] }
0x1ed4   :  { %3105 = vmatpush.msra.mxu3 %v4551_v41  ;;  %v4557_v41 = vld [vmem:[%s6590_s8 + $0x280] sm:$0xff] }
0x1ed5   :  { %v2988_v16 = vsel %vm86_vm0, %v2982_v12, 0.0 }
0x1ed6   :  { %2989 = vadd.xlane.f32.xlu0 %v2988_v16  ;;  %v2970_v17 = vpop.f32.mrf.mxu1  ;;  %3106 = vmatpush.msra.mxu3 %v4550_v33  ;;  %v4746_v16 = vld [vmem:[%s6591_s9 + $0xc] ss:$0 sm:$0xff] }
0x1ed7   :  { %v2974_v18 = vadd.f32 %v2970_v17, %v2756_v50  ;;  %4555 = vmatmul.msk.f32.vlgmr.msra.gmra.mxu3 %vm86_vm0, %v5090_v13 }
0x1ed8   :  { %3257 = vmatpush.msrb.mxu3 %v4574_v36 }
0x1ed9   :  { %v2981_v19 = vadd.f32 %v4742_v6, %v2974_v18 }
0x1eda   :  { %3258 = vmatpush.msrb.mxu3 %v4573_v39 }
0x1edb   :  { %v2983_v20 = vadd.f32 %v2981_v19, %v5892_v44 }
0x1edc   :  { %3259 = vmatpush.msrb.mxu3 %v4572_v58 }
0x1edd   :  { %v2991_v21 = vsel %vm86_vm0, %v2983_v20, 0.0 }
0x1ede   :  { %2992 = vadd.xlane.f32.xlu1 %v2991_v21  ;;  %3260 = vmatpush.msrb.mxu3 %v4571_v42  ;;  %v4560_v21 = vld [vmem:[%s6590_s8 + $0x298] sm:$0xff] }
0x1edf   :  { %4556 = vmatmul.msk.f32.gmra.mxu3 %vm86_vm0, %v5082_v9  ;;  %3136 = vmatpush.msrb.mxu0 %v4560_v21  ;;  %v4751_v21 = vld [vmem:[%s6591_s9 + $0x15] ss:$0 sm:$0xff] }
0x1ee1   :  { %3137 = vmatpush.msrb.mxu0 %v4559_v23 }
0x1ee3   :  { %3138 = vmatpush.msrb.mxu0 %v4558_v24 }
0x1ee5   :  { %3139 = vmatpush.msrb.mxu0 %v4557_v41 }
0x1ee6   :  { %4562 = vmatmul.msk.f32.vlgmr.msrb.gmra.mxu0 %vm86_vm0, %v5090_v13 }
0x1eee   :  { %4563 = vmatmul.msk.f32.gmra.mxu0 %vm86_vm0, %v5082_v9 }
0x1f49   :  { %v2990_v25 = vpop.xlane.xlu0 %2989 }
0x1f4a   :  { %v2994_v44 = vmul.f32 %v2990_v25, %v5408_v2  ;;  %v4581_v25 = vld [vmem:[%s6590_s8 + $0x238] sm:$0xff] }
0x1f4b   :  { %3290 = vmatpush.msra.mxu0 %v4581_v25 }
0x1f4c   :  { %v2996_v27 = vsub.f32 %v2982_v12, %v2994_v44  ;;  %v4580_v44 = vld [vmem:[%s6590_s8 + $0x230] sm:$0xff] }
0x1f4d   :  { %3291 = vmatpush.msra.mxu0 %v4580_v44 }
0x1f4e   :  { %v2998_v28 = vmul.f32 %v2996_v27, %v2996_v27 }
0x1f50   :  { %v3000_v34 = vsel %vm86_vm0, %v2998_v28, 0.0  ;;  %v4578_v28 = vld [vmem:[%s6590_s8 + $0x220] sm:$0xff] }
0x1f51   :  { %3001 = vadd.xlane.f32.xlu2 %v3000_v34  ;;  %v2993_v29 = vpop.xlane.xlu1 %2992 }
0x1f52   :  { %v2995_v30 = vmul.f32 %v2993_v29, %v5408_v2  ;;  %v6255_v29 = vld [vmem:[%s6617_s29] sm:$0xff] }
0x1f54   :  { %v2997_v38 = vsub.f32 %v2983_v20, %v2995_v30 }
0x1f56   :  { %v2999_v31 = vmul.f32 %v2997_v38, %v2997_v38 }
0x1f58   :  { %v3003_v32 = vsel %vm86_vm0, %v2999_v31, 0.0 }
0x1f59   :  { %3004 = vadd.xlane.f32.xlu0 %v3003_v32  ;;  %v6264_v32 = vld [vmem:[%s6617_s29 + $0x8] sm:$0xff] }
0x1f5a   :  { %v3108_v6 = vpop.f32.mrf.mxu3 }
0x1f5b   :  { %v3109_v12 = vadd.f32 %v4745_v7, %v3108_v6  ;;  %v4747_v6 = vld [vmem:[%s6591_s9 + $0xd] ss:$0 sm:$0xff] }
0x1f62   :  { %v3111_v8 = vpop.f32.mrf.mxu3 }
0x1f63   :  { %v3112_v14 = vadd.f32 %v4745_v7, %v3111_v8  ;;  %v3141_v36 = vpop.f32.mrf.mxu0  ;;  %v4586_v7 = vld [vmem:[%s6590_s8 + $0x2a8] sm:$0xff]  ;;  %v4585_v8 = vld [vmem:[%s6590_s8 + $0x2a0] sm:$0xff] }
0x1f64   :  { %v3142_v42 = vadd.f32 %v4748_v37, %v3141_v36 }
0x1f65   :  { %4564 = vmatpush.xpose.msk.msra.mxu1 %vm182_vm1, %v3112_v14 }
0x1f69   :  { %4565 = vmatpush.xpose.msk.msra.mxu1 %vm182_vm1, %v3109_v12 }
0x1f6b   :  { %v3144_v58 = vpop.f32.mrf.mxu0 }
0x1fc4   :  { %v3002_v43 = vpop.xlane.xlu2 %3001 }
0x1fc5   :  { %v3006_v59 = vmul.f32 %v3002_v43, %v5408_v2  ;;  %v3145_v43 = vadd.f32 %v4748_v37, %v3144_v58 }
0x1fc7   :  { %v3008_v50 = vadd.f32 1e-05, %v3006_v59  ;;  %3224 = vmatpush.msrb.mxu2 %v3145_v43  ;;  %v4612_v43 = vld [vmem:[%s6590_s8 + $0x250] sm:$0xff] }
0x1fc9   :  { %4875 = vrsqrt.f32 %v3008_v50  ;;  %vm3016_vm11 = vweird.f32 %v3008_v50  ;;  %3225 = vmatpush.msrb.mxu2 %v3142_v42  ;;  %v4613_v42 = vld [vmem:[%s6590_s8 + $0x258] sm:$0xff] }
0x1fcc   :  { %v3005_v47 = vpop.xlane.xlu0 %3004 }
0x1fcd   :  { %v3007_v48 = vmul.f32 %v3005_v47, %v5408_v2 }
0x1fcf   :  { %v4876_v49 = vpop.eup %4875  ;;  %v3009_v55 = vadd.f32 1e-05, %v3007_v48 }
0x1fd0   :  { %v3011_v51 = vmul.f32 %v4876_v49, %v3008_v50  ;;  %vm3017_vm10 = vweird.f32 %v4876_v49 }
0x1fd1   :  { %4877 = vrsqrt.f32 %v3009_v55  ;;  %vm3018_vm12 = vmor %vm3016_vm11, %vm3017_vm10  ;;  %vm3026_vm14 = vweird.f32 %v3009_v55 }
0x1fd2   :  { %v3012_v52 = vmul.f32 %v4876_v49, %v3011_v51 }
0x1fd4   :  { %v3013_v53 = vmul.f32 0.5, %v3012_v52 }
0x1fd6   :  { %v3014_v54 = vsub.f32 1.5, %v3013_v53  ;;  %v4749_v53 = vld [vmem:[%s6591_s9 + $0x11] ss:$0 sm:$0xff] }
0x1fd7   :  { %v4878_v45 = vpop.eup %4877 }
0x1fd8   :  { %v3015_v46 = vmul.f32 %v4876_v49, %v3014_v54  ;;  %v3021_v56 = vmul.f32 %v4878_v45, %v3009_v55  ;;  %vm3027_vm13 = vweird.f32 %v4878_v45 }
0x1fd9   :  { %vm3028_vm15 = vmor %vm3026_vm14, %vm3027_vm13 }
0x1fda   :  { %v3019_v62 = vsel %vm3018_vm12, %v4876_v49, %v3015_v46  ;;  %v3022_v11 = vmul.f32 %v4878_v45, %v3021_v56 }
0x1fdb   :  { %v3030_v22 = vmul.f32 %v3019_v62, %v2996_v27  ;;  %v4579_v27 = vld [vmem:[%s6590_s8 + $0x228] sm:$0xff] }
0x1fdc   :  { %v3023_v10 = vmul.f32 0.5, %v3022_v11  ;;  %3292 = vmatpush.msra.mxu0 %v4579_v27 }
0x1fdd   :  { %v3035_v61 = vmul.f32 %v4743_v57, %v3030_v22  ;;  %v4605_v22 = vld [vmem:[%s6590_s8 + $0x1d0] sm:$0xff] }
0x1fde   :  { %v3024_v15 = vsub.f32 1.5, %v3023_v10  ;;  %3293 = vmatpush.msra.mxu0 %v4578_v28  ;;  %v4604_v10 = vld [vmem:[%s6590_s8 + $0x1c8] sm:$0xff] }
0x1fdf   :  { %v6202_v26 = vadd.f32 %v4744_v5, %v3035_v61  ;;  %4583 = vmatmul.msk.f32.vlgmr.msra.gmra.mxu0 %vm86_vm0, %v5090_v13  ;;  %v4603_v61 = vld [vmem:[%s6590_s8 + $0x1c0] sm:$0xff] }
0x1fe0   :  { %v3025_v63 = vmul.f32 %v4878_v45, %v3024_v15 }
0x1fe1   :  { %4548 = vmatmul.msk.f32.vlgmr.msra.gmra.mxu2 %vm86_vm0, %v6202_v26  ;;  %4576 = vmatmul.msk.f32.vlgmr.msrb.gmra.mxu3 %vm86_vm0, %v6202_v26 }
0x1fe2   :  { %v3029_v0 = vsel %vm3028_vm15, %v4878_v45, %v3025_v63 }
0x1fe3   :  { %v3031_v1 = vmul.f32 %v3029_v0, %v2997_v38  ;;  %v4588_v0 = vld [vmem:[%s6590_s8 + $0x2b8] sm:$0xff] }
0x1fe4   :  { %3323 = vmatpush.msrb.mxu1 %v4588_v0 }
0x1fe5   :  { %v3036_v3 = vmul.f32 %v4743_v57, %v3031_v1  ;;  %v4587_v1 = vld [vmem:[%s6590_s8 + $0x2b0] sm:$0xff] }
0x1fe6   :  { %3324 = vmatpush.msrb.mxu1 %v4587_v1 }
0x1fe7   :  { %v6208_v4 = vadd.f32 %v4744_v5, %v3036_v3  ;;  %4584 = vmatmul.msk.f32.gmra.mxu0 %vm86_vm0, %v5082_v9  ;;  %v4606_v5 = vld [vmem:[%s6590_s8 + $0x1d8] sm:$0xff] }
0x1fe8   :  { %3325 = vmatpush.msrb.mxu1 %v4586_v7 }
0x1fe9   :  { %4549 = vmatmul.msk.f32.gmra.mxu2 %vm86_vm0, %v6208_v4  ;;  %4577 = vmatmul.msk.f32.gmra.mxu3 %vm86_vm0, %v6208_v4 }
0x1fea   :  { %3326 = vmatpush.msrb.mxu1 %v4585_v8 }
0x205c   :  { %v3295_v52 = vpop.f32.mrf.mxu0 }
0x205d   :  { %v3296_v46 = vadd.f32 %v4749_v53, %v3295_v52 }
0x2064   :  { %v3075_v17 = vpop.f32.mrf.mxu2  ;;  %v3298_v54 = vpop.f32.mrf.mxu0 }
0x2065   :  { %v3076_v18 = vadd.f32 %v4746_v16, %v3075_v17  ;;  %v3299_v45 = vadd.f32 %v4749_v53, %v3298_v54  ;;  %v3262_v3 = vpop.f32.mrf.mxu3  ;;  %v4570_v17 = vld [vmem:[%s6592_s10 + $0x20] sm:$0xff]  ;;  %v4598_v53 = vld [vmem:[%s6592_s10 + $0x28] sm:$0xff]  ;;  %v4620_v54 = vld [vmem:[%s6590_s8 + $0x2d8] sm:$0xff] }
0x2066   :  { %v3263_v14 = vadd.f32 %v4747_v6, %v3262_v3  ;;  %3443 = vmatpush.msrb.mxu0 %v4598_v53  ;;  %v4750_v3 = vld [vmem:[%s6591_s9 + $0xe] ss:$0 sm:$0xff]  ;;  %v4630_v53 = vld [vmem:[%s6592_s10 + $0x30] sm:$0xff] }
0x2067   :  { %4566 = vmatmul.msk.f32.vlgmr.msra.gmra.mxu1 %vm182_vm1, %v3076_v18  ;;  %4592 = vmatpush.xpose.msk.msra.mxu2 %vm182_vm1, %v3299_v45  ;;  %v4619_v45 = vld [vmem:[%s6590_s8 + $0x2d0] sm:$0xff] }
0x2068   :  { %3472 = vmatpush.msra.mxu1 %v4570_v17  ;;  %3568 = vmatpush.msra.mxu0 %v4620_v54 }
0x206a   :  { %3569 = vmatpush.msra.mxu0 %v4619_v45  ;;  %v4755_v45 = vld [vmem:[%s6591_s9 + $0x13] ss:$0 sm:$0xff] }
0x206b   :  { %4593 = vmatpush.xpose.msk.msra.mxu2 %vm182_vm1, %v3296_v46  ;;  %v4618_v46 = vld [vmem:[%s6590_s8 + $0x2c8] sm:$0xff] }
0x206c   :  { %v3078_v19 = vpop.f32.mrf.mxu2  ;;  %3570 = vmatpush.msra.mxu0 %v4618_v46 }
0x206d   :  { %v3079_v20 = vadd.f32 %v4746_v16, %v3078_v19  ;;  %v3265_v12 = vpop.f32.mrf.mxu3 }
0x206e   :  { %v3266_v16 = vadd.f32 %v4747_v6, %v3265_v12 }
0x206f   :  { %4567 = vmatmul.msk.f32.gmra.mxu1 %vm182_vm1, %v3079_v20 }
0x2077   :  { %4590 = vmatmul.msk.f32.vlgmr.msrb.gmra.mxu1 %vm86_vm0, %v5090_v13 }
0x207f   :  { %4591 = vmatmul.msk.f32.gmra.mxu1 %vm86_vm0, %v5082_v9 }
0x20e4   :  { %v3176_v34 = vpop.f32.mrf.mxu1 }
0x20e5   :  { %v3177_v30 = vadd.f32 %v6255_v29, %v3176_v34 }
0x20e7   :  { %v3182_v38 = vsel %vm218_vm2, %v3177_v30, -inf }
0x20e8   :  { %3183 = vmax.xlane.f32.xlu1 %v3182_v38 }
0x20ec   :  { %v3179_v31 = vpop.f32.mrf.mxu1 }
0x20ed   :  { %v3180_v33 = vadd.f32 %v6264_v32, %v3179_v31 }
0x20ef   :  { %v3185_v35 = vsel %vm218_vm2, %v3180_v33, -inf }
0x20f0   :  { %3186 = vmax.xlane.f32.xlu2 %v3185_v35 }
0x20f4   :  { %v3328_v20 = vpop.f32.mrf.mxu1 }
0x20f5   :  { %v3329_v44 = vadd.f32 %v4751_v21, %v3328_v20 }
0x20fc   :  { %v3331_v41 = vpop.f32.mrf.mxu1 }
0x20fd   :  { %v3332_v27 = vadd.f32 %v4751_v21, %v3331_v41  ;;  %v4753_v21 = vld [vmem:[%s6591_s9 + $0x16] ss:$0 sm:$0xff] }
0x20ff   :  { %3411 = vmatpush.msra.mxu3 %v3332_v27 }
0x2101   :  { %3412 = vmatpush.msra.mxu3 %v3329_v44 }
0x2103   :  { %3535 = vmatpush.msrb.mxu3 %v4613_v42 }
0x2105   :  { %3536 = vmatpush.msrb.mxu3 %v4612_v43 }
0x215b   :  { %v3184_v39 = vpop.xlane.xlu1 %3183 }
0x215c   :  { %v3188_v40 = vsub.f32 %v3177_v30, %v3184_v39 }
0x215e   :  { %v3190_v60 = vmul.f32 1.442695, %v3188_v40 }
0x2160   :  { %4879 = vpow2.f32 %v3190_v60 }
0x2163   :  { %v3187_v59 = vpop.xlane.xlu2 %3186 }
0x2164   :  { %v3189_v50 = vsub.f32 %v3180_v33, %v3187_v59  ;;  %v4611_v59 = vld [vmem:[%s6590_s8 + $0x248] sm:$0xff] }
0x2165   :  { %3537 = vmatpush.msrb.mxu3 %v4611_v59 }
0x2166   :  { %v4880_v47 = vpop.eup %4879  ;;  %v3192_v48 = vmul.f32 1.442695, %v3189_v50  ;;  %v4610_v50 = vld [vmem:[%s6590_s8 + $0x240] sm:$0xff] }
0x2167   :  { %v3194_v49 = vsel %vm218_vm2, %v4880_v47, 0.0  ;;  %3538 = vmatpush.msrb.mxu3 %v4610_v50  ;;  %v4640_v50 = vld [vmem:[%s6590_s8 + $0x260] sm:$0xff] }
0x2168   :  { %4881 = vpow2.f32 %v3192_v48  ;;  %3195 = vadd.xlane.f32.xlu0 %v3194_v49 }
0x216e   :  { %v4882_v55 = vpop.eup %4881 }
0x216f   :  { %v3197_v51 = vsel %vm218_vm2, %v4882_v55, 0.0 }
0x2170   :  { %3198 = vadd.xlane.f32.xlu1 %v3197_v51 }
0x21db   :  { %v3196_v56 = vpop.xlane.xlu0 %3195 }
0x21dc   :  { %4883 = vrcp.f32 %v3196_v56  ;;  %v4617_v56 = vld [vmem:[%s6590_s8 + $0x2c0] sm:$0xff] }
0x21dd   :  { %3571 = vmatpush.msra.mxu0 %v4617_v56 }
0x21e2   :  { %v4884_v57 = vpop.eup %4883 }
0x21e3   :  { %v3202_v62 = vmul.f32 %v4884_v57, %v4880_v47  ;;  %v3199_v11 = vpop.xlane.xlu1 %3198  ;;  %v4636_v57 = vld [vmem:[%s6590_s8 + $0x1f8] sm:$0xff] }
0x21e4   :  { %4885 = vrcp.f32 %v3199_v11  ;;  %v4635_v11 = vld [vmem:[%s6590_s8 + $0x1f0] sm:$0xff] }
0x21e5   :  { %4568 = vmatmul.msk.f32.vlgmr.msrb.gmra.mxu2 %vm218_vm2, %v3202_v62 }
0x21e6   :  { %3502 = vmatpush.msrb.mxu2 %v4606_v5  ;;  %v4634_v5 = vld [vmem:[%s6590_s8 + $0x1e8] sm:$0xff] }
0x21e8   :  { %3503 = vmatpush.msrb.mxu2 %v4605_v22  ;;  %v4633_v22 = vld [vmem:[%s6590_s8 + $0x1e0] sm:$0xff] }
0x21ea   :  { %v4886_v15 = vpop.eup %4885  ;;  %3504 = vmatpush.msrb.mxu2 %v4604_v10 }
0x21eb   :  { %v3203_v63 = vmul.f32 %v4886_v15, %v4882_v55  ;;  %v4752_v15 = vld [vmem:[%s6591_s9 + $0x12] ss:$0 sm:$0xff] }
0x21ec   :  { %3505 = vmatpush.msrb.mxu2 %v4603_v61 }
0x21ed   :  { %4569 = vmatmul.msk.f32.gmra.mxu2 %vm218_vm2, %v3203_v63 }
0x21f5   :  { %4594 = vmatmul.msk.f32.vlgmr.msra.gmra.mxu2 %vm182_vm1, %v3263_v14 }
0x21fd   :  { %4595 = vmatmul.msk.f32.gmra.mxu2 %vm182_vm1, %v3266_v16 }
0x2205   :  { %4608 = vmatmul.msk.f32.vlgmr.msrb.gmra.mxu2 %vm86_vm0, %v6202_v26 }
0x220d   :  { %4609 = vmatmul.msk.f32.gmra.mxu2 %vm86_vm0, %v6208_v4 }
0x2268   :  { %v3227_v18 = vpop.f32.mrf.mxu2 }
0x2269   :  { %4601 = vmatmul.msk.f32.vlgmr.msra.gmra.mxu1 %vm182_vm1, %v3227_v18 }
0x2270   :  { %v3230_v19 = vpop.f32.mrf.mxu2 }
0x2271   :  { %4602 = vmatmul.msk.f32.gmra.mxu1 %vm182_vm1, %v3230_v19 }
0x2278   :  { %v3363_v23 = vpop.f32.mrf.mxu2 }
0x2279   :  { %v3364_v24 = vadd.f32 %v6255_v29, %v3363_v23 }
0x227b   :  { %v3369_v25 = vsel %vm218_vm2, %v3364_v24, -inf }
0x227c   :  { %3370 = vmax.xlane.f32.xlu2 %v3369_v25 }
0x2280   :  { %v3366_v28 = vpop.f32.mrf.mxu2 }
0x2281   :  { %v3367_v34 = vadd.f32 %v6264_v32, %v3366_v28 }
0x2283   :  { %v3372_v30 = vsel %vm218_vm2, %v3367_v34, -inf }
0x2284   :  { %3373 = vmax.xlane.f32.xlu0 %v3372_v30 }
0x2288   :  { %v3507_v1 = vpop.f32.mrf.mxu2 }
0x2289   :  { %v3508_v7 = vadd.f32 %v4750_v3, %v3507_v1  ;;  %v4648_v1 = vld [vmem:[%s6590_s8 + $0x2e8] sm:$0xff] }
0x2290   :  { %v3510_v8 = vpop.f32.mrf.mxu2 }
0x2291   :  { %v3511_v14 = vadd.f32 %v4750_v3, %v3510_v8 }
0x22e6   :  { %v6398_v12 = vpop.f32.mrf.mxu1 }
0x22ee   :  { %v3477_v17 = vpop.f32.mrf.mxu1 }
0x22ef   :  { %v3371_v38 = vpop.xlane.xlu2 %3370 }
0x22f0   :  { %v3375_v31 = vsub.f32 %v3364_v24, %v3371_v38  ;;  %v4643_v38 = vld [vmem:[%s6590_s8 + $0x278] sm:$0xff] }
0x22f2   :  { %v3377_v33 = vmul.f32 1.442695, %v3375_v31  ;;  %v4642_v31 = vld [vmem:[%s6590_s8 + $0x270] sm:$0xff] }
0x22f4   :  { %4887 = vpow2.f32 %v3377_v33  ;;  %v4641_v33 = vld [vmem:[%s6590_s8 + $0x268] sm:$0xff] }
0x22f7   :  { %v3374_v35 = vpop.xlane.xlu0 %3373 }
0x22f8   :  { %v3376_v36 = vsub.f32 %v3367_v34, %v3374_v35 }
0x22fa   :  { %v4888_v37 = vpop.eup %4887  ;;  %v3379_v39 = vmul.f32 1.442695, %v3376_v36 }
0x22fb   :  { %v3381_v40 = vsel %vm218_vm2, %v4888_v37, 0.0 }
0x22fc   :  { %4889 = vpow2.f32 %v3379_v39  ;;  %3382 = vadd.xlane.f32.xlu1 %v3381_v40 }
0x2302   :  { %v4890_v58 = vpop.eup %4889 }
0x2303   :  { %v3384_v60 = vsel %vm218_vm2, %v4890_v58, 0.0 }
0x2304   :  { %3385 = vadd.xlane.f32.xlu2 %v3384_v60 }
0x236f   :  { %v3383_v47 = vpop.xlane.xlu1 %3382 }
0x2370   :  { %4891 = vrcp.f32 %v3383_v47 }
0x2376   :  { %v4892_v48 = vpop.eup %4891 }
0x2377   :  { %v3389_v49 = vmul.f32 %v4892_v48, %v4888_v37  ;;  %v3386_v55 = vpop.xlane.xlu2 %3385 }
0x2378   :  { %4893 = vrcp.f32 %v3386_v55 }
0x2379   :  { %4596 = vmatmul.msk.f32.vlgmr.msra.gmra.mxu3 %vm218_vm2, %v3389_v49 }
0x237a   :  { %3688 = vmatpush.msra.mxu3 %v4630_v53 }
0x237e   :  { %v4894_v51 = vpop.eup %4893 }
0x237f   :  { %v3390_v52 = vmul.f32 %v4894_v51, %v4890_v58 }
0x2381   :  { %4597 = vmatmul.msk.f32.gmra.mxu3 %vm218_vm2, %v3390_v52 }
0x2389   :  { %4615 = vmatmul.msk.f32.vlgmr.msrb.gmra.mxu3 %vm86_vm0, %v5090_v13 }
0x2391   :  { %4616 = vmatmul.msk.f32.gmra.mxu3 %vm86_vm0, %v5082_v9 }
0x23fc   :  { %v3414_v62 = vpop.f32.mrf.mxu3 }
0x23fd   :  { %4599 = vmatmul.msk.f32.vlgmr.msrb.gmra.mxu0 %vm182_vm1, %v3414_v62 }
0x23fe   :  { %3720 = vmatpush.msrb.mxu0 %v4636_v57 }
0x2400   :  { %3721 = vmatpush.msrb.mxu0 %v4635_v11 }
0x2402   :  { %3722 = vmatpush.msrb.mxu0 %v4634_v5 }
0x2404   :  { %v3417_v10 = vpop.f32.mrf.mxu3  ;;  %3723 = vmatpush.msrb.mxu0 %v4633_v22  ;;  %v4754_v22 = vld [vmem:[%s6591_s9 + $0xf] ss:$0 sm:$0xff] }
0x2405   :  { %4600 = vmatmul.msk.f32.gmra.mxu0 %vm182_vm1, %v3417_v10 }
0x240c   :  { %v3540_v61 = vpop.f32.mrf.mxu3 }
0x240d   :  { %4622 = vmatmul.msk.f32.vlgmr.msra.gmra.mxu0 %vm86_vm0, %v5090_v13  ;;  %v3541_v6 = vadd.f32 %v4752_v15, %v3540_v61 }
0x2414   :  { %v3543_v63 = vpop.f32.mrf.mxu3 }
0x2415   :  { %v3544_v0 = vadd.f32 %v4752_v15, %v3543_v63  ;;  %4623 = vmatmul.msk.f32.gmra.mxu0 %vm86_vm0, %v5082_v9  ;;  %v4650_v63 = vld [vmem:[%s6590_s8 + $0x2f8] sm:$0xff] }
0x2417   :  { %4624 = vmatpush.xpose.msk.msrb.mxu1 %vm182_vm1, %v3544_v0  ;;  %v4649_v0 = vld [vmem:[%s6590_s8 + $0x2f0] sm:$0xff] }
0x241b   :  { %4625 = vmatpush.xpose.msk.msrb.mxu1 %vm182_vm1, %v3541_v6 }
0x241d   :  { %4638 = vmatmul.msk.f32.vlgmr.msrb.gmra.mxu0 %vm86_vm0, %v6202_v26 }
0x241e   :  { %4626 = vmatmul.msk.f32.vlgmr.msrb.gmra.mxu1 %vm182_vm1, %v3508_v7  ;;  %v4647_v7 = vld [vmem:[%s6590_s8 + $0x2e0] sm:$0xff] }
0x241f   :  { %3753 = vmatpush.msra.mxu1 %v4643_v38 }
0x2421   :  { %3754 = vmatpush.msra.mxu1 %v4642_v31 }
0x2423   :  { %3755 = vmatpush.msra.mxu1 %v4641_v33  ;;  %v4660_v33 = vld [vmem:[%s6592_s10 + $0x38] sm:$0xff]  ;;  %s4951_s10 = smov 128  }
0x2425   :  { %4639 = vmatmul.msk.f32.gmra.mxu0 %vm86_vm0, %v6208_v4  ;;  %3756 = vmatpush.msra.mxu1 %v4640_v50 }
0x2426   :  { %4627 = vmatmul.msk.f32.gmra.mxu1 %vm182_vm1, %v3511_v14 }
0x2427   :  { %3906 = vmatpush.msrb.mxu1 %v4660_v33 }
0x242e   :  { %4645 = vmatmul.msk.f32.vlgmr.msra.gmra.mxu1 %vm86_vm0, %v5090_v13 }
0x2436   :  { %4646 = vmatmul.msk.f32.gmra.mxu1 %vm86_vm0, %v5082_v9 }
0x247a   :  { %v6400_v16 = vpop.f32.mrf.mxu0 }
0x247b   :  { %v3475_v3 = vadd.f32 %v6398_v12, %v6400_v16 }
0x2482   :  { %v3448_v18 = vpop.f32.mrf.mxu0 }
0x2483   :  { %v6402_v19 = vadd.f32 %v3477_v17, %v3448_v18 }
0x248a   :  { %v3573_v20 = vpop.f32.mrf.mxu0 }
0x248b   :  { %v3574_v24 = vadd.f32 %v4753_v21, %v3573_v20 }
0x2492   :  { %v3576_v23 = vpop.f32.mrf.mxu0 }
0x2493   :  { %v3577_v41 = vadd.f32 %v4753_v21, %v3576_v23 }
0x2495   :  { %3656 = vmatpush.msra.mxu2 %v3577_v41 }
0x2497   :  { %3657 = vmatpush.msra.mxu2 %v3574_v24 }
0x2499   :  { %3786 = vmatpush.msrb.mxu2 %v4650_v63  ;;  %v4666_v63 = vld [vmem:[%s6596_s14 + $0x20] sm:$0xff] }
0x249a   :  { %v3725_v5 = vpop.f32.mrf.mxu0 }
0x249b   :  { %v3608_v25 = vpop.f32.mrf.mxu1  ;;  %v3726_v10 = vadd.f32 %v4754_v22, %v3725_v5  ;;  %3787 = vmatpush.msrb.mxu2 %v4649_v0 }
0x249c   :  { %v3609_v44 = vadd.f32 %v6255_v29, %v3608_v25 }
0x249d   :  { %3788 = vmatpush.msrb.mxu2 %v4648_v1 }
0x249e   :  { %v3614_v27 = vsel %vm218_vm2, %v3609_v44, -inf }
0x249f   :  { %3615 = vmax.xlane.f32.xlu0 %v3614_v27  ;;  %3789 = vmatpush.msrb.mxu2 %v4647_v7  ;;  %v4679_v7 = vld [vmem:[%s6598_s16 + $0x70] sm:$0xff] }
0x24a2   :  { %v3728_v61 = vpop.f32.mrf.mxu0 }
0x24a3   :  { %v3611_v28 = vpop.f32.mrf.mxu1  ;;  %v3729_v15 = vadd.f32 %v4754_v22, %v3728_v61  ;;  %v4668_v61 = vld [vmem:[%s6596_s14 + $0x30] sm:$0xff] }
0x24a4   :  { %v3612_v34 = vadd.f32 %v6264_v32, %v3611_v28 }
0x24a6   :  { %v3617_v30 = vsel %vm218_vm2, %v3612_v34, -inf }
0x24a7   :  { %3618 = vmax.xlane.f32.xlu1 %v3617_v30 }
0x24ab   :  { %v3758_v54 = vpop.f32.mrf.mxu1 }
0x24ac   :  { %v3759_v57 = vadd.f32 %v4755_v45, %v3758_v54 }
0x24b3   :  { %v3761_v46 = vpop.f32.mrf.mxu1 }
0x24b4   :  { %v3762_v56 = vadd.f32 %v4755_v45, %v3761_v46 }
0x24b6   :  { %4654 = vmatpush.xpose.msk.msrb.mxu3 %vm182_vm1, %v3762_v56 }
0x24ba   :  { %4655 = vmatpush.xpose.msk.msrb.mxu3 %vm182_vm1, %v3759_v57 }
0x2512   :  { %v3616_v35 = vpop.xlane.xlu0 %3615 }
0x2513   :  { %v3620_v36 = vsub.f32 %v3609_v44, %v3616_v35 }
0x2515   :  { %v3622_v37 = vmul.f32 1.442695, %v3620_v36 }
0x2517   :  { %4895 = vpow2.f32 %v3622_v37 }
0x251a   :  { %v3619_v39 = vpop.xlane.xlu1 %3618 }
0x251b   :  { %v3621_v40 = vsub.f32 %v3612_v34, %v3619_v39 }
0x251d   :  { %v4896_v58 = vpop.eup %4895  ;;  %v3624_v60 = vmul.f32 1.442695, %v3621_v40 }
0x251e   :  { %v3626_v42 = vsel %vm218_vm2, %v4896_v58, 0.0 }
0x251f   :  { %4897 = vpow2.f32 %v3624_v60  ;;  %3627 = vadd.xlane.f32.xlu2 %v3626_v42 }
0x2525   :  { %v4898_v43 = vpop.eup %4897 }
0x2526   :  { %v3629_v59 = vsel %vm218_vm2, %v4898_v43, 0.0 }
0x2527   :  { %3630 = vadd.xlane.f32.xlu0 %v3629_v59 }
0x2592   :  { %v3628_v47 = vpop.xlane.xlu2 %3627 }
0x2593   :  { %4899 = vrcp.f32 %v3628_v47 }
0x2599   :  { %v4900_v48 = vpop.eup %4899 }
0x259a   :  { %v3634_v49 = vmul.f32 %v4900_v48, %v4896_v58  ;;  %v3631_v55 = vpop.xlane.xlu0 %3630 }
0x259b   :  { %4901 = vrcp.f32 %v3631_v55 }
0x259c   :  { %4628 = vmatmul.msk.f32.vlgmr.msra.gmra.mxu2 %vm218_vm2, %v3634_v49 }
0x25a1   :  { %v4902_v51 = vpop.eup %4901 }
0x25a2   :  { %v3635_v52 = vmul.f32 %v4902_v51, %v4898_v43  ;;  %v4757_v43 = vld [vmem:[%s6593_s11 + $0x1] ss:$0 sm:$0xff]  ;;  %s4952_s11 = smov 8  }
0x25a4   :  { %4629 = vmatmul.msk.f32.gmra.mxu2 %vm218_vm2, %v3635_v52 }
0x25ac   :  { %4652 = vmatmul.msk.f32.vlgmr.msrb.gmra.mxu2 %vm86_vm0, %v5090_v13 }
0x25b4   :  { %4653 = vmatmul.msk.f32.gmra.mxu2 %vm86_vm0, %v5082_v9  ;;  %v4756_v9 = vld [vmem:[%s6591_s9 + $0x17] ss:$0 sm:$0xff]  ;;  %s4172_s9 = sshll.u32 %s6602_s20, 4  ;;  %s4173_s9 = int_to_ptr.hbm [resolvable:$true] %s4172_s9 }
0x261f   :  { %v3659_v62 = vpop.f32.mrf.mxu2 }
0x2620   :  { %4631 = vmatmul.msk.f32.vlgmr.msra.gmra.mxu3 %vm182_vm1, %v3659_v62 }
0x2627   :  { %v3662_v11 = vpop.f32.mrf.mxu2 }
0x2628   :  { %4632 = vmatmul.msk.f32.gmra.mxu3 %vm182_vm1, %v3662_v11 }
0x262f   :  { %v3791_v13 = vpop.f32.mrf.mxu2 }
0x2630   :  { %4656 = vmatmul.msk.f32.vlgmr.msrb.gmra.mxu3 %vm182_vm1, %v3726_v10  ;;  %v3792_v27 = vadd.f32 %v4756_v9, %v3791_v13 }
0x2638   :  { %4657 = vmatmul.msk.f32.gmra.mxu3 %vm182_vm1, %v3729_v15  ;;  %v4667_v15 = vld [vmem:[%s6596_s14 + $0x28] sm:$0xff] }
0x26a3   :  { %v3690_v6 = vpop.f32.mrf.mxu3 }
0x26a4   :  { %v3696_v8 = vadd.f32 %v3690_v6, %v3475_v3  ;;  %v4680_v6 = vld [vmem:[%s6598_s16 + $0x78] sm:$0xff] }
0x26a5   :  { %4052 = vmatpush.msra.mxu3 %v4680_v6 }
0x26a7   :  { %4053 = vmatpush.msra.mxu3 %v4679_v7 }
0x26ab   :  { %v3693_v14 = vpop.f32.mrf.mxu3 }
0x26ac   :  { %v3697_v17 = vadd.f32 %v3693_v14, %v6402_v19 }
0x26b3   :  { %v3826_v18 = vpop.f32.mrf.mxu3 }
0x26b4   :  { %v3827_v12 = vadd.f32 %v6255_v29, %v3826_v18  ;;  %v3794_v29 = vpop.f32.mrf.mxu2  ;;  %v4677_v18 = vld [vmem:[%s6598_s16 + $0x60] sm:$0xff] }
0x26b5   :  { %v3795_v28 = vadd.f32 %v4756_v9, %v3794_v29 }
0x26b6   :  { %v3832_v16 = vsel %vm218_vm2, %v3827_v12, -inf }
0x26b7   :  { %3833 = vmax.xlane.f32.xlu1 %v3832_v16  ;;  %3874 = vmatpush.msra.mxu0 %v3795_v28 }
0x26b9   :  { %3875 = vmatpush.msra.mxu0 %v3792_v27  ;;  %v4759_v27 = vld [vmem:[%s6595_s13 + $0x4] ss:$0 sm:$0xff] }
0x26bb   :  { %v3829_v20 = vpop.f32.mrf.mxu3 }
0x26bc   :  { %v3830_v21 = vadd.f32 %v6264_v32, %v3829_v20  ;;  %v4676_v20 = vld [vmem:[%s6598_s16 + $0x58] sm:$0xff] }
0x26be   :  { %v3835_v23 = vsel %vm218_vm2, %v3830_v21, -inf }
0x26bf   :  { %3836 = vmax.xlane.f32.xlu2 %v3835_v23 }
0x272a   :  { %v3834_v24 = vpop.xlane.xlu1 %3833 }
0x272b   :  { %v3838_v41 = vsub.f32 %v3827_v12, %v3834_v24 }
0x272d   :  { %v3840_v25 = vmul.f32 1.442695, %v3838_v41 }
0x272f   :  { %4903 = vpow2.f32 %v3840_v25 }
0x2732   :  { %v3837_v19 = vpop.xlane.xlu2 %3836 }
0x2733   :  { %v3839_v44 = vsub.f32 %v3830_v21, %v3837_v19  ;;  %v4758_v19 = vld [vmem:[%s6594_s12 + $0x4] ss:$0 sm:$0xff] }
0x2735   :  { %v4904_v34 = vpop.eup %4903  ;;  %v3842_v30 = vmul.f32 1.442695, %v3839_v44 }
0x2736   :  { %v3844_v32 = vsel %vm218_vm2, %v4904_v34, 0.0 }
0x2737   :  { %4905 = vpow2.f32 %v3842_v30  ;;  %3845 = vadd.xlane.f32.xlu0 %v3844_v32 }
0x273d   :  { %v4906_v38 = vpop.eup %4905 }
0x273e   :  { %v3847_v31 = vsel %vm218_vm2, %v4906_v38, 0.0 }
0x273f   :  { %3848 = vadd.xlane.f32.xlu1 %v3847_v31 }
0x27aa   :  { %v3846_v35 = vpop.xlane.xlu0 %3845 }
0x27ab   :  { %4907 = vrcp.f32 %v3846_v35 }
0x27b1   :  { %v4908_v36 = vpop.eup %4907 }
0x27b2   :  { %v3852_v37 = vmul.f32 %v4908_v36, %v4904_v34  ;;  %v3849_v39 = vpop.xlane.xlu1 %3848 }
0x27b3   :  { %4909 = vrcp.f32 %v3849_v39  ;;  %v4675_v39 = vld [vmem:[%s6598_s16 + $0x50] sm:$0xff] }
0x27b4   :  { %4658 = vmatmul.msk.f32.vlgmr.msra.gmra.mxu0 %vm218_vm2, %v3852_v37 }
0x27b9   :  { %v4910_v40 = vpop.eup %4909 }
0x27ba   :  { %v3853_v58 = vmul.f32 %v4910_v40, %v4906_v38  ;;  %v4674_v40 = vld [vmem:[%s6598_s16 + $0x48] sm:$0xff] }
0x27bc   :  { %4659 = vmatmul.msk.f32.gmra.mxu0 %vm218_vm2, %v3853_v58  ;;  %v4673_v58 = vld [vmem:[%s6598_s16 + $0x40] sm:$0xff] }
0x2831   :  { %v3877_v60 = vpop.f32.mrf.mxu0 }
0x2832   :  { %4661 = vmatmul.msk.f32.vlgmr.msrb.gmra.mxu1 %vm182_vm1, %v3877_v60  ;;  %v4760_v60 = vld [vmem:[%s6597_s15 + $0x1] ss:$0 sm:$0xff] }
0x2839   :  { %v3880_v42 = vpop.f32.mrf.mxu0 }
0x283a   :  { %4662 = vmatmul.msk.f32.gmra.mxu1 %vm182_vm1, %v3880_v42 }
0x28af   :  { %v3908_v59 = vpop.f32.mrf.mxu1 }
0x28b0   :  { %v3914_v50 = vadd.f32 %v3908_v59, %v3696_v8  ;;  %v4678_v8 = vld [vmem:[%s6598_s16 + $0x68] sm:$0xff] }
0x28b1   :  { %4054 = vmatpush.msra.mxu3 %v4678_v8 }
0x28b2   :  { %v3921_v47 = vadd.f32 %v4757_v43, %v3914_v50 }
0x28b3   :  { %4055 = vmatpush.msra.mxu3 %v4677_v18 }
0x28b4   :  { %v3923_v48 = vadd.f32 %v3921_v47, %v6202_v26 }
0x28b5   :  { %4056 = vmatpush.msra.mxu3 %v4676_v20 }
0x28b6   :  { %v3929_v49 = vsel %vm86_vm0, %v3923_v48, 0.0 }
0x28b7   :  { %3930 = vadd.xlane.f32.xlu2 %v3929_v49  ;;  %v3911_v55 = vpop.f32.mrf.mxu1  ;;  %4057 = vmatpush.msra.mxu3 %v4675_v39  ;;  %v4761_v49 = vld [vmem:[%s6599_s17 + $0x1] ss:$0 sm:$0xff] }
0x28b8   :  { %v3915_v51 = vadd.f32 %v3911_v55, %v3697_v17 }
0x28b9   :  { %4058 = vmatpush.msra.mxu3 %v4674_v40 }
0x28ba   :  { %v3922_v52 = vadd.f32 %v4757_v43, %v3915_v51 }
0x28bb   :  { %4059 = vmatpush.msra.mxu3 %v4673_v58 }
0x28bc   :  { %v3924_v53 = vadd.f32 %v3922_v52, %v6208_v4  ;;  %v4669_v4 = vld [vmem:[%s6596_s14 + $0x38] sm:$0xff] }
0x28bd   :  { %4011 = vmatpush.msra.mxu2 %v4669_v4 }
0x28be   :  { %v3932_v54 = vsel %vm86_vm0, %v3924_v53, 0.0 }
0x28bf   :  { %3933 = vadd.xlane.f32.xlu0 %v3932_v54  ;;  %4012 = vmatpush.msra.mxu2 %v4668_v61 }
0x28c1   :  { %4013 = vmatpush.msra.mxu2 %v4667_v15 }
0x28c3   :  { %4014 = vmatpush.msra.mxu2 %v4666_v63  ;;  %v4130_v63 = vld [vmem:[%s6600_s18 + $0x18] sm:$0xff] }
0x28c4   :  { %4153 = vmatpush.msrb.mxu0 %v4130_v63 }
0x292a   :  { %v3931_v45 = vpop.xlane.xlu2 %3930 }
0x292b   :  { %v3935_v46 = vmul.f32 %v3931_v45, %v5408_v2 }
0x292d   :  { %v3937_v56 = vsub.f32 %v3923_v48, %v3935_v46 }
0x292f   :  { %v3939_v57 = vmul.f32 %v3937_v56, %v3937_v56 }
0x2931   :  { %v3941_v62 = vsel %vm86_vm0, %v3939_v57, 0.0 }
0x2932   :  { %3942 = vadd.xlane.f32.xlu1 %v3941_v62  ;;  %v3934_v26 = vpop.xlane.xlu0 %3933 }
0x2933   :  { %v3936_v11 = vmul.f32 %v3934_v26, %v5408_v2 }
0x2935   :  { %v3938_v5 = vsub.f32 %v3924_v53, %v3936_v11 }
0x2937   :  { %v3940_v22 = vmul.f32 %v3938_v5, %v3938_v5 }
0x2939   :  { %v3944_v10 = vsel %vm86_vm0, %v3940_v22, 0.0 }
0x293a   :  { %3945 = vadd.xlane.f32.xlu2 %v3944_v10 }
0x29a5   :  { %v3943_v0 = vpop.xlane.xlu1 %3942 }
0x29a6   :  { %v3947_v1 = vmul.f32 %v3943_v0, %v5408_v2  ;;  %v4129_v0 = vld [vmem:[%s6600_s18 + $0x10] sm:$0xff] }
0x29a7   :  { %4154 = vmatpush.msrb.mxu0 %v4129_v0 }
0x29a8   :  { %v3949_v3 = vadd.f32 1e-05, %v3947_v1  ;;  %v4128_v1 = vld [vmem:[%s6600_s18 + $0x8] sm:$0xff] }
0x29a9   :  { %4155 = vmatpush.msrb.mxu0 %v4128_v1 }
0x29aa   :  { %4911 = vrsqrt.f32 %v3949_v3  ;;  %vm3957_vm4 = vweird.f32 %v3949_v3 }
0x29ad   :  { %v3946_v14 = vpop.xlane.xlu2 %3945 }
0x29ae   :  { %v3948_v17 = vmul.f32 %v3946_v14, %v5408_v2 }
0x29b0   :  { %v4912_v12 = vpop.eup %4911  ;;  %v3950_v16 = vadd.f32 1e-05, %v3948_v17 }
0x29b1   :  { %v3952_v21 = vmul.f32 %v4912_v12, %v3949_v3  ;;  %vm3958_vm1 = vweird.f32 %v4912_v12  ;;  %v4127_v3 = vld [vmem:[%s6600_s18] sm:$0xff] }
0x29b2   :  { %4913 = vrsqrt.f32 %v3950_v16  ;;  %vm3959_vm5 = vmor %vm3957_vm4, %vm3958_vm1  ;;  %vm3967_vm7 = vweird.f32 %v3950_v16  ;;  %4156 = vmatpush.msrb.mxu0 %v4127_v3 }
0x29b3   :  { %v3953_v23 = vmul.f32 %v4912_v12, %v3952_v21 }
0x29b5   :  { %v3954_v24 = vmul.f32 0.5, %v3953_v23 }
0x29b7   :  { %v3955_v13 = vsub.f32 1.5, %v3954_v24 }
0x29b8   :  { %v4914_v41 = vpop.eup %4913 }
0x29b9   :  { %v3956_v25 = vmul.f32 %v4912_v12, %v3955_v13  ;;  %v3962_v9 = vmul.f32 %v4914_v41, %v3950_v16  ;;  %vm3968_vm6 = vweird.f32 %v4914_v41 }
0x29ba   :  { %vm3969_vm8 = vmor %vm3967_vm7, %vm3968_vm6 }
0x29bb   :  { %v3960_v29 = vsel %vm3959_vm5, %v4912_v12, %v3956_v25  ;;  %v3963_v44 = vmul.f32 %v4914_v41, %v3962_v9  ;;  %v4762_v25 = vld [vmem:[%s6594_s12 + $0x5] ss:$0 sm:$0xff] }
0x29bc   :  { %v3971_v28 = vmul.f32 %v3960_v29, %v3937_v56 }
0x29bd   :  { %v3964_v34 = vmul.f32 0.5, %v3963_v44 }
0x29be   :  { %v3976_v30 = vmul.f32 %v4758_v19, %v3971_v28 }
0x29bf   :  { %v3965_v32 = vsub.f32 1.5, %v3964_v34 }
0x29c0   :  { %v3981_v38 = vadd.f32 %v4759_v27, %v3976_v30 }
0x29c1   :  { %v3966_v31 = vmul.f32 %v4914_v41, %v3965_v32 }
0x29c2   :  { %4671 = vmatmul.msk.f32.vlgmr.msra.gmra.mxu2 %vm86_vm0, %v3981_v38 }
0x29c3   :  { %v3970_v33 = vsel %vm3969_vm8, %v4914_v41, %v3966_v31 }
0x29c4   :  { %v3972_v35 = vmul.f32 %v3970_v33, %v3938_v5 }
0x29c6   :  { %v3977_v36 = vmul.f32 %v4758_v19, %v3972_v35  ;;  %v4764_v35 = vld [vmem:[%s6601_s19] ss:$0 sm:$0xff] }
0x29c8   :  { %v3982_v37 = vadd.f32 %v4759_v27, %v3977_v36 }
0x29ca   :  { %4672 = vmatmul.msk.f32.gmra.mxu2 %vm86_vm0, %v3982_v37 }
0x2a45   :  { %v4016_v42 = vpop.f32.mrf.mxu2 }
0x2a46   :  { %v4017_v43 = vadd.f32 %v4760_v60, %v4016_v42 }
0x2a48   :  { %v4022_v59 = vmax.f32 %v4017_v43, 0.0 }
0x2a4a   :  { %4682 = vmatmul.msk.f32.vlgmr.msra.gmra.mxu3 %vm2011_vm3, %v4022_v59 }
0x2a4d   :  { %v4019_v50 = vpop.f32.mrf.mxu2 }
0x2a4e   :  { %v4020_v47 = vadd.f32 %v4760_v60, %v4019_v50 }
0x2a50   :  { %v4023_v48 = vmax.f32 %v4020_v47, 0.0 }
0x2a52   :  { %4683 = vmatmul.msk.f32.gmra.mxu3 %vm2011_vm3, %v4023_v48 }
0x2acd   :  { %v4061_v55 = vpop.f32.mrf.mxu3 }
0x2ace   :  { %v4062_v51 = vadd.f32 %v4761_v49, %v4061_v55 }
0x2ad0   :  { %v4067_v52 = vadd.f32 %v4062_v51, %v3981_v38 }
0x2ad2   :  { %v4073_v53 = vsel %vm86_vm0, %v4067_v52, 0.0 }
0x2ad3   :  { %4074 = vadd.xlane.f32.xlu0 %v4073_v53 }
0x2ad5   :  { %v4064_v54 = vpop.f32.mrf.mxu3 }
0x2ad6   :  { %v4065_v45 = vadd.f32 %v4761_v49, %v4064_v54 }
0x2ad8   :  { %v4068_v46 = vadd.f32 %v4065_v45, %v3982_v37 }
0x2ada   :  { %v4076_v56 = vsel %vm86_vm0, %v4068_v46, 0.0 }
0x2adb   :  { %4077 = vadd.xlane.f32.xlu1 %v4076_v56 }
0x2b46   :  { %v4075_v57 = vpop.xlane.xlu0 %4074 }
0x2b47   :  { %v4079_v62 = vmul.f32 %v4075_v57, %v5408_v2 }
0x2b49   :  { %v4081_v26 = vsub.f32 %v4067_v52, %v4079_v62 }
0x2b4b   :  { %v4083_v11 = vmul.f32 %v4081_v26, %v4081_v26 }
0x2b4d   :  { %v4085_v5 = vsel %vm86_vm0, %v4083_v11, 0.0 }
0x2b4e   :  { %v4078_v22 = vpop.xlane.xlu1 %4077  ;;  %4086 = vadd.xlane.f32.xlu2 %v4085_v5 }
0x2b4f   :  { %v4080_v10 = vmul.f32 %v4078_v22, %v5408_v2 }
0x2b51   :  { %v4082_v4 = vsub.f32 %v4068_v46, %v4080_v10 }
0x2b53   :  { %v4084_v61 = vmul.f32 %v4082_v4, %v4082_v4 }
0x2b55   :  { %v4088_v15 = vsel %vm86_vm0, %v4084_v61, 0.0 }
0x2b56   :  { %4089 = vadd.xlane.f32.xlu0 %v4088_v15 }
0x2bc1   :  { %v4087_v6 = vpop.xlane.xlu2 %4086 }
0x2bc2   :  { %v4091_v7 = vmul.f32 %v4087_v6, %v5408_v2 }
0x2bc4   :  { %v4093_v8 = vadd.f32 1e-05, %v4091_v7 }
0x2bc6   :  { %4915 = vrsqrt.f32 %v4093_v8  ;;  %vm4101_vm9 = vweird.f32 %v4093_v8 }
0x2bc9   :  { %v4090_v14 = vpop.xlane.xlu0 %4089 }
0x2bca   :  { %v4092_v17 = vmul.f32 %v4090_v14, %v5408_v2  ;;  %v4763_v2 = vld [vmem:[%s6595_s13 + $0x5] ss:$0 sm:$0xff]  ;;  %s4950_s13 = smov [#allocation2]  }
0x2bcb   :  { %s4170_s22 = sshll.u32 %s4950_s13, 4  ;;  %s4171_s22 = int_to_ptr.vmem [resolvable:$true] %s4170_s22 }
0x2bcc   :  { %v4916_v18 = vpop.eup %4915  ;;  %v4094_v12 = vadd.f32 1e-05, %v4092_v17 }
0x2bcd   :  { %v4096_v16 = vmul.f32 %v4916_v18, %v4093_v8  ;;  %vm4102_vm3 = vweird.f32 %v4916_v18 }
0x2bce   :  { %4917 = vrsqrt.f32 %v4094_v12  ;;  %vm4103_vm10 = vmor %vm4101_vm9, %vm4102_vm3  ;;  %vm4111_vm12 = vweird.f32 %v4094_v12 }
0x2bcf   :  { %v4097_v20 = vmul.f32 %v4916_v18, %v4096_v16 }
0x2bd1   :  { %v4098_v21 = vmul.f32 0.5, %v4097_v20 }
0x2bd3   :  { %v4099_v23 = vsub.f32 1.5, %v4098_v21 }
0x2bd4   :  { %v4918_v24 = vpop.eup %4917 }
0x2bd5   :  { %v4100_v13 = vmul.f32 %v4916_v18, %v4099_v23  ;;  %v4106_v41 = vmul.f32 %v4918_v24, %v4094_v12  ;;  %vm4112_vm11 = vweird.f32 %v4918_v24 }
0x2bd6   :  { %vm4113_vm13 = vmor %vm4111_vm12, %vm4112_vm11 }
0x2bd7   :  { %v4104_v9 = vsel %vm4103_vm10, %v4916_v18, %v4100_v13  ;;  %v4107_v19 = vmul.f32 %v4918_v24, %v4106_v41 }
0x2bd8   :  { %v4115_v29 = vmul.f32 %v4104_v9, %v4081_v26 }
0x2bd9   :  { %v4108_v44 = vmul.f32 0.5, %v4107_v19 }
0x2bda   :  { %v4120_v27 = vmul.f32 %v4762_v25, %v4115_v29 }
0x2bdb   :  { %v4109_v28 = vsub.f32 1.5, %v4108_v44 }
0x2bdc   :  { %v4125_v34 = vadd.f32 %v4763_v2, %v4120_v27 }
0x2bdd   :  { %v4110_v30 = vmul.f32 %v4918_v24, %v4109_v28 }
0x2bde   :  { %4686 = vmatmul.msk.f32.vlgmr.msrb.gmra.mxu0 %vm86_vm0, %v4125_v34 }
0x2bdf   :  { %v4114_v32 = vsel %vm4113_vm13, %v4918_v24, %v4110_v30 }
0x2be0   :  { %v4116_v38 = vmul.f32 %v4114_v32, %v4082_v4 }
0x2be2   :  { %v4121_v31 = vmul.f32 %v4762_v25, %v4116_v38 }
0x2be4   :  { %v4126_v33 = vadd.f32 %v4763_v2, %v4121_v31 }
0x2be6   :  { %4687 = vmatmul.msk.f32.gmra.mxu0 %vm86_vm0, %v4126_v33 }
0x2c5b   :  { %v4158_v36 = vpop.f32.mrf.mxu0 }
0x2c5c   :  { %v4159_v37 = vadd.f32 %v4764_v35, %v4158_v36 }
0x2c5e   :  { %4164 = vst.msk [vmem:[#allocation2] sm:$0xff] %vm218_vm2, %v4159_v37 }
0x2c63   :  { %v4161_v39 = vpop.f32.mrf.mxu0 }
0x2c64   :  { %v4162_v40 = vadd.f32 %v4764_v35, %v4161_v39 }
0x2c66   :  { %4165 = vst.msk [vmem:[#allocation2 + $0x8] sm:$0xff] %vm218_vm2, %v4162_v40 }
0x2c67   :  { %4178 = dma.vmem_to_hbm [thread:$0]  %s4171_s22, 256, %s4173_s9, [#allocation3], %s4951_s10, %s4951_s10, %s4952_s11  }
0x2c68   :  { %4947 = dma.done.wait [#allocation3], 256  }
0x2c69   :  { %4948 = vsyncadd [#allocation3], 4294967040 }
0x2c6a   :  { %4183 = vsyncpa [#allocation3], 1 }

</bundles_post_ra>
